<compile_context>
chip_gen: v7x
topology: tpu7x:2x2x1
jax: 0.10.0
libtpu: 0.0.40
codegen_flags: <defaults>
</compile_context>

<pallas_src>
import functools
import math

import jax
import jax.numpy as jnp
from jax import lax
from jax.experimental import pallas as pl
from jax.experimental.pallas import tpu as pltpu

PAD_TOKEN_ID = 0
MASK_TOKEN_ID = 4

# 'core' tier config; Mamba is None in the reference file -> MLP fallback.
MAMBA_LAYERS = 4          # -> (MAMBA_LAYERS - 1) = 3 hidden Linear+GELU layers
EXPANSION_FACTOR = 2
NOISE_BETA = 0.1
NOISE_OMEGA = 0.9
LN_EPS = 1e-5


# ----------------------------- Pallas kernel -------------------------------

def mdb_mlp_kernel(x_ref, ctx_ref, w1a_ref, w1b_ref, b1_ref,
                   wh_ref, bh_ref, wo_ref, bo_ref, whd_ref, bhd_ref,
                   out_ref, *, blocks_per_tile, l_prime):
    """Fused MLP sequence processor + LayerNorm + vocab head for one row tile.

    x_ref   : (tm, E)  bf16  token embeddings (+ positional encoding)
    ctx_ref : (bp, E)  bf16  per-block context summaries (bp = tm // l_prime)
    """
    tm = blocks_per_tile * l_prime
    H = w1a_ref.shape[1]

    # Per-block context projection with the layer-1 bias folded in once:
    # (bp, E) @ (E, H) -> (bp, H), f32 MXU accumulation.
    ctx_h = jnp.dot(ctx_ref[...], w1b_ref[...],
                    preferred_element_type=jnp.float32) + b1_ref[...]

    # Expand per-block rows to per-token rows with a sublane broadcast
    # (layout-safe; replaces the former K=8 one-hot select matmul).
    ctx_rows = jnp.broadcast_to(
        ctx_h[:, None, :], (blocks_per_tile, l_prime, H)).reshape(tm, H)

    # Layer 1: token half of the concatenated Linear + block context, GELU.
    h = jnp.dot(x_ref[...], w1a_ref[...],
                preferred_element_type=jnp.float32) + ctx_rows
    h = jax.nn.gelu(h, approximate=True)          # tanh form -> EUP slot

    # Hidden Linear+GELU layers (static unroll).
    for i in range(wh_ref.shape[0]):
        h = jax.nn.gelu(
            jnp.dot(h.astype(wh_ref.dtype), wh_ref[i],
                    preferred_element_type=jnp.float32) + bh_ref[i],
            approximate=True)

    # Output projection back to embed dim.
    h = jnp.dot(h.astype(wo_ref.dtype), wo_ref[...],
                preferred_element_type=jnp.float32) + bo_ref[...]

    # One-pass LayerNorm over embed dim (gamma/beta folded into the head):
    # var = E[h^2] - mu^2 from the same pass over h.
    inv_e = 1.0 / h.shape[-1]
    mu = jnp.sum(h, axis=-1, keepdims=True) * inv_e
    ex2 = jnp.sum(h * h, axis=-1, keepdims=True) * inv_e
    var = jnp.maximum(ex2 - mu * mu, 0.0)
    hn = (h - mu) * lax.rsqrt(var + LN_EPS)

    # Denoise head -> vocab logits, stored as bf16 (halves HBM writeback).
    logits = jnp.dot(hn.astype(whd_ref.dtype), whd_ref[...],
                     preferred_element_type=jnp.float32) + bhd_ref[...]
    out_ref[...] = logits.astype(out_ref.dtype)


def _full_spec(arr):
    ndim = arr.ndim
    return pl.BlockSpec(arr.shape, lambda i: (0,) * ndim)


def run_mdb_mlp(x_rows, ctx_blocks, kparams, *, l_prime, tm):
    """x_rows: (rows, E) bf16, ctx_blocks: (rows//l_prime, E) bf16 -> (rows, V) bf16."""
    rows, E = x_rows.shape
    n_blocks_total = ctx_blocks.shape[0]
    H = kparams["w1_top"].shape[1]
    V = kparams["w_head"].shape[1]
    n_hidden = kparams["w_hidden"].shape[0]

    assert tm % l_prime == 0, "row tile must hold whole blocks"
    bp = tm // l_prime
    assert rows == n_blocks_total * l_prime
    assert n_blocks_total % bp == 0, "blocks must be padded to a multiple of bp"
    grid = (n_blocks_total // bp,)

    in_specs = [
        pl.BlockSpec((tm, E), lambda i: (i, 0)),     # token-embedding rows
        pl.BlockSpec((bp, E), lambda i: (i, 0)),     # per-block contexts
        _full_spec(kparams["w1_top"]), _full_spec(kparams["w1_bot"]),
        _full_spec(kparams["b1"]),
        _full_spec(kparams["w_hidden"]), _full_spec(kparams["b_hidden"]),
        _full_spec(kparams["w_out"]), _full_spec(kparams["b_out"]),
        _full_spec(kparams["w_head"]), _full_spec(kparams["b_head"]),
    ]
    out_specs = pl.BlockSpec((tm, V), lambda i: (i, 0))

    flops = (2 * rows * (E * H + n_hidden * H * H + H * E + E * V)
             + 2 * n_blocks_total * E * H)
    transcendentals = rows * H * (1 + n_hidden)          # tanh evaluations
    weight_bytes = sum(int(v.size) * v.dtype.itemsize for v in kparams.values())
    bytes_accessed = (rows * E * 2 + n_blocks_total * E * 2
                      + rows * V * 2 + weight_bytes)

    kernel = functools.partial(mdb_mlp_kernel,
                               blocks_per_tile=bp, l_prime=l_prime)

    return pl.pallas_call(
        kernel,
        out_shape=jax.ShapeDtypeStruct((rows, V), jnp.bfloat16),
        grid=grid,
        in_specs=in_specs,
        out_specs=out_specs,
        compiler_params=pltpu.CompilerParams(
            dimension_semantics=("parallel",),
            vmem_limit_bytes=32 * 1024 * 1024),
        cost_estimate=pl.CostEstimate(flops=int(flops),
                                      transcendentals=int(transcendentals),
                                      bytes_accessed=int(bytes_accessed)),
    )(x_rows, ctx_blocks,
      kparams["w1_top"], kparams["w1_bot"], kparams["b1"],
      kparams["w_hidden"], kparams["b_hidden"],
      kparams["w_out"], kparams["b_out"],
      kparams["w_head"], kparams["b_head"])


# ----------------------------- parameter init ------------------------------

def init_params(key, vocab_size, embed_dim):
    hidden = int(embed_dim * EXPANSION_FACTOR)
    n_hidden = max(0, MAMBA_LAYERS - 1)
    ks = jax.random.split(key, 6 + n_hidden)

    def xavier(k, fan_in, fan_out):
        a = math.sqrt(6.0 / (fan_in + fan_out))
        return jax.random.uniform(k, (fan_in, fan_out), jnp.float32, -a, a)

    params = {
        # nn.Embedding: normal(0, embed_dim**-0.5) per _init_weights
        "embedding": jax.random.normal(ks[0], (vocab_size, embed_dim),
                                       jnp.float32) * embed_dim ** (-0.5),
        # Linear(embed_dim + context_dim=embed_dim, hidden)
        "w1": xavier(ks[1], 2 * embed_dim, hidden),
        "b1": jnp.zeros((1, hidden), jnp.float32),
        # (MAMBA_LAYERS-1) x Linear(hidden, hidden)
        "w_hidden": jnp.stack([xavier(ks[2 + i], hidden, hidden)
                               for i in range(n_hidden)]),
        "b_hidden": jnp.zeros((n_hidden, 1, hidden), jnp.float32),
        # Linear(hidden, embed_dim)
        "w_out": xavier(ks[2 + n_hidden], hidden, embed_dim),
        "b_out": jnp.zeros((1, embed_dim), jnp.float32),
        # LayerNorm(embed_dim)
        "ln_gamma": jnp.ones((1, embed_dim), jnp.float32),
        "ln_beta": jnp.zeros((1, embed_dim), jnp.float32),
        # denoise head Linear(embed_dim, vocab)
        "w_head": xavier(ks[3 + n_hidden], embed_dim, vocab_size),
        "b_head": jnp.zeros((1, vocab_size), jnp.float32),
    }
    return params


def prepare_kernel_params(params):
    """Split w1, fold LayerNorm affine into the head, cast weights to bf16."""
    E = params["w_out"].shape[1]
    gamma = params["ln_gamma"]            # (1, E)
    beta = params["ln_beta"]              # (1, E)
    w_head_eff = params["w_head"] * gamma.reshape(E, 1)
    b_head_eff = params["b_head"] + beta @ params["w_head"]
    return {
        "w1_top": params["w1"][:E].astype(jnp.bfloat16),     # token embeddings
        "w1_bot": params["w1"][E:].astype(jnp.bfloat16),      # context half
        "b1": params["b1"],
        "w_hidden": params["w_hidden"].astype(jnp.bfloat16),
        "b_hidden": params["b_hidden"],
        "w_out": params["w_out"].astype(jnp.bfloat16),
        "b_out": params["b_out"],
        "w_head": w_head_eff.astype(jnp.bfloat16),
        "b_head": b_head_eff,
    }


def sinusoidal_pe(seq_len, d_model):
    position = jnp.arange(seq_len, dtype=jnp.float32)[:, None]
    div_term = jnp.exp(jnp.arange(0, d_model, 2, dtype=jnp.float32)
                       * (-math.log(10000.0) / d_model))
    pe = jnp.zeros((seq_len, d_model), jnp.float32)
    pe = pe.at[:, 0::2].set(jnp.sin(position * div_term))
    pe = pe.at[:, 1::2].set(jnp.cos(position * div_term))
    return pe


# ----------------------------- MBDS forward --------------------------------

def _choose_row_tile(total_blocks, l_prime, target_rows=512):
    """Largest row tile <= target_rows (whole blocks) while keeping grid >= 2
    so v7x can shard row tiles across both TensorCores."""
    bp = max(1, min(target_rows // l_prime, total_blocks))
    if total_blocks >= 2 and bp > total_blocks // 2:
        bp = max(1, total_blocks // 2)
    return bp * l_prime


def mbds_forward(tokens, params, key, l_prime=32, tm=None):
    """Replicates MBDS._forward_blockwise_parallel_mlp (targets=None).

    Returns bf16 logits of shape (B, S, V); cast to f32 downstream only where
    the loss/softmax needs full precision.
    """
    B, S = tokens.shape
    E = params["embedding"].shape[1]
    V = params["w_head"].shape[1]
    n_blocks = -(-S // l_prime)
    padded_len = n_blocks * l_prime

    x_padded = jnp.pad(tokens, ((0, 0), (0, padded_len - S)),
                       constant_values=PAD_TOKEN_ID)
    x_blocks = x_padded.reshape(B, n_blocks, l_prime)

    # Context summaries from the *unmasked* block embeddings (EMA 0.8/0.2):
    # block b sees the EMA through block b-1, block 0 sees zeros.
    emb_blocks = jnp.take(params["embedding"], x_blocks, axis=0)   # (B,nb,L,E)
    block_mean = emb_blocks.mean(axis=2)                            # (B,nb,E)

    def ema_step(prev, inputs):
        bm, is_first = inputs
        ctx_out = prev                                  # context seen by block b
        new = jnp.where(is_first, bm, 0.8 * prev + 0.2 * bm)
        return new, ctx_out

    is_first = jnp.arange(n_blocks) == 0
    _, contexts = lax.scan(ema_step, jnp.zeros((B, E), jnp.float32),
                           (jnp.swapaxes(block_mean, 0, 1), is_first))
    contexts = jnp.swapaxes(contexts, 0, 1)                         # (B,nb,E)

    # Per-block diffusion-style masking (one noise level per block, shared
    # across the batch, matching the reference loop), vectorized over blocks.
    k_noise, k_mask = jax.random.split(key)
    noise = (jax.random.uniform(k_noise, (n_blocks,))
             * (NOISE_OMEGA - NOISE_BETA) + NOISE_BETA)
    can_mask = x_blocks != PAD_TOKEN_ID
    mask = jax.random.bernoulli(k_mask, noise[None, :, None],
                                x_blocks.shape) & can_mask
    x_t_blocks = jnp.where(mask, MASK_TOKEN_ID, x_blocks)          # (B,nb,L)

    # Embedding + positional encoding (dropout = identity in eval).
    x_t_embed = jnp.take(params["embedding"], x_t_blocks, axis=0)   # (B,nb,L,E)
    x_t_embed = x_t_embed + sinusoidal_pe(l_prime, E)[None, None]

    # Flatten to kernel inputs; context stays one row per block (the kernel
    # broadcast-expands it per token -> less streamed HBM).
    total_blocks = B * n_blocks
    if tm is None:
        tm = _choose_row_tile(total_blocks, l_prime)
    assert tm % l_prime == 0
    bp = tm // l_prime
    pad_blocks = (-total_blocks) % bp

    rows_x = x_t_embed.reshape(total_blocks * l_prime, E).astype(jnp.bfloat16)
    ctx_blocks_flat = contexts.reshape(total_blocks, E).astype(jnp.bfloat16)
    if pad_blocks:
        rows_x = jnp.pad(rows_x, ((0, pad_blocks * l_prime), (0, 0)))
        ctx_blocks_flat = jnp.pad(ctx_blocks_flat, ((0, pad_blocks), (0, 0)))

    kparams = prepare_kernel_params(params)
    logits_rows = run_mdb_mlp(rows_x, ctx_blocks_flat, kparams,
                              l_prime=l_prime, tm=tm)
    logits_rows = logits_rows[: total_blocks * l_prime]
    logits = logits_rows.reshape(B, n_blocks * l_prime, V)[:, :S, :]
    return logits


# --------------------------------- main -------------------------------------

if __name__ == "__main__":
    VOCAB = 256
    EMBED_DIM = 64
    L_PRIME = 32
    B, S = 4, 100   # pads to 128 -> 4 blocks/row -> 16 blocks -> grid of 2 tiles

    root = jax.random.PRNGKey(0)
    k_params, k_tokens, k_noise = jax.random.split(root, 3)

    params = init_params(k_params, VOCAB, EMBED_DIM)
    tokens = jax.random.randint(k_tokens, (B, S), 0, VOCAB, dtype=jnp.int32)

    logits = mbds_forward(tokens, params, k_noise, l_prime=L_PRIME)
    logits = jax.block_until_ready(logits)
    assert logits.shape == (B, S, VOCAB), logits.shape
    assert jnp.all(jnp.isfinite(logits.astype(jnp.float32)))
    print("KERNEL_OK")
</pallas_src>

<mosaic_0001>
module attributes {stable_mosaic.version = 11 : i64} {
  func.func @mdb_mlp_kernel(%arg0: i32, %arg1: memref<256x64xbf16, #tpu.memory_space<vmem>>, %arg2: memref<8x64xbf16, #tpu.memory_space<vmem>>, %arg3: memref<64x128xbf16, #tpu.memory_space<vmem>>, %arg4: memref<64x128xbf16, #tpu.memory_space<vmem>>, %arg5: memref<1x128xf32, #tpu.memory_space<vmem>>, %arg6: memref<3x128x128xbf16, #tpu.memory_space<vmem>>, %arg7: memref<3x1x128xf32, #tpu.memory_space<vmem>>, %arg8: memref<128x64xbf16, #tpu.memory_space<vmem>>, %arg9: memref<1x64xf32, #tpu.memory_space<vmem>>, %arg10: memref<64x256xbf16, #tpu.memory_space<vmem>>, %arg11: memref<1x256xf32, #tpu.memory_space<vmem>>, %arg12: memref<256x256xbf16, #tpu.memory_space<vmem>>) attributes {dimension_semantics = [#tpu.dimension_semantics<parallel>], iteration_bounds = array<i64: 2>, scalar_prefetch = 0 : i64, scratch_operands = 0 : i64, tpu.core_type = #tpu.core_type<tc>, window_params = [{transform_indices = @transform_0, window_bounds = array<i64: 256, 64>}, {transform_indices = @transform_1, window_bounds = array<i64: 8, 64>}, {pipeline_mode = #tpu.pipeline_mode<synchronous>, transform_indices = @transform_2, window_bounds = array<i64: 64, 128>}, {pipeline_mode = #tpu.pipeline_mode<synchronous>, transform_indices = @transform_3, window_bounds = array<i64: 64, 128>}, {pipeline_mode = #tpu.pipeline_mode<synchronous>, transform_indices = @transform_4, window_bounds = array<i64: 1, 128>}, {pipeline_mode = #tpu.pipeline_mode<synchronous>, transform_indices = @transform_5, window_bounds = array<i64: 3, 128, 128>}, {pipeline_mode = #tpu.pipeline_mode<synchronous>, transform_indices = @transform_6, window_bounds = array<i64: 3, 1, 128>}, {pipeline_mode = #tpu.pipeline_mode<synchronous>, transform_indices = @transform_7, window_bounds = array<i64: 128, 64>}, {pipeline_mode = #tpu.pipeline_mode<synchronous>, transform_indices = @transform_8, window_bounds = array<i64: 1, 64>}, {pipeline_mode = #tpu.pipeline_mode<synchronous>, transform_indices = @transform_9, window_bounds = array<i64: 64, 256>}, {pipeline_mode = #tpu.pipeline_mode<synchronous>, transform_indices = @transform_10, window_bounds = array<i64: 1, 256>}, {transform_indices = @transform_11, window_bounds = array<i64: 256, 256>}]} {
    %c0 = arith.constant 0 : index
    %c0_0 = arith.constant 0 : index
    %0 = vector.load %arg2[%c0, %c0_0] : memref<8x64xbf16, #tpu.memory_space<vmem>>, vector<8x64xbf16>
    %c0_1 = arith.constant 0 : index
    %c0_2 = arith.constant 0 : index
    %1 = vector.load %arg4[%c0_1, %c0_2] : memref<64x128xbf16, #tpu.memory_space<vmem>>, vector<64x128xbf16>
    %cst = arith.constant dense<0.000000e+00> : vector<8x128xf32>
    %2 = tpu.matmul %0, %1, %cst {dimension_numbers = #tpu.dot_dimension_numbers<[1], [0], [0], [1], [0, 0, 1, 1], [], []>} : vector<8x64xbf16>, vector<64x128xbf16>, vector<8x128xf32> -> vector<8x128xf32>
    %c0_3 = arith.constant 0 : index
    %c0_4 = arith.constant 0 : index
    %3 = vector.load %arg5[%c0_3, %c0_4] : memref<1x128xf32, #tpu.memory_space<vmem>>, vector<1x128xf32>
    %4 = vector.broadcast %3 : vector<1x128xf32> to vector<8x128xf32>
    %5 = arith.addf %2, %4 : vector<8x128xf32>
    %6 = vector.shape_cast %5 : vector<8x128xf32> to vector<8x1x128xf32>
    %7 = vector.shape_cast %6 : vector<8x1x128xf32> to vector<8x1x128xf32>
    %8 = vector.broadcast %7 : vector<8x1x128xf32> to vector<8x32x128xf32>
    %9 = vector.shape_cast %8 : vector<8x32x128xf32> to vector<256x128xf32>
    %c0_5 = arith.constant 0 : index
    %c0_6 = arith.constant 0 : index
    %10 = vector.load %arg1[%c0_5, %c0_6] : memref<256x64xbf16, #tpu.memory_space<vmem>>, vector<256x64xbf16>
    %c0_7 = arith.constant 0 : index
    %c0_8 = arith.constant 0 : index
    %11 = vector.load %arg3[%c0_7, %c0_8] : memref<64x128xbf16, #tpu.memory_space<vmem>>, vector<64x128xbf16>
    %cst_9 = arith.constant dense<0.000000e+00> : vector<256x128xf32>
    %12 = tpu.matmul %10, %11, %cst_9 {dimension_numbers = #tpu.dot_dimension_numbers<[1], [0], [0], [1], [0, 0, 1, 1], [], []>} : vector<256x64xbf16>, vector<64x128xbf16>, vector<256x128xf32> -> vector<256x128xf32>
    %13 = arith.addf %12, %9 : vector<256x128xf32>
    %14 = arith.mulf %13, %13 : vector<256x128xf32>
    %15 = arith.mulf %13, %14 : vector<256x128xf32>
    %cst_10 = arith.constant 4.471500e-02 : f32
    %16 = vector.broadcast %cst_10 : f32 to vector<256x128xf32>
    %17 = arith.mulf %16, %15 : vector<256x128xf32>
    %18 = arith.addf %13, %17 : vector<256x128xf32>
    %cst_11 = arith.constant 0.797884583 : f32
    %19 = vector.broadcast %cst_11 : f32 to vector<256x128xf32>
    %20 = arith.mulf %19, %18 : vector<256x128xf32>
    %21 = math.tanh %20 : vector<256x128xf32>
    %cst_12 = arith.constant 1.000000e+00 : f32
    %22 = vector.broadcast %cst_12 : f32 to vector<256x128xf32>
    %23 = arith.addf %22, %21 : vector<256x128xf32>
    %cst_13 = arith.constant 5.000000e-01 : f32
    %24 = vector.broadcast %cst_13 : f32 to vector<256x128xf32>
    %25 = arith.mulf %24, %23 : vector<256x128xf32>
    %26 = arith.mulf %13, %25 : vector<256x128xf32>
    %27 = arith.truncf %26 : vector<256x128xf32> to vector<256x128xbf16>
    %c0_14 = arith.constant 0 : index
    %c0_15 = arith.constant 0 : index
    %c0_16 = arith.constant 0 : index
    %28 = vector.load %arg6[%c0_14, %c0_15, %c0_16] : memref<3x128x128xbf16, #tpu.memory_space<vmem>>, vector<1x128x128xbf16>
    %29 = vector.shape_cast %28 : vector<1x128x128xbf16> to vector<128x128xbf16>
    %cst_17 = arith.constant dense<0.000000e+00> : vector<256x128xf32>
    %30 = tpu.matmul %27, %29, %cst_17 {dimension_numbers = #tpu.dot_dimension_numbers<[1], [0], [0], [1], [0, 0, 1, 1], [], []>} : vector<256x128xbf16>, vector<128x128xbf16>, vector<256x128xf32> -> vector<256x128xf32>
    %c0_18 = arith.constant 0 : index
    %c0_19 = arith.constant 0 : index
    %c0_20 = arith.constant 0 : index
    %31 = vector.load %arg7[%c0_18, %c0_19, %c0_20] : memref<3x1x128xf32, #tpu.memory_space<vmem>>, vector<1x1x128xf32>
    %32 = vector.shape_cast %31 : vector<1x1x128xf32> to vector<1x128xf32>
    %33 = vector.broadcast %32 : vector<1x128xf32> to vector<256x128xf32>
    %34 = arith.addf %30, %33 : vector<256x128xf32>
    %35 = arith.mulf %34, %34 : vector<256x128xf32>
    %36 = arith.mulf %34, %35 : vector<256x128xf32>
    %cst_21 = arith.constant 4.471500e-02 : f32
    %37 = vector.broadcast %cst_21 : f32 to vector<256x128xf32>
    %38 = arith.mulf %37, %36 : vector<256x128xf32>
    %39 = arith.addf %34, %38 : vector<256x128xf32>
    %cst_22 = arith.constant 0.797884583 : f32
    %40 = vector.broadcast %cst_22 : f32 to vector<256x128xf32>
    %41 = arith.mulf %40, %39 : vector<256x128xf32>
    %42 = math.tanh %41 : vector<256x128xf32>
    %cst_23 = arith.constant 1.000000e+00 : f32
    %43 = vector.broadcast %cst_23 : f32 to vector<256x128xf32>
    %44 = arith.addf %43, %42 : vector<256x128xf32>
    %cst_24 = arith.constant 5.000000e-01 : f32
    %45 = vector.broadcast %cst_24 : f32 to vector<256x128xf32>
    %46 = arith.mulf %45, %44 : vector<256x128xf32>
    %47 = arith.mulf %34, %46 : vector<256x128xf32>
    %48 = arith.truncf %47 : vector<256x128xf32> to vector<256x128xbf16>
    %c1 = arith.constant 1 : index
    %c0_25 = arith.constant 0 : index
    %c0_26 = arith.constant 0 : index
    %49 = vector.load %arg6[%c1, %c0_25, %c0_26] : memref<3x128x128xbf16, #tpu.memory_space<vmem>>, vector<1x128x128xbf16>
    %50 = vector.shape_cast %49 : vector<1x128x128xbf16> to vector<128x128xbf16>
    %cst_27 = arith.constant dense<0.000000e+00> : vector<256x128xf32>
    %51 = tpu.matmul %48, %50, %cst_27 {dimension_numbers = #tpu.dot_dimension_numbers<[1], [0], [0], [1], [0, 0, 1, 1], [], []>} : vector<256x128xbf16>, vector<128x128xbf16>, vector<256x128xf32> -> vector<256x128xf32>
    %c1_28 = arith.constant 1 : index
    %c0_29 = arith.constant 0 : index
    %c0_30 = arith.constant 0 : index
    %52 = vector.load %arg7[%c1_28, %c0_29, %c0_30] : memref<3x1x128xf32, #tpu.memory_space<vmem>>, vector<1x1x128xf32>
    %53 = vector.shape_cast %52 : vector<1x1x128xf32> to vector<1x128xf32>
    %54 = vector.broadcast %53 : vector<1x128xf32> to vector<256x128xf32>
    %55 = arith.addf %51, %54 : vector<256x128xf32>
    %56 = arith.mulf %55, %55 : vector<256x128xf32>
    %57 = arith.mulf %55, %56 : vector<256x128xf32>
    %cst_31 = arith.constant 4.471500e-02 : f32
    %58 = vector.broadcast %cst_31 : f32 to vector<256x128xf32>
    %59 = arith.mulf %58, %57 : vector<256x128xf32>
    %60 = arith.addf %55, %59 : vector<256x128xf32>
    %cst_32 = arith.constant 0.797884583 : f32
    %61 = vector.broadcast %cst_32 : f32 to vector<256x128xf32>
    %62 = arith.mulf %61, %60 : vector<256x128xf32>
    %63 = math.tanh %62 : vector<256x128xf32>
    %cst_33 = arith.constant 1.000000e+00 : f32
    %64 = vector.broadcast %cst_33 : f32 to vector<256x128xf32>
    %65 = arith.addf %64, %63 : vector<256x128xf32>
    %cst_34 = arith.constant 5.000000e-01 : f32
    %66 = vector.broadcast %cst_34 : f32 to vector<256x128xf32>
    %67 = arith.mulf %66, %65 : vector<256x128xf32>
    %68 = arith.mulf %55, %67 : vector<256x128xf32>
    %69 = arith.truncf %68 : vector<256x128xf32> to vector<256x128xbf16>
    %c2 = arith.constant 2 : index
    %c0_35 = arith.constant 0 : index
    %c0_36 = arith.constant 0 : index
    %70 = vector.load %arg6[%c2, %c0_35, %c0_36] : memref<3x128x128xbf16, #tpu.memory_space<vmem>>, vector<1x128x128xbf16>
    %71 = vector.shape_cast %70 : vector<1x128x128xbf16> to vector<128x128xbf16>
    %cst_37 = arith.constant dense<0.000000e+00> : vector<256x128xf32>
    %72 = tpu.matmul %69, %71, %cst_37 {dimension_numbers = #tpu.dot_dimension_numbers<[1], [0], [0], [1], [0, 0, 1, 1], [], []>} : vector<256x128xbf16>, vector<128x128xbf16>, vector<256x128xf32> -> vector<256x128xf32>
    %c2_38 = arith.constant 2 : index
    %c0_39 = arith.constant 0 : index
    %c0_40 = arith.constant 0 : index
    %73 = vector.load %arg7[%c2_38, %c0_39, %c0_40] : memref<3x1x128xf32, #tpu.memory_space<vmem>>, vector<1x1x128xf32>
    %74 = vector.shape_cast %73 : vector<1x1x128xf32> to vector<1x128xf32>
    %75 = vector.broadcast %74 : vector<1x128xf32> to vector<256x128xf32>
    %76 = arith.addf %72, %75 : vector<256x128xf32>
    %77 = arith.mulf %76, %76 : vector<256x128xf32>
    %78 = arith.mulf %76, %77 : vector<256x128xf32>
    %cst_41 = arith.constant 4.471500e-02 : f32
    %79 = vector.broadcast %cst_41 : f32 to vector<256x128xf32>
    %80 = arith.mulf %79, %78 : vector<256x128xf32>
    %81 = arith.addf %76, %80 : vector<256x128xf32>
    %cst_42 = arith.constant 0.797884583 : f32
    %82 = vector.broadcast %cst_42 : f32 to vector<256x128xf32>
    %83 = arith.mulf %82, %81 : vector<256x128xf32>
    %84 = math.tanh %83 : vector<256x128xf32>
    %cst_43 = arith.constant 1.000000e+00 : f32
    %85 = vector.broadcast %cst_43 : f32 to vector<256x128xf32>
    %86 = arith.addf %85, %84 : vector<256x128xf32>
    %cst_44 = arith.constant 5.000000e-01 : f32
    %87 = vector.broadcast %cst_44 : f32 to vector<256x128xf32>
    %88 = arith.mulf %87, %86 : vector<256x128xf32>
    %89 = arith.mulf %76, %88 : vector<256x128xf32>
    %90 = arith.truncf %89 : vector<256x128xf32> to vector<256x128xbf16>
    %c0_45 = arith.constant 0 : index
    %c0_46 = arith.constant 0 : index
    %91 = vector.load %arg8[%c0_45, %c0_46] : memref<128x64xbf16, #tpu.memory_space<vmem>>, vector<128x64xbf16>
    %cst_47 = arith.constant dense<0.000000e+00> : vector<256x64xf32>
    %92 = tpu.matmul %90, %91, %cst_47 {dimension_numbers = #tpu.dot_dimension_numbers<[1], [0], [0], [1], [0, 0, 1, 1], [], []>} : vector<256x128xbf16>, vector<128x64xbf16>, vector<256x64xf32> -> vector<256x64xf32>
    %c0_48 = arith.constant 0 : index
    %c0_49 = arith.constant 0 : index
    %93 = vector.load %arg9[%c0_48, %c0_49] : memref<1x64xf32, #tpu.memory_space<vmem>>, vector<1x64xf32>
    %94 = vector.broadcast %93 : vector<1x64xf32> to vector<256x64xf32>
    %95 = arith.addf %92, %94 : vector<256x64xf32>
    %cst_50 = arith.constant dense<0.000000e+00> : vector<256xf32>
    %96 = vector.multi_reduction <add>, %95, %cst_50 [1] : vector<256x64xf32> to vector<256xf32>
    %97 = vector.shape_cast %96 : vector<256xf32> to vector<256x1xf32>
    %cst_51 = arith.constant 1.562500e-02 : f32
    %98 = vector.broadcast %cst_51 : f32 to vector<256x1xf32>
    %99 = arith.mulf %97, %98 : vector<256x1xf32>
    %100 = arith.mulf %95, %95 : vector<256x64xf32>
    %cst_52 = arith.constant dense<0.000000e+00> : vector<256xf32>
    %101 = vector.multi_reduction <add>, %100, %cst_52 [1] : vector<256x64xf32> to vector<256xf32>
    %102 = vector.shape_cast %101 : vector<256xf32> to vector<256x1xf32>
    %cst_53 = arith.constant 1.562500e-02 : f32
    %103 = vector.broadcast %cst_53 : f32 to vector<256x1xf32>
    %104 = arith.mulf %102, %103 : vector<256x1xf32>
    %105 = arith.mulf %99, %99 : vector<256x1xf32>
    %106 = arith.subf %104, %105 : vector<256x1xf32>
    %cst_54 = arith.constant 0.000000e+00 : f32
    %107 = vector.broadcast %cst_54 : f32 to vector<256x1xf32>
    %108 = arith.maximumf %106, %107 : vector<256x1xf32>
    %109 = vector.broadcast %99 : vector<256x1xf32> to vector<256x64xf32>
    %110 = arith.subf %95, %109 : vector<256x64xf32>
    %cst_55 = arith.constant 9.99999974E-6 : f32
    %111 = vector.broadcast %cst_55 : f32 to vector<256x1xf32>
    %112 = arith.addf %108, %111 : vector<256x1xf32>
    %113 = math.rsqrt %112 : vector<256x1xf32>
    %114 = vector.broadcast %113 : vector<256x1xf32> to vector<256x64xf32>
    %115 = arith.mulf %110, %114 : vector<256x64xf32>
    %116 = arith.truncf %115 : vector<256x64xf32> to vector<256x64xbf16>
    %c0_56 = arith.constant 0 : index
    %c0_57 = arith.constant 0 : index
    %117 = vector.load %arg10[%c0_56, %c0_57] : memref<64x256xbf16, #tpu.memory_space<vmem>>, vector<64x256xbf16>
    %cst_58 = arith.constant dense<0.000000e+00> : vector<256x256xf32>
    %118 = tpu.matmul %116, %117, %cst_58 {dimension_numbers = #tpu.dot_dimension_numbers<[1], [0], [0], [1], [0, 0, 1, 1], [], []>} : vector<256x64xbf16>, vector<64x256xbf16>, vector<256x256xf32> -> vector<256x256xf32>
    %c0_59 = arith.constant 0 : index
    %c0_60 = arith.constant 0 : index
    %119 = vector.load %arg11[%c0_59, %c0_60] : memref<1x256xf32, #tpu.memory_space<vmem>>, vector<1x256xf32>
    %120 = vector.broadcast %119 : vector<1x256xf32> to vector<256x256xf32>
    %121 = arith.addf %118, %120 : vector<256x256xf32>
    %122 = arith.truncf %121 : vector<256x256xf32> to vector<256x256xbf16>
    %c0_61 = arith.constant 0 : index
    %c0_62 = arith.constant 0 : index
    %123 = vector.load %arg12[%c0_61, %c0_62] : memref<256x256xbf16, #tpu.memory_space<vmem>>, vector<256x256xbf16>
    tpu.vector_store %arg12[%c0_61, %c0_62], %122 {strides = array<i32>} : memref<256x256xbf16, #tpu.memory_space<vmem>>, vector<256x256xbf16>,
    return
  }
  func.func @transform_0(%arg0: i32) -> (i32, i32) {
    %c0_i32 = arith.constant 0 : i32
    %c0_i32_0 = arith.constant 0 : i32
    return %arg0, %c0_i32 : i32, i32
  }
  func.func @transform_1(%arg0: i32) -> (i32, i32) {
    %c0_i32 = arith.constant 0 : i32
    %c0_i32_0 = arith.constant 0 : i32
    return %arg0, %c0_i32 : i32, i32
  }
  func.func @transform_2(%arg0: i32) -> (i32, i32) {
    %c0_i32 = arith.constant 0 : i32
    %c0_i32_0 = arith.constant 0 : i32
    %c0_i32_1 = arith.constant 0 : i32
    return %c0_i32, %c0_i32_0 : i32, i32
  }
  func.func @transform_3(%arg0: i32) -> (i32, i32) {
    %c0_i32 = arith.constant 0 : i32
    %c0_i32_0 = arith.constant 0 : i32
    %c0_i32_1 = arith.constant 0 : i32
    return %c0_i32, %c0_i32_0 : i32, i32
  }
  func.func @transform_4(%arg0: i32) -> (i32, i32) {
    %c0_i32 = arith.constant 0 : i32
    %c0_i32_0 = arith.constant 0 : i32
    %c0_i32_1 = arith.constant 0 : i32
    return %c0_i32, %c0_i32_0 : i32, i32
  }
  func.func @transform_5(%arg0: i32) -> (i32, i32, i32) {
    %c0_i32 = arith.constant 0 : i32
    %c0_i32_0 = arith.constant 0 : i32
    %c0_i32_1 = arith.constant 0 : i32
    %c0_i32_2 = arith.constant 0 : i32
    return %c0_i32, %c0_i32_0, %c0_i32_1 : i32, i32, i32
  }
  func.func @transform_6(%arg0: i32) -> (i32, i32, i32) {
    %c0_i32 = arith.constant 0 : i32
    %c0_i32_0 = arith.constant 0 : i32
    %c0_i32_1 = arith.constant 0 : i32
    %c0_i32_2 = arith.constant 0 : i32
    return %c0_i32, %c0_i32_0, %c0_i32_1 : i32, i32, i32
  }
  func.func @transform_7(%arg0: i32) -> (i32, i32) {
    %c0_i32 = arith.constant 0 : i32
    %c0_i32_0 = arith.constant 0 : i32
    %c0_i32_1 = arith.constant 0 : i32
    return %c0_i32, %c0_i32_0 : i32, i32
  }
  func.func @transform_8(%arg0: i32) -> (i32, i32) {
    %c0_i32 = arith.constant 0 : i32
    %c0_i32_0 = arith.constant 0 : i32
    %c0_i32_1 = arith.constant 0 : i32
    return %c0_i32, %c0_i32_0 : i32, i32
  }
  func.func @transform_9(%arg0: i32) -> (i32, i32) {
    %c0_i32 = arith.constant 0 : i32
    %c0_i32_0 = arith.constant 0 : i32
    %c0_i32_1 = arith.constant 0 : i32
    return %c0_i32, %c0_i32_0 : i32, i32
  }
  func.func @transform_10(%arg0: i32) -> (i32, i32) {
    %c0_i32 = arith.constant 0 : i32
    %c0_i32_0 = arith.constant 0 : i32
    %c0_i32_1 = arith.constant 0 : i32
    return %c0_i32, %c0_i32_0 : i32, i32
  }
  func.func @transform_11(%arg0: i32) -> (i32, i32) {
    %c0_i32 = arith.constant 0 : i32
    %c0_i32_0 = arith.constant 0 : i32
    return %arg0, %c0_i32 : i32, i32
  }
}

</mosaic_0001>

<bundles_post_ra>
// kernel: tpu_custom_call.1
= control target key start
LH: loop header
LB: loop body
LE: loop exit
PB: predicated region body
PF: predicated region fallthrough
CT: control target
= control target key end

     0   :  { %16 = vsyncpa [#allocation3], 0  ;;  %s7458_s0 = inlined_call_operand.vmem [shape: bf16[512,64], index: 0, kind: input, shape index: {}]   ;;  %s7459_s1 = inlined_call_operand.vmem [shape: bf16[16,64], index: 1, kind: input, shape index: {}]   ;;  %s7460_s2 = inlined_call_operand.vmem [shape: bf16[64,128], index: 2, kind: input, shape index: {}]   ;;  %s7461_s3 = inlined_call_operand.vmem [shape: bf16[64,128], index: 3, kind: input, shape index: {}]   ;;  %s7462_s4 = inlined_call_operand.vmem [shape: f32[1,128], index: 4, kind: input, shape index: {}]   ;;  %s7463_s5 = inlined_call_operand.vmem [shape: bf16[3,128,128], index: 5, kind: input, shape index: {}]   ;;  %s7464_s6 = inlined_call_operand.vmem [shape: f32[3,1,128], index: 6, kind: input, shape index: {}]   ;;  %s7465_s7 = inlined_call_operand.vmem [shape: bf16[128,64], index: 7, kind: input, shape index: {}]   ;;  %s7466_s8 = inlined_call_operand.vmem [shape: f32[1,64], index: 8, kind: input, shape index: {}]   ;;  %s7467_s9 = inlined_call_operand.vmem [shape: bf16[64,256], index: 9, kind: input, shape index: {}]   ;;  %s7468_s10 = inlined_call_operand.vmem [shape: f32[1,256], index: 10, kind: input, shape index: {}]   ;;  %s7469_s11 = inlined_call_operand.hbm [shape: bf16[512,256], index: 11, kind: output, shape index: {}]  }
   0x1   :  { %18 = vsyncpa [#allocation3 + $0x1], 0  ;;  %s5384_s17 = smov 0   ;;  %s5386_s18 = smov 0  }
   0x2   :  { %s5388_s19 = smov 0   ;;  %s5390_s20 = smov 0  }
   0x3 LB: > { %7473 = sst [smem:[#allocation5_spill]] %s5311_s19  ;;  %s5405_s21 = sadd.s32 4294967295, %s5315_s20   ;;  %s5315_s20 = sphi %s5390_s20, %s7478_s20   ;;  %s5311_s19 = sphi %s5388_s19, %s7480_s19   ;;  %s5307_s18 = sphi %s5386_s18, %s7482_s18   ;;  %s5303_s17 = sphi %s5384_s17, %s7481_s17  }
   0x4   : > { %s4223_s22 = sadd.s32 4294967294, %s5315_s20   ;;  %s5409_s23 = sadd.s32 1, %s5315_s20  }
   0x5   : > { %7474 = sst [smem:[#allocation6_spill]] %s5409_s23  ;;  %s272_s24 = sadd.s32 1, %s5311_s19 }
   0x6   : > { %s269_s25 = ssub.s32 %s5315_s20, %s5409_s23  ;;  %p282_p0 = scmp.ne.s32.totalorder %s5311_s19, %s5307_s18 }
   0x7   : > { %p270_p1 = scmp.eq.s32.totalorder %s269_s25, 0  ;;  %p283_p2 = scmp.eq.s32.totalorder %s5405_s21, 1 }
   0x8   : > { %p288_p3 = scmp.ne.s32.totalorder %s5307_s18, %s5303_s17  ;;  %p289_p4 = scmp.eq.s32.totalorder %s4223_s22, 1 }
   0x9   : > { %s5420_s26 = scalar_select %p270_p1, %s5311_s19, %s272_s24  }
   0xa   : > { %p5422_p5 = por %p283_p2, %p282_p0  ;;  %p5426_p6 = por %p289_p4, %p288_p3 }
   0xb   : > { %7475 = sst [smem:[#allocation7_spill]] %s5420_s26  ;;  %p4226_p7 = scmp.ge.s32.totalorder %s5315_s20, 1 }
   0xc   : > { %p350_p8 = scmp.lt.s32.totalorder %s5315_s20, 3 }
   0xe   : > { %p351_p9 = pnand %p4226_p7, %p350_p8 }
   0xf   : > { %v4865_v0 = vld [vmem:[%s7461_s3] sm:$0xff] (!%p351_p9)   ;;  %v5317_v1 = vmov (!%p351_p9), 0.0   ;;  %v4867_v3 = vld [vmem:[%s7461_s3 + $0x8] sm:$0xff] (!%p351_p9)   ;;  %vm5318_vm0 = vmmov (!%p351_p9), 0   ;;  %p400_p10 = scmp.lt.s32.totalorder (!%p351_p9), %s5405_s21, 1  ;;  %v4870_v5 = vld [vmem:[%s7460_s2 + $0x10] sm:$0xff] (!%p351_p9)   ;;  %v495_v38 = vlaneseq (!%p351_p9) }
  0x10   : > { %354 = sbr.rel (%p351_p9) target bundleno = 1813 (0x715), region = 64  ;;  %4560 = vmatprep.subr.bf16.mxu0 (!%p351_p9), %v5317_v1  ;;  %v4866_v2 = vld [vmem:[%s7460_s2] sm:$0xff] (!%p351_p9)   ;;  %4568 = vmatprep.mubr.msk.bf16.mxu0 (!%p351_p9), %vm5318_vm0, %v5317_v1  ;;  %v4868_v4 = vld [vmem:[%s7460_s2 + $0x8] sm:$0xff] (!%p351_p9)   ;;  %s4228_s30 = sshll.u32 (!%p351_p9), %s5405_s21, 5  ;;  %v4869_v6 = vld [vmem:[%s7461_s3 + $0x10] sm:$0xff] (!%p351_p9)   ;;  %vm446_vm1 = vcmask (!%p351_p9), 523264  }
  0x11   : > { %4561 = vmatpush3.bf16.msra.mxu0 (!%p351_p9), %v4865_v0  ;;  %4572 = vmatprep.subr.bf16.mxu1 (!%p351_p9), %v4866_v2  ;;  %p395_p11 = scmp.lt.s32.totalorder (!%p351_p9), %s4228_s30, 63  ;;  %v4871_v7 = vld [vmem:[%s7461_s3 + $0x18] sm:$0xff] (!%p351_p9)   ;;  %v4889_v26 = vld [vmem:[%s7463_s5] sm:$0xff] (!%p351_p9)   ;;  %v4890_v27 = vld [vmem:[%s7463_s5 + $0x8] sm:$0xff] (!%p351_p9)   ;;  %v5319_v36 = vmov (!%p351_p9), 1966171168  }
  0x12   : > { %4562 = vmatprep.subr.bf16.mxu0 (!%p351_p9), %v5317_v1  ;;  %4573 = vmatpush3.bf16.msra.mxu1 (!%p351_p9), %v4866_v2  ;;  %v4872_v8 = vld [vmem:[%s7460_s2 + $0x18] sm:$0xff] (!%p351_p9)   ;;  %v4891_v28 = vld [vmem:[%s7463_s5 + $0x10] sm:$0xff] (!%p351_p9)   ;;  %v4893_v30 = vld [vmem:[%s7463_s5 + $0x20] sm:$0xff] (!%p351_p9)   ;;  %v493_v37 = vunpack.c.l.s4 (!%p351_p9), %v5319_v36  ;;  %v5533_v41 = vshrl.u32 (!%p351_p9), %v495_v38, 7  ;;  %s391_s23 = sand.u32 (!%p351_p9), 1, %s5307_s18  }
  0x13   : > { %4574 = vmatprep.subr.bf16.mxu1 (!%p351_p9), %v4868_v4  ;;  %v4892_v29 = vld [vmem:[%s7463_s5 + $0x18] sm:$0xff] (!%p351_p9)   ;;  %v4894_v31 = vld [vmem:[%s7463_s5 + $0x28] sm:$0xff] (!%p351_p9)   ;;  %v4895_v32 = vld [vmem:[%s7463_s5 + $0x30] sm:$0xff] (!%p351_p9)  }
  0x14   : > { %v4896_v33 = vld [vmem:[%s7463_s5 + $0x38] sm:$0xff] (!%p351_p9)   ;;  %v4897_v34 = vld [vmem:[%s7463_s5 + $0x40] sm:$0xff] (!%p351_p9)   ;;  %v4898_v35 = vld [vmem:[%s7463_s5 + $0x48] sm:$0xff] (!%p351_p9)   ;;  %v494_v40 = vunpack.c.0.s8 (!%p351_p9), %v493_v37  ;;  %v5543_v54 = vsub.s32 (!%p351_p9), 0, %v5533_v41 }
  0x15   : > { %4563 = vmatpush3.bf16.msra.mxu0 (!%p351_p9), %v4867_v3  ;;  %v4899_v39 = vld [vmem:[%s7463_s5 + $0x50] sm:$0xff] (!%p351_p9)   ;;  %v4900_v42 = vld [vmem:[%s7463_s5 + $0x58] sm:$0xff] (!%p351_p9)   ;;  %v4231_v43 = vld [vmem:[%s7462_s4] ss:$0 sm:$0xff] (!%p351_p9) }
  0x16   : > { %4564 = vmatprep.subr.bf16.mxu0 (!%p351_p9), %v5317_v1  ;;  %4575 = vmatpush3.bf16.msra.mxu1 (!%p351_p9), %v4868_v4  ;;  %v497_v44 = vsub.s32 (!%p351_p9), %v494_v40, %v5533_v41 }
  0x17   : > { %s401_s24 = scalar_select %p400_p10, %s5405_s21, 1  ;;  %4576 = vmatprep.subr.bf16.mxu1 %v4870_v5 }
  0x18   : > { %s7484_s30 = smov (!%p395_p11, %s4228_s30), 63 }
  0x19   : > { %s4230_s26 = sshll.u32 %s401_s24, 2  ;;  %4565 = vmatpush3.bf16.msra.mxu0 %v4869_v6  ;;  %s4229_s13 = sshll.u32 %s7484_s30, 2 }
  0x1a   : > { %4566 = vmatprep.subr.bf16.mxu0 %v5317_v1  ;;  %s403_s12 = scalar_lea.vmem %s7459_s1, %s4230_s26  ;;  %4577 = vmatpush3.bf16.msra.mxu1 %v4870_v5  ;;  %s5465_s14 = scalar_lea.vmem %s7458_s0, %s4229_s13 }
  0x1b   : > { %4578 = vmatprep.subr.bf16.mxu1 %v4872_v8  ;;  %v4873_v9 = vld [vmem:[%s5465_s14] sm:$0xff]   ;;  %v4874_v11 = vld [vmem:[%s5465_s14 + $0x8] sm:$0xff]   ;;  %v4875_v12 = vld [vmem:[%s5465_s14 + $0x10] sm:$0xff]   ;;  %s4227_s26 = sshll.u32 %s391_s23, 8  ;;  %s4438_s30 = sshll.u32 %s5405_s21, 12 }
  0x1c   : > { %v406_v10 = vld [vmem:[%s403_s12] sm:$0xf]  ;;  %4580 = vmatprep.mubr.msk.bf16.mxu1 %vm446_vm1, %v4873_v9  ;;  %v4876_v13 = vld [vmem:[%s5465_s14 + $0x18] sm:$0xff]   ;;  %v4878_v15 = vld [vmem:[%s5465_s14 + $0x28] sm:$0xff]   ;;  %s7312_s24 = scalar_lea.vmem [#allocation2], %s4227_s26  ;;  %s7409_s25 = scalar_lea.hbm %s7469_s11, %s4438_s30 }
  0x1d   : > { %4567 = vmatpush3.bf16.msra.mxu0 %v4871_v7  ;;  %v4877_v14 = vld [vmem:[%s5465_s14 + $0x20] sm:$0xff]   ;;  %v4879_v16 = vld [vmem:[%s5465_s14 + $0x30] sm:$0xff]   ;;  %v4880_v17 = vld [vmem:[%s5465_s14 + $0x38] sm:$0xff]   ;;  %s4149_s15 = sshll.u32 %s7312_s24, 4  ;;  %s7417_s21 = scalar_lea.sflag [#allocation3], %s391_s23  ;;  %s7411_s15 = int_to_ptr.vmem [resolvable:$true] %s4149_s15 }
  0x1e   : > { %4579 = vmatpush3.bf16.msra.mxu1 %v4872_v8  ;;  %v4881_v18 = vld [vmem:[%s5465_s14 + $0x40] sm:$0xff]   ;;  %v4882_v19 = vld [vmem:[%s5465_s14 + $0x48] sm:$0xff]   ;;  %v4883_v20 = vld [vmem:[%s5465_s14 + $0x50] sm:$0xff]   ;;  %4612 = vmatprep.subr.bf16.mxu0 %v4889_v26  ;;  %s5253_s29 = scalar_lea.vmem %s7411_s15, 4096  ;;  %s5321_s12 = smov [#allocation2]  }
  0x1f   : > { %v4884_v21 = vld [vmem:[%s5465_s14 + $0x58] sm:$0xff]   ;;  %v4885_v22 = vld [vmem:[%s5465_s14 + $0x60] sm:$0xff]   ;;  %v4886_v23 = vld [vmem:[%s5465_s14 + $0x68] sm:$0xff]   ;;  %4660 = vmatprep.subr.bf16.mxu1 %v4897_v34  ;;  %p5254_p12 = scmp.ne.s32.totalorder %s7411_s15, %s5253_s29  ;;  %s5257_s13 = sshll.u32 %s5321_s12, 4  ;;  %s5258_s13 = int_to_ptr.vmem [resolvable:$false] %s5257_s13 }
  0x20   : > { %4569 = vmatmul.mubr.msk.bf16.vlgmr.msra.gmra.mrb[0].mxu0 %vm446_vm1, %v406_v10  ;;  %v4887_v24 = vld [vmem:[%s5465_s14 + $0x70] sm:$0xff]   ;;  %v4888_v25 = vld [vmem:[%s5465_s14 + $0x78] sm:$0xff]   ;;  %s5259_s14 = scalar_lea.vmem %s5258_s13, 8192  ;;  %p5260_p1 = scmp.lt.s32.totalorder %s7411_s15, %s5258_s13 }
  0x21   : > { %4581 = vmatmul.mubr.msk.bf16.vlgmr.msra.gmra.mrb[0].mxu1 %vm446_vm1, %v4874_v11  ;;  %4613 = vmatpush3.bf16.msra.mxu0 %v4889_v26  ;;  %p5255_p13 = pnand %p5254_p12, %p5422_p5  ;;  %p5261_p2 = scmp.lt.s32.totalorder %s5259_s14, %s5253_s29 }
  0x22   : > { %4584 = vmatprep.mubr.msk.bf16.mxu1 %vm446_vm1, %v4875_v12  ;;  %4614 = vmatprep.subr.bf16.mxu0 %v4890_v27 }
  0x23   : > { %4661 = vmatpush3.bf16.msra.mxu1 %v4897_v34  ;;  %p5256_p0 = pneg %p5255_p13  ;;  %p5262_p3 = por %p5261_p2, %p5260_p1 }
  0x24   : > { %4662 = vmatprep.subr.bf16.mxu1 %v4898_v35 }
  0x25   : > { %4615 = vmatpush3.bf16.msra.mxu0 %v4890_v27  ;;  %p5263_p4 = pnand %p5262_p3, %p5256_p0 }
  0x26   : > { %4616 = vmatprep.subr.bf16.mxu0 %v4891_v28 }
  0x27   : > { %4663 = vmatpush3.bf16.msra.mxu1 %v4898_v35 }
  0x28   : > { %4664 = vmatprep.subr.bf16.mxu1 %v4899_v39 }
  0x29   : > { %4585 = vmatmul.mubr.msk.bf16.gmra.mrb[4].mxu1 %vm446_vm1, %v4876_v13  ;;  %4617 = vmatpush3.bf16.msra.mxu0 %v4891_v28 }
  0x2a   : > { %4588 = vmatprep.mubr.msk.bf16.mxu1 %vm446_vm1, %v4877_v14  ;;  %4618 = vmatprep.subr.bf16.mxu0 %v4892_v29 }
  0x2b   : > { %4665 = vmatpush3.bf16.msra.mxu1 %v4899_v39 }
  0x2c   : > { %4666 = vmatprep.subr.bf16.mxu1 %v4900_v42 }
  0x2d   : > { %4619 = vmatpush3.bf16.msra.mxu0 %v4892_v29 }
  0x2e   : > { %4620 = vmatprep.subr.bf16.mxu0 %v4893_v30 }
  0x2f   : > { %4667 = vmatpush3.bf16.msra.mxu1 %v4900_v42 }
  0x31   : > { %4589 = vmatmul.mubr.msk.bf16.gmra.mrb[8].mxu1 %vm446_vm1, %v4878_v15  ;;  %4621 = vmatpush3.bf16.msra.mxu0 %v4893_v30 }
  0x32   : > { %4592 = vmatprep.mubr.msk.bf16.mxu1 %vm446_vm1, %v4879_v16  ;;  %4622 = vmatprep.subr.bf16.mxu0 %v4894_v31 }
  0x35   : > { %4623 = vmatpush3.bf16.msra.mxu0 %v4894_v31 }
  0x36   : > { %4624 = vmatprep.subr.bf16.mxu0 %v4895_v32 }
  0x39   : > { %4593 = vmatmul.mubr.msk.bf16.gmra.mrb[12].mxu1 %vm446_vm1, %v4880_v17  ;;  %4625 = vmatpush3.bf16.msra.mxu0 %v4895_v32 }
  0x3a   : > { %4596 = vmatprep.mubr.msk.bf16.mxu1 %vm446_vm1, %v4881_v18  ;;  %4626 = vmatprep.subr.bf16.mxu0 %v4896_v33 }
  0x3d   : > { %4627 = vmatpush3.bf16.msra.mxu0 %v4896_v33 }
  0x41   : > { %4597 = vmatmul.mubr.msk.bf16.gmra.mrb[16].mxu1 %vm446_vm1, %v4882_v19 }
  0x42   : > { %4600 = vmatprep.mubr.msk.bf16.mxu1 %vm446_vm1, %v4883_v20 }
  0x49   : > { %4601 = vmatmul.mubr.msk.bf16.gmra.mrb[20].mxu1 %vm446_vm1, %v4884_v21 }
  0x4a   : > { %4604 = vmatprep.mubr.msk.bf16.mxu1 %vm446_vm1, %v4885_v22 }
  0x51   : > { %4605 = vmatmul.mubr.msk.bf16.gmra.mrb[24].mxu1 %vm446_vm1, %v4886_v23 }
  0x52   : > { %4608 = vmatprep.mubr.msk.bf16.mxu1 %vm446_vm1, %v4887_v24 }
  0x59   : > { %4609 = vmatmul.mubr.msk.bf16.gmra.mrb[28].mxu1 %vm446_vm1, %v4888_v25 }
  0xf3   : > { %v484_v45 = vpop.f32.mrb[0].mxu0 }
  0xf4   : > { %v485_v46 = vadd.f32 %v4231_v43, %v484_v45  ;;  %v4570_v47 = vpop.f32.mrb[1].mxu0  ;;  %v4582_v49 = vpop.f32.mrb[0].mxu1 }
  0xf5   : > { %v487_v48 = vpop.f32.mrb[2].mxu0  ;;  %v806_v53 = vpop.f32.mrb[1].mxu1 }
  0xf6   : > { %v491_v50 = vcombine.high %v485_v46, %v485_v46  ;;  %v498_v51 = vrot.slane %v485_v46, %v497_v44  ;;  %v4571_v52 = vpop.f32.mrb[3].mxu0  ;;  %v4583_v55 = vpop.f32.mrb[2].mxu1 }
  0xf7   : > { %v809_v59 = vpop.f32.mrb[3].mxu1 }
  0xf8   : > { %v505_v56 = vrot.slane %v491_v50, %v497_v44  ;;  %v506_v57 = vcombine.high %v498_v51, %v498_v51  ;;  %v514_v58 = vrot.slane %v498_v51, %v497_v44 }
  0xfa   : > { %v507_v60 = vcombine.high %v505_v56, %v505_v56  ;;  %v521_v61 = vrot.slane %v505_v56, %v497_v44  ;;  %v528_v62 = vrot.slane %v506_v57, %v497_v44  ;;  %v536_v63 = vcombine.high %v514_v58, %v514_v58 }
  0xfb   : > { %v543_v0 = vrot.slane %v514_v58, %v5543_v54 }
  0xfc   : > { %v5546_v1 = vrot.slane %v507_v60, %v497_v44  ;;  %v537_v2 = vcombine.high %v521_v61, %v521_v61  ;;  %v538_v3 = vcombine.high %v528_v62, %v528_v62  ;;  %v547_v4 = vrot.slane %v528_v62, %v5543_v54  ;;  %v4586_v9 = vpop.f32.mrb[4].mxu1 }
  0xfd   : > { %v5549_v5 = vadd.f32 %v4582_v49, %v543_v0  ;;  %v5551_v6 = vadd.f32 %v806_v53, %v543_v0  ;;  %v5553_v7 = vadd.f32 %v4583_v55, %v543_v0  ;;  %v5555_v8 = vadd.f32 %v809_v59, %v543_v0  ;;  %v822_v11 = vpop.f32.mrb[5].mxu1 }
  0xfe   : > { %v5557_v10 = vadd.f32 %v4586_v9, %v547_v4  ;;  %v5560_v12 = vrot.slane %v536_v63, %v5543_v54  ;;  %v5563_v13 = vrot.slane %v538_v3, %v5543_v54  ;;  %v5566_v14 = vrot.slane %v521_v61, %v5543_v54  ;;  %v4587_v19 = vpop.f32.mrb[6].mxu1 }
  0xff   : > { %v935_v15 = vmul.f32 %v5549_v5, %v5549_v5  ;;  %v933_v16 = vmul.f32 %v5551_v6, %v5551_v6  ;;  %v936_v17 = vmul.f32 %v5553_v7, %v5553_v7  ;;  %v934_v18 = vmul.f32 %v5555_v8, %v5555_v8  ;;  %v825_v23 = vpop.f32.mrb[7].mxu1 }
 0x100   : > { %v939_v20 = vmul.f32 %v5557_v10, %v5557_v10  ;;  %v5578_v21 = vadd.f32 %v822_v11, %v547_v4  ;;  %v5580_v22 = vadd.f32 %v4587_v19, %v547_v4  ;;  %v5584_v24 = vrot.slane %v5546_v1, %v5543_v54 }
 0x101   : > { %v967_v25 = vmul.f32 %v935_v15, %v5549_v5  ;;  %v965_v26 = vmul.f32 %v933_v16, %v5551_v6  ;;  %v968_v27 = vmul.f32 %v936_v17, %v5553_v7  ;;  %v966_v28 = vmul.f32 %v934_v18, %v5555_v8 }
 0x102   : > { %v971_v29 = vmul.f32 %v939_v20, %v5557_v10  ;;  %v937_v30 = vmul.f32 %v5578_v21, %v5578_v21  ;;  %v940_v31 = vmul.f32 %v5580_v22, %v5580_v22  ;;  %v5595_v32 = vadd.f32 %v825_v23, %v547_v4 }
 0x103   : > { %v999_v33 = vmul.f32 0.044715, %v967_v25  ;;  %v997_v34 = vmul.f32 0.044715, %v965_v26  ;;  %v1000_v35 = vmul.f32 0.044715, %v968_v27  ;;  %v5598_v36 = vrot.slane %v537_v2, %v5543_v54 }
 0x104   : > { %v998_v37 = vmul.f32 0.044715, %v966_v28  ;;  %v1003_v38 = vmul.f32 0.044715, %v971_v29  ;;  %v969_v39 = vmul.f32 %v937_v30, %v5578_v21  ;;  %v972_v40 = vmul.f32 %v940_v31, %v5580_v22  ;;  %v4590_v46 = vpop.f32.mrb[8].mxu1 }
 0x105   : > { %v1031_v42 = vadd.f32 %v999_v33, %v5549_v5  ;;  %v1029_v43 = vadd.f32 %v997_v34, %v5551_v6  ;;  %v1032_v44 = vadd.f32 %v1000_v35, %v5553_v7  ;;  %v938_v45 = vmul.f32 %v5595_v32, %v5595_v32  ;;  %v838_v51 = vpop.f32.mrb[9].mxu1 }
 0x106   : > { %v1030_v47 = vadd.f32 %v998_v37, %v5555_v8  ;;  %v1035_v48 = vadd.f32 %v1003_v38, %v5557_v10  ;;  %v1001_v49 = vmul.f32 0.044715, %v969_v39  ;;  %v1004_v50 = vmul.f32 0.044715, %v972_v40  ;;  %v4591_v61 = vpop.f32.mrb[10].mxu1 }
 0x107   : > { %v1063_v52 = vmul.f32 0.7978846, %v1031_v42  ;;  %v1061_v53 = vmul.f32 0.7978846, %v1029_v43  ;;  %v1064_v55 = vmul.f32 0.7978846, %v1032_v44  ;;  %v970_v56 = vmul.f32 %v938_v45, %v5595_v32 }
 0x108   : > { %v1062_v57 = vmul.f32 0.7978846, %v1030_v47  ;;  %v1067_v58 = vmul.f32 0.7978846, %v1035_v48  ;;  %v1033_v59 = vadd.f32 %v1001_v49, %v5578_v21  ;;  %v1036_v60 = vadd.f32 %v1004_v50, %v5580_v22  ;;  %v841_v2 = vpop.f32.mrb[11].mxu1 }
 0x109   : > { %4933 = vtanh.f32 %v1063_v52  ;;  %v1002_v62 = vmul.f32 0.044715, %v970_v56  ;;  %v5613_v63 = vadd.f32 %v4590_v46, %v5560_v12  ;;  %v5616_v0 = vadd.f32 %v838_v51, %v5560_v12 }
 0x10a   : > { %4935 = vtanh.f32 %v1061_v53  ;;  %v1065_v3 = vmul.f32 0.7978846, %v1033_v59  ;;  %v1068_v4 = vmul.f32 0.7978846, %v1036_v60  ;;  %v5619_v9 = vadd.f32 %v4591_v61, %v5560_v12 }
 0x10b   : > { %4937 = vtanh.f32 %v1064_v55  ;;  %v1034_v11 = vadd.f32 %v1002_v62, %v5595_v32  ;;  %v943_v15 = vmul.f32 %v5613_v63, %v5613_v63  ;;  %v941_v16 = vmul.f32 %v5616_v0, %v5616_v0 }
 0x10c   : > { %4939 = vtanh.f32 %v1062_v57  ;;  %v944_v17 = vmul.f32 %v5619_v9, %v5619_v9  ;;  %v5629_v18 = vadd.f32 %v841_v2, %v5560_v12  ;;  %v539_v19 = vcombine.high %v5546_v1, %v5546_v1  ;;  %v4594_v26 = vpop.f32.mrb[12].mxu1 }
 0x10d   : > { %4941 = vtanh.f32 %v1067_v58  ;;  %v1066_v20 = vmul.f32 0.7978846, %v1034_v11  ;;  %v975_v23 = vmul.f32 %v943_v15, %v5613_v63  ;;  %v973_v25 = vmul.f32 %v941_v16, %v5616_v0  ;;  %v854_v12 = vpop.f32.mrb[13].mxu1 }
 0x10e   : > { %4943 = vtanh.f32 %v1065_v3  ;;  %v976_v27 = vmul.f32 %v944_v17, %v5619_v9  ;;  %v942_v28 = vmul.f32 %v5629_v18, %v5629_v18  ;;  %v5639_v29 = vadd.f32 %v4594_v26, %v5563_v13  ;;  %v4595_v34 = vpop.f32.mrb[14].mxu1 }
 0x10f   : > { %4945 = vtanh.f32 %v1068_v4  ;;  %v1007_v30 = vmul.f32 0.044715, %v975_v23  ;;  %v1005_v31 = vmul.f32 0.044715, %v973_v25  ;;  %v5642_v33 = vadd.f32 %v854_v12, %v5563_v13  ;;  %v857_v39 = vpop.f32.mrb[15].mxu1 }
 0x110   : > { %4947 = vtanh.f32 %v1066_v20  ;;  %v1008_v35 = vmul.f32 0.044715, %v976_v27  ;;  %v974_v37 = vmul.f32 %v942_v28, %v5629_v18  ;;  %v947_v38 = vmul.f32 %v5639_v29, %v5639_v29 }
 0x111   : > { %v1039_v40 = vadd.f32 %v1007_v30, %v5613_v63  ;;  %v1037_v42 = vadd.f32 %v1005_v31, %v5616_v0  ;;  %v945_v43 = vmul.f32 %v5642_v33, %v5642_v33  ;;  %v5652_v44 = vadd.f32 %v4595_v34, %v5563_v13 }
 0x112   : > { %v1040_v45 = vadd.f32 %v1008_v35, %v5619_v9  ;;  %v1006_v46 = vmul.f32 0.044715, %v974_v37  ;;  %v979_v47 = vmul.f32 %v947_v38, %v5639_v29  ;;  %v5657_v48 = vadd.f32 %v857_v39, %v5563_v13 }
 0x113   : > { %v4934_v49 = vpop.eup %4933  ;;  %v1071_v50 = vmul.f32 0.7978846, %v1039_v40  ;;  %v1069_v51 = vmul.f32 0.7978846, %v1037_v42  ;;  %v977_v52 = vmul.f32 %v945_v43, %v5642_v33  ;;  %v948_v53 = vmul.f32 %v5652_v44, %v5652_v44 }
 0x114   : > { %v4936_v55 = vpop.eup %4935  ;;  %v1127_v56 = vadd.f32 1.0, %v4934_v49  ;;  %v1072_v57 = vmul.f32 0.7978846, %v1040_v45  ;;  %v1038_v58 = vadd.f32 %v1006_v46, %v5629_v18  ;;  %v1011_v59 = vmul.f32 0.044715, %v979_v47  ;;  %v4598_v2 = vpop.f32.mrb[16].mxu1 }
 0x115   : > { %v4938_v60 = vpop.eup %4937  ;;  %4949 = vtanh.f32 %v1071_v50  ;;  %v1009_v61 = vmul.f32 0.044715, %v977_v52  ;;  %v980_v13 = vmul.f32 %v948_v53, %v5652_v44  ;;  %v946_v62 = vmul.f32 %v5657_v48, %v5657_v48  ;;  %v870_v16 = vpop.f32.mrb[17].mxu1 }
 0x116   : > { %v4940_v3 = vpop.eup %4939  ;;  %v1159_v4 = vmul.f32 0.5, %v1127_v56  ;;  %v1128_v11 = vadd.f32 1.0, %v4938_v60  ;;  %4951 = vtanh.f32 %v1069_v51  ;;  %v1070_v15 = vmul.f32 0.7978846, %v1038_v58  ;;  %v4599_v26 = vpop.f32.mrb[18].mxu1 }
 0x117   : > { %v5666_v17 = vpop.eup %4941  ;;  %4953 = vtanh.f32 %v1072_v57  ;;  %v1043_v20 = vadd.f32 %v1011_v59, %v5639_v29  ;;  %v1041_v23 = vadd.f32 %v1009_v61, %v5642_v33  ;;  %v1012_v25 = vmul.f32 0.044715, %v980_v13  ;;  %v873_v31 = vpop.f32.mrb[19].mxu1 }
 0x118   : > { %v5670_v27 = vpop.eup %4943  ;;  %v5673_v28 = vmul.f32 %v1159_v4, %v5549_v5  ;;  %v1160_v12 = vmul.f32 0.5, %v1128_v11  ;;  %4955 = vtanh.f32 %v1070_v15  ;;  %v978_v30 = vmul.f32 %v946_v62, %v5657_v48 }
 0x119   : > { %v5676_v34 = vpop.eup %4945  ;;  %v1075_v35 = vmul.f32 0.7978846, %v1043_v20  ;;  %v1073_v37 = vmul.f32 0.7978846, %v1041_v23  ;;  %v1044_v38 = vadd.f32 %v1012_v25, %v5652_v44  ;;  %v5680_v39 = vadd.f32 %v4598_v2, %v5566_v14 }
 0x11a   : > { %v5682_v40 = vpop.eup %4947  ;;  %v5685_v42 = vmul.f32 %v1160_v12, %v5553_v7  ;;  %v1010_v5 = vmul.f32 0.044715, %v978_v30  ;;  %v5688_v43 = vadd.f32 %v870_v16, %v5566_v14  ;;  %v5691_v45 = vadd.f32 %v4599_v26, %v5566_v14 }
 0x11b   : > { %4957 = vtanh.f32 %v1075_v35  ;;  %v1076_v46 = vmul.f32 0.7978846, %v1044_v38  ;;  %v951_v47 = vmul.f32 %v5680_v39, %v5680_v39  ;;  %v5696_v49 = vadd.f32 %v873_v31, %v5566_v14 }
 0x11c   : > { %4959 = vtanh.f32 %v1073_v37  ;;  %v1042_v50 = vadd.f32 %v1010_v5, %v5657_v48  ;;  %v949_v7 = vmul.f32 %v5688_v43, %v5688_v43  ;;  %v952_v51 = vmul.f32 %v5691_v45, %v5691_v45  ;;  %v4602_v57 = vpop.f32.mrb[20].mxu1 }
 0x11d   : > { %4961 = vtanh.f32 %v1076_v46  ;;  %v983_v52 = vmul.f32 %v951_v47, %v5680_v39  ;;  %v950_v53 = vmul.f32 %v5696_v49, %v5696_v49  ;;  %v1125_v56 = vadd.f32 1.0, %v4936_v55  ;;  %v886_v61 = vpop.f32.mrb[21].mxu1 }
 0x11e   : > { %v1074_v58 = vmul.f32 0.7978846, %v1042_v50  ;;  %v981_v14 = vmul.f32 %v949_v7, %v5688_v43  ;;  %v984_v59 = vmul.f32 %v952_v51, %v5691_v45  ;;  %v1126_v60 = vadd.f32 1.0, %v4940_v3  ;;  %v4603_v15 = vpop.f32.mrb[22].mxu1 }
 0x11f   : > { %v5708_v13 = vpop.eup %4949  ;;  %v1015_v62 = vmul.f32 0.044715, %v983_v52  ;;  %v982_v2 = vmul.f32 %v950_v53, %v5696_v49  ;;  %v1157_v4 = vmul.f32 0.5, %v1125_v56  ;;  %v5712_v11 = vadd.f32 %v4602_v57, %v5584_v24  ;;  %v889_v25 = vpop.f32.mrb[23].mxu1 }
 0x120   : > { %v5714_v16 = vpop.eup %4951  ;;  %4963 = vtanh.f32 %v1074_v58  ;;  %v1013_v55 = vmul.f32 0.044715, %v981_v14  ;;  %v1016_v20 = vmul.f32 0.044715, %v984_v59  ;;  %v1158_v23 = vmul.f32 0.5, %v1126_v60 }
 0x121   : > { %v5716_v26 = vpop.eup %4953  ;;  %v1047_v3 = vadd.f32 %v1015_v62, %v5680_v39  ;;  %v1014_v12 = vmul.f32 0.044715, %v982_v2  ;;  %v1189_v30 = vmul.f32 %v1157_v4, %v5551_v6  ;;  %v955_v31 = vmul.f32 %v5712_v11, %v5712_v11 }
 0x122   : > { %v5722_v35 = vpop.eup %4955  ;;  %v1045_v37 = vadd.f32 %v1013_v55, %v5688_v43  ;;  %v1048_v38 = vadd.f32 %v1016_v20, %v5691_v45  ;;  %v1190_v5 = vmul.f32 %v1158_v23, %v5555_v8  ;;  %v1222_v46 = vpack.c.bf16 %v5685_v42, %v5673_v28 }
 0x123   : > { %v1079_v47 = vmul.f32 0.7978846, %v1047_v3  ;;  %v1046_v50 = vadd.f32 %v1014_v12, %v5696_v49  ;;  %v987_v7 = vmul.f32 %v955_v31, %v5712_v11  ;;  %v5732_v6 = vadd.f32 %v886_v61, %v5584_v24 }
 0x124   : > { %v1077_v51 = vmul.f32 0.7978846, %v1045_v37  ;;  %v1080_v52 = vmul.f32 0.7978846, %v1048_v38  ;;  %v1221_v53 = vpack.c.bf16 %v1190_v5, %v1189_v30  ;;  %v5735_v56 = vadd.f32 %v4603_v15, %v5584_v24  ;;  %v4606_v42 = vpop.f32.mrb[24].mxu1 }
 0x125   : > { %v5737_v57 = vpop.eup %4957  ;;  %4965 = vtanh.f32 %v1079_v47  ;;  %v1078_v8 = vmul.f32 0.7978846, %v1046_v50  ;;  %v1019_v58 = vmul.f32 0.044715, %v987_v7  ;;  %v953_v28 = vmul.f32 %v5732_v6, %v5732_v6  ;;  %v902_v62 = vpop.f32.mrb[25].mxu1 }
 0x126   : > { %v5741_v14 = vpop.eup %4959  ;;  %4967 = vtanh.f32 %v1077_v51  ;;  %4628 = vmatprep.mubr.bf16.mxu0 %v1221_v53  ;;  %v956_v59 = vmul.f32 %v5735_v56, %v5735_v56  ;;  %v5746_v60 = vadd.f32 %v889_v25, %v5584_v24  ;;  %v1129_v61 = vadd.f32 1.0, %v5670_v27  ;;  %v4607_v20 = vpop.f32.mrb[26].mxu1 }
 0x127   : > { %v5749_v2 = vpop.eup %4961  ;;  %4969 = vtanh.f32 %v1080_v52  ;;  %v1051_v4 = vadd.f32 %v1019_v58, %v5712_v11  ;;  %4629 = vmatmul.mubr.bf16.vlgmr.msra.gmra.mrb[4].mxu0 %v1222_v46  ;;  %v985_v15 = vmul.f32 %v953_v28, %v5732_v6  ;;  %v1130_v55 = vadd.f32 1.0, %v5682_v40  ;;  %v905_v27 = vpop.f32.mrb[27].mxu1 }
 0x128   : > { %4971 = vtanh.f32 %v1078_v8  ;;  %v988_v23 = vmul.f32 %v956_v59, %v5735_v56  ;;  %v954_v24 = vmul.f32 %v5746_v60, %v5746_v60  ;;  %v1161_v25 = vmul.f32 0.5, %v1129_v61 }
 0x129   : > { %v1083_v3 = vmul.f32 0.7978846, %v1051_v4  ;;  %v1017_v12 = vmul.f32 0.044715, %v985_v15  ;;  %v1162_v30 = vmul.f32 0.5, %v1130_v55  ;;  %v5758_v31 = vadd.f32 %v4606_v42, %v5598_v36 }
 0x12a   : > { %v5760_v37 = vpop.eup %4963  ;;  %v1020_v38 = vmul.f32 0.044715, %v988_v23  ;;  %v986_v40 = vmul.f32 %v954_v24, %v5746_v60  ;;  %v1193_v5 = vmul.f32 %v1161_v25, %v5578_v21  ;;  %v1131_v46 = vadd.f32 1.0, %v5666_v17 }
 0x12b   : > { %4973 = vtanh.f32 %v1083_v3  ;;  %v1049_v47 = vadd.f32 %v1017_v12, %v5732_v6  ;;  %v1194_v50 = vmul.f32 %v1162_v30, %v5595_v32  ;;  %v959_v7 = vmul.f32 %v5758_v31, %v5758_v31 }
 0x12c   : > { %v1052_v51 = vadd.f32 %v1020_v38, %v5735_v56  ;;  %v1018_v52 = vmul.f32 0.044715, %v986_v40  ;;  %v1132_v53 = vadd.f32 1.0, %v5676_v34  ;;  %v1163_v8 = vmul.f32 0.5, %v1131_v46  ;;  %v4610_v42 = vpop.f32.mrb[28].mxu1 }
 0x12d   : > { %v1081_v58 = vmul.f32 0.7978846, %v1049_v47  ;;  %v1223_v28 = vpack.c.bf16 %v1194_v50, %v1193_v5  ;;  %v991_v21 = vmul.f32 %v959_v7, %v5758_v31  ;;  %v5773_v17 = vadd.f32 %v902_v62, %v5598_v36  ;;  %v918_v15 = vpop.f32.mrb[29].mxu1 }
 0x12e   : > { %v1084_v59 = vmul.f32 0.7978846, %v1052_v51  ;;  %v1050_v32 = vadd.f32 %v1018_v52, %v5746_v60  ;;  %v1164_v61 = vmul.f32 0.5, %v1132_v53  ;;  %v1195_v4 = vmul.f32 %v1163_v8, %v5557_v10  ;;  %v4611_v62 = vpop.f32.mrb[30].mxu1 }
 0x12f   : > { %v5777_v55 = vpop.eup %4965  ;;  %4975 = vtanh.f32 %v1081_v58  ;;  %4632 = vmatprep.mubr.bf16.mxu0 %v1223_v28  ;;  %v1023_v34 = vmul.f32 0.044715, %v991_v21  ;;  %v957_v23 = vmul.f32 %v5773_v17, %v5773_v17  ;;  %v5782_v24 = vadd.f32 %v4607_v20, %v5598_v36  ;;  %v921_v30 = vpop.f32.mrb[31].mxu1 }
 0x130   : > { %v5784_v25 = vpop.eup %4967  ;;  %4977 = vtanh.f32 %v1084_v59  ;;  %v1082_v3 = vmul.f32 0.7978846, %v1050_v32  ;;  %v1196_v12 = vmul.f32 %v1164_v61, %v5580_v22  ;;  %v5788_v10 = vadd.f32 %v905_v27, %v5598_v36 }
 0x131   : > { %v5790_v38 = vpop.eup %4969  ;;  %v1055_v40 = vadd.f32 %v1023_v34, %v5758_v31  ;;  %v989_v5 = vmul.f32 %v957_v23, %v5773_v17  ;;  %v960_v20 = vmul.f32 %v5782_v24, %v5782_v24  ;;  %v1133_v46 = vadd.f32 1.0, %v5714_v16 }
 0x132   : > { %v5797_v47 = vpop.eup %4971  ;;  %4979 = vtanh.f32 %v1082_v3  ;;  %v1224_v50 = vpack.c.bf16 %v1196_v12, %v1195_v4  ;;  %v958_v22 = vmul.f32 %v5788_v10, %v5788_v10  ;;  %v1134_v36 = vadd.f32 1.0, %v5722_v35 }
 0x133   : > { %v1087_v27 = vmul.f32 0.7978846, %v1055_v40  ;;  %v1021_v7 = vmul.f32 0.044715, %v989_v5  ;;  %v992_v51 = vmul.f32 %v960_v20, %v5782_v24  ;;  %v1165_v52 = vmul.f32 0.5, %v1133_v46 }
 0x134   : > { %4633 = vmatmul.mubr.bf16.gmra.mrb[8].mxu0 %v1224_v50  ;;  %v990_v53 = vmul.f32 %v958_v22, %v5788_v10  ;;  %v1166_v8 = vmul.f32 0.5, %v1134_v36  ;;  %v571_v16 = vrot.slane %v539_v19, %v5543_v54  ;;  %v1135_v58 = vadd.f32 1.0, %v5708_v13 }
 0x135   : > { %v5809_v28 = vpop.eup %4973  ;;  %4981 = vtanh.f32 %v1087_v27  ;;  %v1053_v35 = vadd.f32 %v1021_v7, %v5773_v17  ;;  %v1024_v21 = vmul.f32 0.044715, %v992_v51  ;;  %v1197_v59 = vmul.f32 %v1165_v52, %v5616_v0 }
 0x136   : > { %v1022_v32 = vmul.f32 0.044715, %v990_v53  ;;  %v1198_v61 = vmul.f32 %v1166_v8, %v5629_v18  ;;  %v5814_v4 = vadd.f32 %v4610_v42, %v571_v16  ;;  %v1136_v34 = vadd.f32 1.0, %v5716_v26 }
 0x137   : > { %v1085_v23 = vmul.f32 0.7978846, %v1053_v35  ;;  %v1056_v1 = vadd.f32 %v1024_v21, %v5782_v24  ;;  %v1167_v19 = vmul.f32 0.5, %v1135_v58  ;;  %v5818_v13 = vadd.f32 %v918_v15, %v571_v16 }
 0x138   : > { %v1054_v3 = vadd.f32 %v1022_v32, %v5788_v10  ;;  %v1225_v12 = vpack.c.bf16 %v1198_v61, %v1197_v59  ;;  %v963_v40 = vmul.f32 %v5814_v4, %v5814_v4  ;;  %v1168_v0 = vmul.f32 0.5, %v1136_v34 }
 0x139   : > { %v4976_v5 = vpop.eup %4975  ;;  %4983 = vtanh.f32 %v1085_v23  ;;  %v1088_v18 = vmul.f32 0.7978846, %v1056_v1  ;;  %v1199_v42 = vmul.f32 %v1167_v19, %v5613_v63  ;;  %v961_v26 = vmul.f32 %v5818_v13, %v5818_v13 }
 0x13a   : > { %v5826_v20 = vpop.eup %4977  ;;  %v1086_v46 = vmul.f32 0.7978846, %v1054_v3  ;;  %4636 = vmatprep.mubr.bf16.mxu0 %v1225_v12  ;;  %v995_v15 = vmul.f32 %v963_v40, %v5814_v4  ;;  %v1200_v50 = vmul.f32 %v1168_v0, %v5619_v9  ;;  %v5830_v22 = vadd.f32 %v4611_v62, %v571_v16 }
 0x13b   : > { %4985 = vtanh.f32 %v1088_v18  ;;  %v993_v36 = vmul.f32 %v961_v26, %v5818_v13  ;;  %v5833_v27 = vadd.f32 %v921_v30, %v571_v16  ;;  %v1137_v63 = vadd.f32 1.0, %v5741_v14 }
 0x13c   : > { %v4980_v7 = vpop.eup %4979  ;;  %4987 = vtanh.f32 %v1086_v46  ;;  %v1027_v51 = vmul.f32 0.044715, %v995_v15  ;;  %v1226_v52 = vpack.c.bf16 %v1200_v50, %v1199_v42  ;;  %v964_v53 = vmul.f32 %v5830_v22, %v5830_v22 }
 0x13d   : > { %v1025_v8 = vmul.f32 0.044715, %v993_v36  ;;  %v962_v9 = vmul.f32 %v5833_v27, %v5833_v27  ;;  %v1138_v62 = vadd.f32 1.0, %v5760_v37  ;;  %v1169_v58 = vmul.f32 0.5, %v1137_v63 }
 0x13e   : > { %v1059_v35 = vadd.f32 %v1027_v51, %v5814_v4  ;;  %4637 = vmatmul.mubr.bf16.gmra.mrb[12].mxu0 %v1226_v52  ;;  %v996_v30 = vmul.f32 %v964_v53, %v5830_v22  ;;  %v1139_v14 = vadd.f32 1.0, %v5737_v57  ;;  %v1140_v16 = vadd.f32 1.0, %v5749_v2 }
 0x13f   : > { %v4982_v21 = vpop.eup %4981  ;;  %v1057_v59 = vadd.f32 %v1025_v8, %v5818_v13  ;;  %v994_v32 = vmul.f32 %v962_v9, %v5833_v27  ;;  %v1170_v61 = vmul.f32 0.5, %v1138_v62  ;;  %v1201_v34 = vmul.f32 %v1169_v58, %v5642_v33 }
 0x140   : > { %v1091_v23 = vmul.f32 0.7978846, %v1059_v35  ;;  %v1028_v37 = vmul.f32 0.044715, %v996_v30  ;;  %v1171_v1 = vmul.f32 0.5, %v1139_v14  ;;  %v1172_v19 = vmul.f32 0.5, %v1140_v16 }
 0x141   : > { %v1089_v3 = vmul.f32 0.7978846, %v1057_v59  ;;  %v1026_v12 = vmul.f32 0.044715, %v994_v32  ;;  %v1202_v40 = vmul.f32 %v1170_v61, %v5657_v48  ;;  %v1141_v57 = vadd.f32 1.0, %v5784_v25 }
 0x142   : > { %4989 = vtanh.f32 %v1091_v23  ;;  %v1060_v2 = vadd.f32 %v1028_v37, %v5830_v22  ;;  %v1203_v0 = vmul.f32 %v1171_v1, %v5639_v29  ;;  %v1204_v18 = vmul.f32 %v1172_v19, %v5652_v44 }
 0x143   : > { %v4984_v42 = vpop.eup %4983  ;;  %4991 = vtanh.f32 %v1089_v3  ;;  %v1058_v33 = vadd.f32 %v1026_v12, %v5833_v27  ;;  %v1227_v26 = vpack.c.bf16 %v1202_v40, %v1201_v34  ;;  %v1142_v46 = vadd.f32 1.0, %v5797_v47 }
 0x144   : > { %v1092_v15 = vmul.f32 0.7978846, %v1060_v2  ;;  %v1228_v50 = vpack.c.bf16 %v1204_v18, %v1203_v0  ;;  %v1173_v36 = vmul.f32 0.5, %v1141_v57  ;;  %v1143_v48 = vadd.f32 1.0, %v5777_v55 }
 0x145   : > { %v4986_v25 = vpop.eup %4985  ;;  %v1090_v63 = vmul.f32 0.7978846, %v1058_v33  ;;  %4640 = vmatprep.mubr.bf16.mxu0 %v1227_v26  ;;  %v1174_v51 = vmul.f32 0.5, %v1142_v46  ;;  %v1144_v29 = vadd.f32 1.0, %v5790_v38  ;;  %v1145_v52 = vadd.f32 1.0, %v4976_v5 }
 0x146   : > { %v4988_v44 = vpop.eup %4987  ;;  %4993 = vtanh.f32 %v1092_v15  ;;  %4641 = vmatmul.mubr.bf16.gmra.mrb[16].mxu0 %v1228_v50  ;;  %v1205_v53 = vmul.f32 %v1173_v36, %v5688_v43  ;;  %v1175_v8 = vmul.f32 0.5, %v1143_v48  ;;  %v1146_v9 = vadd.f32 1.0, %v4980_v7 }
 0x147   : > { %4995 = vtanh.f32 %v1090_v63  ;;  %v1206_v47 = vmul.f32 %v1174_v51, %v5696_v49  ;;  %v1176_v62 = vmul.f32 0.5, %v1144_v29  ;;  %v1177_v58 = vmul.f32 0.5, %v1145_v52  ;;  %v4901_v63 = vld [vmem:[%s7463_s5 + $0x60] sm:$0xff]   ;;  %v5895_v51 = vld [vmem:[%s7463_s5 + $0x88] sm:$0xff]   ;;  %v5904_v29 = vld [vmem:[%s7463_s5 + $0x90] sm:$0xff]  }
 0x148   : > { %v1207_v55 = vmul.f32 %v1175_v8, %v5680_v39  ;;  %v1178_v35 = vmul.f32 0.5, %v1146_v9  ;;  %v1147_v30 = vadd.f32 1.0, %v5809_v28  ;;  %v1148_v38 = vadd.f32 1.0, %v5826_v20  ;;  %4668 = vmatprep.subr.bf16.mxu1 %v4901_v63  ;;  %v5911_v52 = vld [vmem:[%s7463_s5 + $0x98] sm:$0xff]  }
 0x149   : > { %v1229_v5 = vpack.c.bf16 %v1206_v47, %v1205_v53  ;;  %v1208_v14 = vmul.f32 %v1176_v62, %v5691_v45  ;;  %v1209_v16 = vmul.f32 %v1177_v58, %v5732_v6  ;;  %v1149_v43 = vadd.f32 1.0, %v4984_v42  ;;  %4669 = vmatpush3.bf16.msra.mxu1 %v4901_v63 }
 0x14a   : > { %v1210_v7 = vmul.f32 %v1178_v35, %v5746_v60  ;;  %v1179_v59 = vmul.f32 0.5, %v1147_v30  ;;  %v1180_v32 = vmul.f32 0.5, %v1148_v38  ;;  %v1150_v49 = vadd.f32 1.0, %v4988_v44  ;;  %v5916_v44 = vld [vmem:[%s7464_s6] ss:$0 sm:$0xff] }
 0x14b   : > { %4644 = vmatprep.mubr.bf16.mxu0 %v1229_v5  ;;  %v1230_v61 = vpack.c.bf16 %v1208_v14, %v1207_v55  ;;  %v1181_v34 = vmul.f32 0.5, %v1149_v43  ;;  %v1151_v39 = vadd.f32 1.0, %v4982_v21  ;;  %v1152_v23 = vadd.f32 1.0, %v4986_v25 }
 0x14c   : > { %v4990_v37 = vpop.eup %4989  ;;  %v1231_v28 = vpack.c.bf16 %v1210_v7, %v1209_v16  ;;  %v1211_v20 = vmul.f32 %v1179_v59, %v5712_v11  ;;  %v1212_v1 = vmul.f32 %v1180_v32, %v5735_v56  ;;  %v1182_v45 = vmul.f32 0.5, %v1150_v49 }
 0x14d   : > { %v4992_v19 = vpop.eup %4991  ;;  %v1183_v6 = vmul.f32 0.5, %v1151_v39  ;;  %v1184_v3 = vmul.f32 0.5, %v1152_v23  ;;  %v1155_v12 = vadd.f32 1.0, %v4990_v37  ;;  %v1213_v40 = vmul.f32 %v1181_v34, %v5773_v17 }
 0x14e   : > { %4645 = vmatmul.mubr.bf16.gmra.mrb[20].mxu0 %v1230_v61  ;;  %v1232_v60 = vpack.c.bf16 %v1212_v1, %v1211_v20  ;;  %v1214_v57 = vmul.f32 %v1182_v45, %v5788_v10  ;;  %v1153_v2 = vadd.f32 1.0, %v4992_v19 }
 0x14f   : > { %4648 = vmatprep.mubr.bf16.mxu0 %v1231_v28  ;;  %v1215_v21 = vmul.f32 %v1183_v6, %v5758_v31  ;;  %v1216_v0 = vmul.f32 %v1184_v3, %v5782_v24  ;;  %v1187_v26 = vmul.f32 0.5, %v1155_v12 }
 0x150   : > { %v4994_v11 = vpop.eup %4993  ;;  %v1233_v18 = vpack.c.bf16 %v1214_v57, %v1213_v40  ;;  %v1185_v15 = vmul.f32 0.5, %v1153_v2 }
 0x151   : > { %v4996_v56 = vpop.eup %4995  ;;  %v1234_v42 = vpack.c.bf16 %v1216_v0, %v1215_v21  ;;  %v1156_v33 = vadd.f32 1.0, %v4994_v11  ;;  %v1219_v17 = vmul.f32 %v1187_v26, %v5814_v4  ;;  %v4902_v4 = vld [vmem:[%s7463_s5 + $0x68] sm:$0xff]  }
 0x152   : > { %v1154_v46 = vadd.f32 1.0, %v4996_v56  ;;  %v1217_v48 = vmul.f32 %v1185_v15, %v5818_v13  ;;  %4670 = vmatprep.subr.bf16.mxu1 %v4902_v4  ;;  %v4903_v13 = vld [vmem:[%s7463_s5 + $0x70] sm:$0xff]  }
 0x153   : > { %v1188_v50 = vmul.f32 0.5, %v1156_v33  ;;  %4671 = vmatpush3.bf16.msra.mxu1 %v4902_v4 }
 0x154   : > { %v1186_v36 = vmul.f32 0.5, %v1154_v46  ;;  %4672 = vmatprep.subr.bf16.mxu1 %v4903_v13 }
 0x155   : > { %v1220_v10 = vmul.f32 %v1188_v50, %v5830_v22  ;;  %v4904_v22 = vld [vmem:[%s7463_s5 + $0x78] sm:$0xff]  }
 0x156   : > { %4649 = vmatmul.mubr.bf16.gmra.mrb[24].mxu0 %v1232_v60  ;;  %v1218_v31 = vmul.f32 %v1186_v36, %v5833_v27  ;;  %v5890_v27 = vld [vmem:[%s7463_s5 + $0x80] sm:$0xff]  }
 0x157   : > { %4652 = vmatprep.mubr.bf16.mxu0 %v1233_v18  ;;  %v1236_v24 = vpack.c.bf16 %v1220_v10, %v1219_v17  ;;  %4673 = vmatpush3.bf16.msra.mxu1 %v4903_v13 }
 0x158   : > { %v1235_v25 = vpack.c.bf16 %v1218_v31, %v1217_v48  ;;  %4674 = vmatprep.subr.bf16.mxu1 %v4904_v22  ;;  %4708 = vmatprep.subr.bf16.mxu0 %v5890_v27 }
 0x159   : > { %4709 = vmatpush3.bf16.msra.mxu0 %v5890_v27 }
 0x15a   : > { %4710 = vmatprep.subr.bf16.mxu0 %v5895_v51 }
 0x15b   : > { %4675 = vmatpush3.bf16.msra.mxu1 %v4904_v22 }
 0x15c   : > { %4804 = vmatprep.subr.bf16.mxu1 %v5890_v27 }
 0x15d   : > { %4711 = vmatpush3.bf16.msra.mxu0 %v5895_v51 }
 0x15e   : > { %4653 = vmatmul.mubr.bf16.gmra.mrb[28].mxu0 %v1234_v42  ;;  %4712 = vmatprep.subr.bf16.mxu0 %v5904_v29 }
 0x15f   : > { %4656 = vmatprep.mubr.bf16.mxu0 %v1235_v25 }
 0x161   : > { %4713 = vmatpush3.bf16.msra.mxu0 %v5904_v29 }
 0x162   : > { %4714 = vmatprep.subr.bf16.mxu0 %v5911_v52 }
 0x165   : > { %4715 = vmatpush3.bf16.msra.mxu0 %v5911_v52 }
 0x166   : > { %4657 = vmatmul.mubr.bf16.gmra.mrb[32].mxu0 %v1236_v24 }
 0x1fa   : > { %v4630_v53 = vpop.f32.mrb[4].mxu0 }
 0x1fb   : > { %v5921_v8 = vadd.f32 %v4630_v53, %v5916_v44  ;;  %v1342_v9 = vpop.f32.mrb[5].mxu0 }
 0x1fc   : > { %v5924_v47 = vadd.f32 %v5916_v44, %v1342_v9  ;;  %v4631_v62 = vpop.f32.mrb[6].mxu0 }
 0x1fd   : > { %v1471_v58 = vmul.f32 %v5921_v8, %v5921_v8  ;;  %v5929_v55 = vadd.f32 %v4631_v62, %v5916_v44  ;;  %v1345_v35 = vpop.f32.mrb[7].mxu0 }
 0x1fe   : > { %v1469_v30 = vmul.f32 %v5924_v47, %v5924_v47  ;;  %v5935_v38 = vadd.f32 %v5916_v44, %v1345_v35 }
 0x1ff   : > { %v1503_v5 = vmul.f32 %v1471_v58, %v5921_v8  ;;  %v1472_v14 = vmul.f32 %v5929_v55, %v5929_v55 }
 0x200   : > { %v1501_v16 = vmul.f32 %v1469_v30, %v5924_v47  ;;  %v1470_v43 = vmul.f32 %v5935_v38, %v5935_v38 }
 0x201   : > { %v1535_v7 = vmul.f32 0.044715, %v1503_v5  ;;  %v1504_v59 = vmul.f32 %v1472_v14, %v5929_v55 }
 0x202   : > { %v1533_v32 = vmul.f32 0.044715, %v1501_v16  ;;  %v1502_v49 = vmul.f32 %v1470_v43, %v5935_v38 }
 0x203   : > { %v1567_v61 = vadd.f32 %v1535_v7, %v5921_v8  ;;  %v1536_v34 = vmul.f32 0.044715, %v1504_v59 }
 0x204   : > { %v1565_v39 = vadd.f32 %v1533_v32, %v5924_v47  ;;  %v1534_v23 = vmul.f32 0.044715, %v1502_v49 }
 0x205   : > { %v1599_v37 = vmul.f32 0.7978846, %v1567_v61  ;;  %v1568_v28 = vadd.f32 %v1536_v34, %v5929_v55 }
 0x206   : > { %v1597_v20 = vmul.f32 0.7978846, %v1565_v39  ;;  %v1566_v1 = vadd.f32 %v1534_v23, %v5935_v38 }
 0x207   : > { %4997 = vtanh.f32 %v1599_v37  ;;  %v1600_v45 = vmul.f32 0.7978846, %v1568_v28  ;;  %v4634_v19 = vpop.f32.mrb[8].mxu0 }
 0x208   : > { %4999 = vtanh.f32 %v1597_v20  ;;  %v1598_v6 = vmul.f32 0.7978846, %v1566_v1  ;;  %v5950_v3 = vadd.f32 %v4634_v19, %v5916_v44  ;;  %v1358_v12 = vpop.f32.mrb[9].mxu0 }
 0x209   : > { %5001 = vtanh.f32 %v1600_v45  ;;  %v5953_v60 = vadd.f32 %v5916_v44, %v1358_v12  ;;  %v4635_v40 = vpop.f32.mrb[10].mxu0 }
 0x20a   : > { %v1475_v57 = vmul.f32 %v5950_v3, %v5950_v3  ;;  %v5958_v2 = vadd.f32 %v4635_v40, %v5916_v44  ;;  %v1361_v21 = vpop.f32.mrb[11].mxu0  ;;  %5003 = vtanh.f32 %v1598_v6 }
 0x20b   : > { %v1473_v0 = vmul.f32 %v5953_v60, %v5953_v60  ;;  %v5963_v11 = vadd.f32 %v5916_v44, %v1361_v21 }
 0x20c   : > { %v1507_v18 = vmul.f32 %v1475_v57, %v5950_v3  ;;  %v1476_v56 = vmul.f32 %v5958_v2, %v5958_v2 }
 0x20d   : > { %v1505_v42 = vmul.f32 %v1473_v0, %v5953_v60  ;;  %v1474_v33 = vmul.f32 %v5963_v11, %v5963_v11 }
 0x20e   : > { %v1539_v26 = vmul.f32 0.044715, %v1507_v18  ;;  %v1508_v46 = vmul.f32 %v1476_v56, %v5958_v2 }
 0x20f   : > { %v1537_v15 = vmul.f32 0.044715, %v1505_v42  ;;  %v1506_v50 = vmul.f32 %v1474_v33, %v5963_v11 }
 0x210   : > { %v1571_v36 = vadd.f32 %v1539_v26, %v5950_v3  ;;  %v1540_v17 = vmul.f32 0.044715, %v1508_v46 }
 0x211   : > { %v4998_v10 = vpop.eup %4997  ;;  %v1569_v48 = vadd.f32 %v1537_v15, %v5953_v60  ;;  %v1538_v31 = vmul.f32 0.044715, %v1506_v50  ;;  %v4638_v24 = vpop.f32.mrb[12].mxu0 }
 0x212   : > { %v5000_v25 = vpop.eup %4999  ;;  %v1663_v63 = vadd.f32 1.0, %v4998_v10  ;;  %v1603_v4 = vmul.f32 0.7978846, %v1571_v36  ;;  %v1572_v13 = vadd.f32 %v1540_v17, %v5958_v2  ;;  %v5977_v22 = vadd.f32 %v4638_v24, %v5916_v44  ;;  %v1374_v53 = vpop.f32.mrb[13].mxu0 }
 0x213   : > { %v5002_v9 = vpop.eup %5001  ;;  %v1601_v62 = vmul.f32 0.7978846, %v1569_v48  ;;  %v1570_v58 = vadd.f32 %v1538_v31, %v5963_v11  ;;  %v5981_v35 = vadd.f32 %v5916_v44, %v1374_v53  ;;  %v4639_v30 = vpop.f32.mrb[14].mxu0  ;;  %v1661_v7 = vadd.f32 1.0, %v5000_v25 }
 0x214   : > { %v1695_v5 = vmul.f32 0.5, %v1663_v63  ;;  %v1664_v14 = vadd.f32 1.0, %v5002_v9  ;;  %v1604_v16 = vmul.f32 0.7978846, %v1572_v13  ;;  %v1377_v43 = vpop.f32.mrb[15].mxu0  ;;  %v5004_v59 = vpop.eup %5003  ;;  %5005 = vtanh.f32 %v1603_v4 }
 0x215   : > { %v1602_v32 = vmul.f32 0.7978846, %v1570_v58  ;;  %v1479_v49 = vmul.f32 %v5977_v22, %v5977_v22  ;;  %v1477_v61 = vmul.f32 %v5981_v35, %v5981_v35  ;;  %5007 = vtanh.f32 %v1601_v62 }
 0x216   : > { %v5988_v34 = vmul.f32 %v1695_v5, %v5921_v8  ;;  %v1696_v39 = vmul.f32 0.5, %v1664_v14  ;;  %v5991_v23 = vadd.f32 %v4639_v30, %v5916_v44  ;;  %5009 = vtanh.f32 %v1604_v16 }
 0x217   : > { %v1511_v37 = vmul.f32 %v1479_v49, %v5977_v22  ;;  %v1509_v28 = vmul.f32 %v1477_v61, %v5981_v35  ;;  %v5996_v20 = vadd.f32 %v5916_v44, %v1377_v43  ;;  %v1662_v45 = vadd.f32 1.0, %v5004_v59 }
 0x218   : > { %v5999_v1 = vmul.f32 %v1696_v39, %v5929_v55  ;;  %v1480_v8 = vmul.f32 %v5991_v23, %v5991_v23  ;;  %v1693_v19 = vmul.f32 0.5, %v1661_v7  ;;  %5011 = vtanh.f32 %v1602_v32 }
 0x219   : > { %v1543_v6 = vmul.f32 0.044715, %v1511_v37  ;;  %v1541_v12 = vmul.f32 0.044715, %v1509_v28  ;;  %v1478_v40 = vmul.f32 %v5996_v20, %v5996_v20  ;;  %v4642_v57 = vpop.f32.mrb[16].mxu0  ;;  %v1694_v56 = vmul.f32 0.5, %v1662_v45 }
 0x21a   : > { %v1758_v21 = vpack.c.bf16 %v5999_v1, %v5988_v34  ;;  %v1512_v0 = vmul.f32 %v1480_v8, %v5991_v23  ;;  %v6009_v55 = vadd.f32 %v4642_v57, %v5916_v44  ;;  %v1390_v18 = vpop.f32.mrb[17].mxu0  ;;  %v1725_v48 = vmul.f32 %v1693_v19, %v5924_v47 }
 0x21b   : > { %v1575_v42 = vadd.f32 %v1543_v6, %v5977_v22  ;;  %v1573_v33 = vadd.f32 %v1541_v12, %v5981_v35  ;;  %v1510_v26 = vmul.f32 %v1478_v40, %v5996_v20  ;;  %v6015_v46 = vadd.f32 %v5916_v44, %v1390_v18  ;;  %v4643_v15 = vpop.f32.mrb[18].mxu0 }
 0x21c   : > { %v1544_v50 = vmul.f32 0.044715, %v1512_v0  ;;  %v1483_v36 = vmul.f32 %v6009_v55, %v6009_v55  ;;  %v6020_v17 = vadd.f32 %v4643_v15, %v5916_v44  ;;  %v1393_v10 = vpop.f32.mrb[19].mxu0  ;;  %v1726_v30 = vmul.f32 %v1694_v56, %v5935_v38 }
 0x21d   : > { %v1607_v31 = vmul.f32 0.7978846, %v1575_v42  ;;  %v1605_v24 = vmul.f32 0.7978846, %v1573_v33  ;;  %v1542_v25 = vmul.f32 0.044715, %v1510_v26  ;;  %v1481_v63 = vmul.f32 %v6015_v46, %v6015_v46 }
 0x21e   : > { %v1576_v4 = vadd.f32 %v1544_v50, %v5991_v23  ;;  %v1515_v13 = vmul.f32 %v1483_v36, %v6009_v55  ;;  %v1484_v53 = vmul.f32 %v6020_v17, %v6020_v17  ;;  %v6030_v9 = vadd.f32 %v5916_v44, %v1393_v10  ;;  %v6032_v62 = vpop.eup %5005 }
 0x21f   : > { %5013 = vtanh.f32 %v1607_v31  ;;  %v1574_v47 = vadd.f32 %v1542_v25, %v5996_v20  ;;  %v1513_v58 = vmul.f32 %v1481_v63, %v6015_v46  ;;  %v5008_v5 = vpop.eup %5007  ;;  %v1757_v34 = vpack.c.bf16 %v1726_v30, %v1725_v48 }
 0x220   : > { %5015 = vtanh.f32 %v1605_v24  ;;  %v1608_v14 = vmul.f32 0.7978846, %v1576_v4  ;;  %v1547_v16 = vmul.f32 0.044715, %v1515_v13  ;;  %v1516_v43 = vmul.f32 %v1484_v53, %v6020_v17  ;;  %v6038_v7 = vpop.eup %5009 }
 0x221   : > { %v1606_v59 = vmul.f32 0.7978846, %v1574_v47  ;;  %v1545_v32 = vmul.f32 0.044715, %v1513_v58  ;;  %v1482_v49 = vmul.f32 %v6030_v9, %v6030_v9  ;;  %v4646_v61 = vpop.f32.mrb[20].mxu0  ;;  %4676 = vmatprep.mubr.bf16.mxu1 %v1757_v34  ;;  %v1665_v24 = vadd.f32 1.0, %v5008_v5 }
 0x222   : > { %5017 = vtanh.f32 %v1608_v14  ;;  %v1579_v39 = vadd.f32 %v1547_v16, %v6009_v55  ;;  %v1548_v37 = vmul.f32 0.044715, %v1516_v43  ;;  %v6044_v38 = vadd.f32 %v4646_v61, %v5916_v44  ;;  %v1406_v28 = vpop.f32.mrb[21].mxu0  ;;  %v5012_v1 = vpop.eup %5011  ;;  %4677 = vmatmul.mubr.bf16.vlgmr.msra.gmra.mrb[32].mxu1 %v1758_v21 }
 0x223   : > { %5019 = vtanh.f32 %v1606_v59  ;;  %v1577_v8 = vadd.f32 %v1545_v32, %v6015_v46  ;;  %v1514_v45 = vmul.f32 %v1482_v49, %v6030_v9  ;;  %v6049_v19 = vadd.f32 %v5916_v44, %v1406_v28  ;;  %v4647_v6 = vpop.f32.mrb[22].mxu0  ;;  %4812 = vmatpush3.bf16.msra.mxu1 %v5890_v27 }
 0x224   : > { %v1611_v12 = vmul.f32 0.7978846, %v1579_v39  ;;  %v1580_v40 = vadd.f32 %v1548_v37, %v6020_v17  ;;  %v1487_v57 = vmul.f32 %v6044_v38, %v6044_v38  ;;  %v6055_v0 = vadd.f32 %v4647_v6, %v5916_v44  ;;  %v1409_v18 = vpop.f32.mrb[23].mxu0  ;;  %4805 = vmatprep.subr.bf16.mxu1 %v5895_v51 }
 0x225   : > { %v1609_v56 = vmul.f32 0.7978846, %v1577_v8  ;;  %v1546_v42 = vmul.f32 0.044715, %v1514_v45  ;;  %v1485_v33 = vmul.f32 %v6049_v19, %v6049_v19  ;;  %v6060_v26 = vadd.f32 %v5916_v44, %v1409_v18 }
 0x226   : > { %5021 = vtanh.f32 %v1611_v12  ;;  %v1612_v15 = vmul.f32 0.7978846, %v1580_v40  ;;  %v1519_v50 = vmul.f32 %v1487_v57, %v6044_v38  ;;  %v1488_v36 = vmul.f32 %v6055_v0, %v6055_v0 }
 0x227   : > { %5023 = vtanh.f32 %v1609_v56  ;;  %v1578_v21 = vadd.f32 %v1546_v42, %v6030_v9  ;;  %v1517_v10 = vmul.f32 %v1485_v33, %v6049_v19  ;;  %v1486_v48 = vmul.f32 %v6060_v26, %v6060_v26  ;;  %4813 = vmatpush3.bf16.msra.mxu1 %v5895_v51 }
 0x228   : > { %5025 = vtanh.f32 %v1612_v15  ;;  %v1551_v31 = vmul.f32 0.044715, %v1519_v50  ;;  %v1520_v27 = vmul.f32 %v1488_v36, %v6055_v0  ;;  %v1666_v47 = vadd.f32 1.0, %v5012_v1  ;;  %4806 = vmatprep.subr.bf16.mxu1 %v5904_v29 }
 0x229   : > { %v6072_v25 = vpop.eup %5013  ;;  %v1610_v63 = vmul.f32 0.7978846, %v1578_v21  ;;  %v1549_v4 = vmul.f32 0.044715, %v1517_v10  ;;  %v1518_v13 = vmul.f32 %v1486_v48, %v6060_v26  ;;  %v4650_v53 = vpop.f32.mrb[24].mxu0  ;;  %v1697_v5 = vmul.f32 0.5, %v1665_v24 }
 0x22a   : > { %v6076_v58 = vpop.eup %5015  ;;  %v1583_v30 = vadd.f32 %v1551_v31, %v6044_v38  ;;  %v1552_v14 = vmul.f32 0.044715, %v1520_v27  ;;  %v6080_v16 = vadd.f32 %v4650_v53, %v5916_v44  ;;  %v1422_v43 = vpop.f32.mrb[25].mxu0  ;;  %v1698_v21 = vmul.f32 0.5, %v1666_v47 }
 0x22b   : > { %5027 = vtanh.f32 %v1610_v63  ;;  %v1581_v59 = vadd.f32 %v1549_v4, %v6049_v19  ;;  %v1550_v32 = vmul.f32 0.044715, %v1518_v13  ;;  %v6085_v49 = vadd.f32 %v5916_v44, %v1422_v43  ;;  %v4651_v51 = vpop.f32.mrb[26].mxu0  ;;  %4814 = vmatpush3.bf16.msra.mxu1 %v5904_v29 }
 0x22c   : > { %v6087_v61 = vpop.eup %5017  ;;  %v1615_v34 = vmul.f32 0.7978846, %v1583_v30  ;;  %v1584_v39 = vadd.f32 %v1552_v14, %v6055_v0  ;;  %v1491_v37 = vmul.f32 %v6080_v16, %v6080_v16  ;;  %v6093_v28 = vadd.f32 %v4651_v51, %v5916_v44  ;;  %v1425_v1 = vpop.f32.mrb[27].mxu0  ;;  %4807 = vmatprep.subr.bf16.mxu1 %v5911_v52 }
 0x22d   : > { %v6095_v8 = vpop.eup %5019  ;;  %v1613_v45 = vmul.f32 0.7978846, %v1581_v59  ;;  %v1582_v6 = vadd.f32 %v1550_v32, %v6060_v26  ;;  %v1489_v12 = vmul.f32 %v6085_v49, %v6085_v49  ;;  %v6101_v40 = vadd.f32 %v5916_v44, %v1425_v1 }
 0x22e   : > { %5029 = vtanh.f32 %v1615_v34  ;;  %v1616_v57 = vmul.f32 0.7978846, %v1584_v39  ;;  %v1523_v18 = vmul.f32 %v1491_v37, %v6080_v16  ;;  %v1492_v56 = vmul.f32 %v6093_v28, %v6093_v28 }
 0x22f   : > { %5031 = vtanh.f32 %v1613_v45  ;;  %v1614_v42 = vmul.f32 0.7978846, %v1582_v6  ;;  %v1521_v33 = vmul.f32 %v1489_v12, %v6085_v49  ;;  %v1490_v15 = vmul.f32 %v6101_v40, %v6101_v40  ;;  %4815 = vmatpush3.bf16.msra.mxu1 %v5911_v52 }
 0x230   : > { %v6111_v50 = vpop.eup %5021  ;;  %5033 = vtanh.f32 %v1616_v57  ;;  %v1555_v29 = vmul.f32 0.044715, %v1523_v18  ;;  %v1524_v36 = vmul.f32 %v1492_v56, %v6093_v28  ;;  %v1729_v27 = vmul.f32 %v1697_v5, %v5953_v60 }
 0x231   : > { %v6114_v10 = vpop.eup %5023  ;;  %5035 = vtanh.f32 %v1614_v42  ;;  %v1553_v48 = vmul.f32 0.044715, %v1521_v33  ;;  %v1522_v31 = vmul.f32 %v1490_v15, %v6101_v40  ;;  %v4654_v24 = vpop.f32.mrb[28].mxu0  ;;  %v1730_v53 = vmul.f32 %v1698_v21, %v5963_v11 }
 0x232   : > { %v6119_v63 = vpop.eup %5025  ;;  %v1587_v4 = vadd.f32 %v1555_v29, %v6080_v16  ;;  %v1556_v13 = vmul.f32 0.044715, %v1524_v36  ;;  %v1667_v47 = vadd.f32 1.0, %v6032_v62  ;;  %v1438_v30 = vpop.f32.mrb[29].mxu0  ;;  %v1668_v59 = vadd.f32 1.0, %v6038_v7 }
 0x233   : > { %v1585_v14 = vadd.f32 %v1553_v48, %v6085_v49  ;;  %v1554_v43 = vmul.f32 0.044715, %v1522_v31  ;;  %v6127_v60 = vadd.f32 %v4654_v24, %v5916_v44  ;;  %v4655_v5 = vpop.f32.mrb[30].mxu0  ;;  %v1759_v51 = vpack.c.bf16 %v1730_v53, %v1729_v27 }
 0x234   : > { %v1619_v52 = vmul.f32 0.7978846, %v1587_v4  ;;  %v1588_v32 = vadd.f32 %v1556_v13, %v6093_v28  ;;  %v1699_v34 = vmul.f32 0.5, %v1667_v47  ;;  %v1441_v39 = vpop.f32.mrb[31].mxu0  ;;  %v1700_v1 = vmul.f32 0.5, %v1668_v59 }
 0x235   : > { %v6130_v37 = vpop.eup %5027  ;;  %v1617_v11 = vmul.f32 0.7978846, %v1585_v14  ;;  %v1586_v62 = vadd.f32 %v1554_v43, %v6101_v40  ;;  %v1495_v45 = vmul.f32 %v6127_v60, %v6127_v60  ;;  %4680 = vmatprep.mubr.bf16.mxu1 %v1759_v51  ;;  %v6137_v12 = vadd.f32 %v5916_v44, %v1438_v30 }
 0x236   : > { %5037 = vtanh.f32 %v1619_v52  ;;  %v1620_v7 = vmul.f32 0.7978846, %v1588_v32  ;;  %v1731_v6 = vmul.f32 %v1699_v34, %v5950_v3  ;;  %v1732_v18 = vmul.f32 %v1700_v1, %v5958_v2 }
 0x237   : > { %5039 = vtanh.f32 %v1617_v11  ;;  %v1618_v57 = vmul.f32 0.7978846, %v1586_v62  ;;  %v1527_v56 = vmul.f32 %v1495_v45, %v6127_v60  ;;  %v1493_v33 = vmul.f32 %v6137_v12, %v6137_v12 }
 0x238   : > { %v6141_v42 = vpop.eup %5029  ;;  %5041 = vtanh.f32 %v1620_v7  ;;  %v6146_v15 = vadd.f32 %v4655_v5, %v5916_v44  ;;  %v6149_v3 = vadd.f32 %v5916_v44, %v1441_v39  ;;  %v1760_v36 = vpack.c.bf16 %v1732_v18, %v1731_v6 }
 0x239   : > { %v6151_v29 = vpop.eup %5031  ;;  %5043 = vtanh.f32 %v1618_v57  ;;  %v1559_v21 = vmul.f32 0.044715, %v1527_v56  ;;  %v1669_v2 = vadd.f32 1.0, %v6076_v58  ;;  %v4658_v48 = vpop.f32.mrb[32].mxu0  ;;  %v1525_v27 = vmul.f32 %v1493_v33, %v6137_v12 }
 0x23a   : > { %v6154_v31 = vpop.eup %5033  ;;  %v1496_v24 = vmul.f32 %v6146_v15, %v6146_v15  ;;  %v1494_v4 = vmul.f32 %v6149_v3, %v6149_v3  ;;  %v1670_v13 = vadd.f32 1.0, %v6095_v8  ;;  %v1454_v53 = vpop.f32.mrb[33].mxu0  ;;  %4681 = vmatmul.mubr.bf16.gmra.mrb[36].mxu1 %v1760_v36  ;;  %v1671_v14 = vadd.f32 1.0, %v6072_v25 }
 0x23b   : > { %v6162_v47 = vpop.eup %5035  ;;  %v1591_v30 = vadd.f32 %v1559_v21, %v6127_v60  ;;  %v1701_v58 = vmul.f32 0.5, %v1669_v2  ;;  %v1672_v43 = vadd.f32 1.0, %v6087_v61  ;;  %v4659_v59 = vpop.f32.mrb[34].mxu0  ;;  %v1557_v5 = vmul.f32 0.044715, %v1525_v27 }
 0x23c   : > { %v1528_v52 = vmul.f32 %v1496_v24, %v6146_v15  ;;  %v1526_v32 = vmul.f32 %v1494_v4, %v6149_v3  ;;  %v1702_v51 = vmul.f32 0.5, %v1670_v13  ;;  %v1457_v34 = vpop.f32.mrb[35].mxu0  ;;  %v1703_v11 = vmul.f32 0.5, %v1671_v14 }
 0x23d   : > { %v1623_v8 = vmul.f32 0.7978846, %v1591_v30  ;;  %v1733_v39 = vmul.f32 %v1701_v58, %v5981_v35  ;;  %v1704_v62 = vmul.f32 0.5, %v1672_v43  ;;  %v1589_v1 = vadd.f32 %v1557_v5, %v6137_v12 }
 0x23e   : > { %v1560_v45 = vmul.f32 0.044715, %v1528_v52  ;;  %v1558_v7 = vmul.f32 0.044715, %v1526_v32  ;;  %v1734_v25 = vmul.f32 %v1702_v51, %v5996_v20  ;;  %v1735_v61 = vmul.f32 %v1703_v11, %v5977_v22 }
 0x23f   : > { %5045 = vtanh.f32 %v1623_v8  ;;  %v1736_v6 = vmul.f32 %v1704_v62, %v5991_v23  ;;  %v6175_v57 = vadd.f32 %v4658_v48, %v5916_v44  ;;  %v1621_v56 = vmul.f32 0.7978846, %v1589_v1 }
 0x240   : > { %v6177_v18 = vpop.eup %5037  ;;  %v1592_v35 = vadd.f32 %v1560_v45, %v6146_v15  ;;  %v1590_v33 = vadd.f32 %v1558_v7, %v6149_v3  ;;  %v1761_v36 = vpack.c.bf16 %v1734_v25, %v1733_v39  ;;  %v6184_v22 = vadd.f32 %v5916_v44, %v1454_v53 }
 0x241   : > { %v5040_v21 = vpop.eup %5039  ;;  %v1762_v2 = vpack.c.bf16 %v1736_v6, %v1735_v61  ;;  %v1499_v20 = vmul.f32 %v6175_v57, %v6175_v57  ;;  %v6187_v23 = vadd.f32 %v4659_v59, %v5916_v44  ;;  %5047 = vtanh.f32 %v1621_v56 }
 0x242   : > { %v6189_v48 = vpop.eup %5041  ;;  %v1624_v27 = vmul.f32 0.7978846, %v1592_v35  ;;  %v1622_v24 = vmul.f32 0.7978846, %v1590_v33  ;;  %4684 = vmatprep.mubr.bf16.mxu1 %v1761_v36  ;;  %v6192_v4 = vadd.f32 %v5916_v44, %v1457_v34  ;;  %v1497_v53 = vmul.f32 %v6184_v22, %v6184_v22 }
 0x243   : > { %v5044_v13 = vpop.eup %5043  ;;  %4685 = vmatmul.mubr.bf16.gmra.mrb[40].mxu1 %v1762_v2  ;;  %v1531_v30 = vmul.f32 %v1499_v20, %v6175_v57  ;;  %v1500_v58 = vmul.f32 %v6187_v23, %v6187_v23  ;;  %v1673_v14 = vadd.f32 1.0, %v6114_v10  ;;  %v1674_v59 = vadd.f32 1.0, %v6130_v37 }
 0x244   : > { %5049 = vtanh.f32 %v1624_v27  ;;  %v1498_v43 = vmul.f32 %v6192_v4, %v6192_v4  ;;  %v1675_v44 = vadd.f32 1.0, %v6111_v50  ;;  %v1529_v52 = vmul.f32 %v1497_v53, %v6184_v22 }
 0x245   : > { %5051 = vtanh.f32 %v1622_v24  ;;  %v1563_v5 = vmul.f32 0.044715, %v1531_v30  ;;  %v1532_v32 = vmul.f32 %v1500_v58, %v6187_v23  ;;  %v1705_v34 = vmul.f32 0.5, %v1673_v14 }
 0x246   : > { %v1530_v51 = vmul.f32 %v1498_v43, %v6192_v4  ;;  %v1706_v8 = vmul.f32 0.5, %v1674_v59  ;;  %v1676_v10 = vadd.f32 1.0, %v6119_v63  ;;  %v1561_v11 = vmul.f32 0.044715, %v1529_v52 }
 0x247   : > { %v1595_v39 = vadd.f32 %v1563_v5, %v6175_v57  ;;  %v1564_v62 = vmul.f32 0.044715, %v1532_v32  ;;  %v1707_v1 = vmul.f32 0.5, %v1675_v44  ;;  %v1737_v50 = vmul.f32 %v1705_v34, %v6015_v46 }
 0x248   : > { %v1562_v37 = vmul.f32 0.044715, %v1530_v51  ;;  %v1738_v45 = vmul.f32 %v1706_v8, %v6030_v9  ;;  %v1708_v7 = vmul.f32 0.5, %v1676_v10  ;;  %v1593_v6 = vadd.f32 %v1561_v11, %v6184_v22 }
 0x249   : > { %v5046_v25 = vpop.eup %5045  ;;  %v1627_v61 = vmul.f32 0.7978846, %v1595_v39  ;;  %v1596_v56 = vadd.f32 %v1564_v62, %v6187_v23  ;;  %v1739_v35 = vmul.f32 %v1707_v1, %v6009_v55  ;;  %v1677_v2 = vadd.f32 1.0, %v6151_v29 }
 0x24a   : > { %v1594_v63 = vadd.f32 %v1562_v37, %v6192_v4  ;;  %v1763_v33 = vpack.c.bf16 %v1738_v45, %v1737_v50  ;;  %v1740_v36 = vmul.f32 %v1708_v7, %v6020_v17  ;;  %v1625_v46 = vmul.f32 0.7978846, %v1593_v6 }
 0x24b   : > { %5053 = vtanh.f32 %v1627_v61  ;;  %v1628_v20 = vmul.f32 0.7978846, %v1596_v56  ;;  %v1678_v9 = vadd.f32 1.0, %v6162_v47  ;;  %v5048_v27 = vpop.eup %5047  ;;  %v1709_v53 = vmul.f32 0.5, %v1677_v2 }
 0x24c   : > { %v1626_v24 = vmul.f32 0.7978846, %v1594_v63  ;;  %4688 = vmatprep.mubr.bf16.mxu1 %v1763_v33  ;;  %v1764_v30 = vpack.c.bf16 %v1740_v36, %v1739_v35  ;;  %v1679_v58 = vadd.f32 1.0, %v6141_v42  ;;  %5055 = vtanh.f32 %v1625_v46 }
 0x24d   : > { %v1710_v55 = vmul.f32 0.5, %v1678_v9  ;;  %v1680_v14 = vadd.f32 1.0, %v6154_v31  ;;  %v1681_v43 = vadd.f32 1.0, %v5040_v21  ;;  %5057 = vtanh.f32 %v1628_v20 }
 0x24e   : > { %v5050_v17 = vpop.eup %5049  ;;  %4689 = vmatmul.mubr.bf16.gmra.mrb[44].mxu1 %v1764_v30  ;;  %v1741_v29 = vmul.f32 %v1709_v53, %v6049_v19  ;;  %v1711_v59 = vmul.f32 0.5, %v1679_v58  ;;  %v1682_v44 = vadd.f32 1.0, %v5044_v13  ;;  %5059 = vtanh.f32 %v1626_v24 }
 0x24f   : > { %v5052_v47 = vpop.eup %5051  ;;  %v1742_v5 = vmul.f32 %v1710_v55, %v6060_v26  ;;  %v1712_v52 = vmul.f32 0.5, %v1680_v14  ;;  %v1713_v32 = vmul.f32 0.5, %v1681_v43  ;;  %v1683_v34 = vadd.f32 1.0, %v6177_v18  ;;  %v4909_v55 = vld [vmem:[%s7463_s5 + $0xa0] sm:$0xff]  }
 0x250   : > { %v1743_v42 = vmul.f32 %v1711_v59, %v6044_v38  ;;  %v1714_v51 = vmul.f32 0.5, %v1682_v44  ;;  %v1684_v31 = vadd.f32 1.0, %v6189_v48  ;;  %v1685_v10 = vadd.f32 1.0, %v5048_v27  ;;  %4716 = vmatprep.subr.bf16.mxu0 %v4909_v55  ;;  %4808 = vmatprep.subr.bf16.mxu1 %v4909_v55  ;;  %v6258_v14 = vld [vmem:[%s7465_s7] sm:$0xff]  }
 0x251   : > { %v1765_v21 = vpack.c.bf16 %v1742_v5, %v1741_v29  ;;  %v1744_v8 = vmul.f32 %v1712_v52, %v6055_v0  ;;  %v1745_v19 = vmul.f32 %v1713_v32, %v6085_v49  ;;  %v1715_v39 = vmul.f32 0.5, %v1683_v34  ;;  %4717 = vmatpush3.bf16.msra.mxu0 %v4909_v55  ;;  %4816 = vmatpush3.bf16.msra.mxu1 %v4909_v55 }
 0x252   : > { %v1746_v13 = vmul.f32 %v1714_v51, %v6101_v40  ;;  %v1716_v11 = vmul.f32 0.5, %v1684_v31  ;;  %v1686_v26 = vadd.f32 1.0, %v5052_v47  ;;  %v1717_v1 = vmul.f32 0.5, %v1685_v10 }
 0x253   : > { %4692 = vmatprep.mubr.bf16.mxu1 %v1765_v21  ;;  %v1766_v62 = vpack.c.bf16 %v1744_v8, %v1743_v42  ;;  %v1687_v38 = vadd.f32 1.0, %v5046_v25  ;;  %v1688_v37 = vadd.f32 1.0, %v5050_v17  ;;  %v1747_v18 = vmul.f32 %v1715_v39, %v6080_v16 }
 0x254   : > { %v1767_v50 = vpack.c.bf16 %v1746_v13, %v1745_v19  ;;  %v1748_v48 = vmul.f32 %v1716_v11, %v6093_v28  ;;  %v1718_v45 = vmul.f32 0.5, %v1686_v26  ;;  %v1749_v40 = vmul.f32 %v1717_v1, %v6137_v12 }
 0x255   : > { %v5054_v0 = vpop.eup %5053  ;;  %v1719_v7 = vmul.f32 0.5, %v1687_v38  ;;  %v1720_v49 = vmul.f32 0.5, %v1688_v37 }
 0x256   : > { %4693 = vmatmul.mubr.bf16.gmra.mrb[48].mxu1 %v1766_v62  ;;  %v1768_v61 = vpack.c.bf16 %v1748_v48, %v1747_v18  ;;  %v1750_v6 = vmul.f32 %v1718_v45, %v6149_v3  ;;  %v1691_v56 = vadd.f32 1.0, %v5054_v0  ;;  %v5056_v35 = vpop.eup %5055 }
 0x257   : > { %4696 = vmatprep.mubr.bf16.mxu1 %v1767_v50  ;;  %v1751_v25 = vmul.f32 %v1719_v7, %v6127_v60  ;;  %v1752_v63 = vmul.f32 %v1720_v49, %v6146_v15  ;;  %v5058_v16 = vpop.eup %5057  ;;  %v1689_v28 = vadd.f32 1.0, %v5056_v35 }
 0x258   : > { %v1769_v33 = vpack.c.bf16 %v1750_v6, %v1749_v40  ;;  %v5060_v36 = vpop.eup %5059  ;;  %v1692_v46 = vadd.f32 1.0, %v5058_v16  ;;  %v1723_v20 = vmul.f32 0.5, %v1691_v56 }
 0x259   : > { %v1770_v2 = vpack.c.bf16 %v1752_v63, %v1751_v25  ;;  %v1690_v9 = vadd.f32 1.0, %v5060_v36  ;;  %v1721_v27 = vmul.f32 0.5, %v1689_v28 }
 0x25a   : > { %v1724_v24 = vmul.f32 0.5, %v1692_v46  ;;  %v1755_v3 = vmul.f32 %v1723_v20, %v6175_v57  ;;  %v4910_v57 = vld [vmem:[%s7463_s5 + $0xa8] sm:$0xff]  }
 0x25b   : > { %v1722_v12 = vmul.f32 0.5, %v1690_v9  ;;  %v1753_v60 = vmul.f32 %v1721_v27, %v6184_v22  ;;  %4718 = vmatprep.subr.bf16.mxu0 %v4910_v57  ;;  %4809 = vmatprep.subr.bf16.mxu1 %v4910_v57  ;;  %v4911_v22 = vld [vmem:[%s7463_s5 + $0xb0] sm:$0xff]  }
 0x25c   : > { %v1756_v30 = vmul.f32 %v1724_v24, %v6187_v23  ;;  %4719 = vmatpush3.bf16.msra.mxu0 %v4910_v57  ;;  %4817 = vmatpush3.bf16.msra.mxu1 %v4910_v57  ;;  %v4912_v23 = vld [vmem:[%s7463_s5 + $0xb8] sm:$0xff]  }
 0x25d   : > { %v1754_v15 = vmul.f32 %v1722_v12, %v6192_v4  ;;  %4720 = vmatprep.subr.bf16.mxu0 %v4911_v22  ;;  %4810 = vmatprep.subr.bf16.mxu1 %v4911_v22  ;;  %v6253_v4 = vld [vmem:[%s7464_s6 + $0x1] ss:$0 sm:$0xff] }
 0x25e   : > { %4697 = vmatmul.mubr.bf16.gmra.mrb[52].mxu1 %v1768_v61  ;;  %v1772_v53 = vpack.c.bf16 %v1756_v30, %v1755_v3 }
 0x25f   : > { %4700 = vmatprep.mubr.bf16.mxu1 %v1769_v33  ;;  %v1771_v58 = vpack.c.bf16 %v1754_v15, %v1753_v60 }
 0x260   : > { %4721 = vmatpush3.bf16.msra.mxu0 %v4911_v22  ;;  %4818 = vmatpush3.bf16.msra.mxu1 %v4911_v22 }
 0x261   : > { %4722 = vmatprep.subr.bf16.mxu0 %v4912_v23  ;;  %4811 = vmatprep.subr.bf16.mxu1 %v4912_v23 }
 0x264   : > { %4723 = vmatpush3.bf16.msra.mxu0 %v4912_v23  ;;  %4819 = vmatpush3.bf16.msra.mxu1 %v4912_v23 }
 0x265   : > { %4756 = vmatprep.subr.bf16.mxu1 %v6258_v14 }
 0x266   : > { %4701 = vmatmul.mubr.bf16.gmra.mrb[56].mxu1 %v1770_v2 }
 0x267   : > { %4704 = vmatprep.mubr.bf16.mxu1 %v1771_v58 }
 0x26e   : > { %4705 = vmatmul.mubr.bf16.gmra.mrb[60].mxu1 %v1772_v53 }
 0x2f5   : > { %v4678_v43 = vpop.f32.mrb[32].mxu1 }
 0x2f6   : > { %v1889_v17 = vadd.f32 %v4678_v43, %v6253_v4  ;;  %v1880_v29 = vpop.f32.mrb[33].mxu1 }
 0x2f7   : > { %v1881_v59 = vadd.f32 %v6253_v4, %v1880_v29  ;;  %v4679_v44 = vpop.f32.mrb[34].mxu1 }
 0x2f8   : > { %v2009_v47 = vmul.f32 %v1889_v17, %v1889_v17  ;;  %v1892_v5 = vadd.f32 %v4679_v44, %v6253_v4  ;;  %v1883_v52 = vpop.f32.mrb[35].mxu1 }
 0x2f9   : > { %v2007_v32 = vmul.f32 %v1881_v59, %v1881_v59  ;;  %v1884_v42 = vadd.f32 %v6253_v4, %v1883_v52 }
 0x2fa   : > { %v2041_v51 = vmul.f32 %v2009_v47, %v1889_v17  ;;  %v2010_v34 = vmul.f32 %v1892_v5, %v1892_v5 }
 0x2fb   : > { %v2039_v31 = vmul.f32 %v2007_v32, %v1881_v59  ;;  %v2008_v21 = vmul.f32 %v1884_v42, %v1884_v42 }
 0x2fc   : > { %v2073_v8 = vmul.f32 0.044715, %v2041_v51  ;;  %v2042_v19 = vmul.f32 %v2010_v34, %v1892_v5 }
 0x2fd   : > { %v2071_v10 = vmul.f32 0.044715, %v2039_v31  ;;  %v2040_v13 = vmul.f32 %v2008_v21, %v1884_v42 }
 0x2fe   : > { %v2105_v39 = vadd.f32 %v2073_v8, %v1889_v17  ;;  %v2074_v11 = vmul.f32 0.044715, %v2042_v19 }
 0x2ff   : > { %v2103_v26 = vadd.f32 %v2071_v10, %v1881_v59  ;;  %v2072_v62 = vmul.f32 0.044715, %v2040_v13 }
 0x300   : > { %v2137_v1 = vmul.f32 0.7978846, %v2105_v39  ;;  %v2106_v38 = vadd.f32 %v2074_v11, %v1892_v5 }
 0x301   : > { %v2135_v37 = vmul.f32 0.7978846, %v2103_v26  ;;  %v2104_v50 = vadd.f32 %v2072_v62, %v1884_v42 }
 0x302   : > { %5061 = vtanh.f32 %v2137_v1  ;;  %v2138_v18 = vmul.f32 0.7978846, %v2106_v38 }
 0x303   : > { %5063 = vtanh.f32 %v2135_v37  ;;  %v2136_v48 = vmul.f32 0.7978846, %v2104_v50 }
 0x304   : > { %5065 = vtanh.f32 %v2138_v18 }
 0x305   : > { %5067 = vtanh.f32 %v2136_v48 }
 0x30c   : > { %v5062_v45 = vpop.eup %5061 }
 0x30d   : > { %v4682_v0 = vpop.f32.mrb[36].mxu1  ;;  %v5064_v7 = vpop.eup %5063  ;;  %v2201_v49 = vadd.f32 1.0, %v5062_v45 }
 0x30e   : > { %v6266_v61 = vadd.f32 %v4682_v0, %v6253_v4  ;;  %v1896_v40 = vpop.f32.mrb[37].mxu1  ;;  %v5066_v6 = vpop.eup %5065  ;;  %v2199_v25 = vadd.f32 1.0, %v5064_v7 }
 0x30f   : > { %v6269_v56 = vadd.f32 %v6253_v4, %v1896_v40  ;;  %v4683_v35 = vpop.f32.mrb[38].mxu1  ;;  %v5068_v63 = vpop.eup %5067  ;;  %v2233_v16 = vmul.f32 0.5, %v2201_v49  ;;  %v2202_v33 = vadd.f32 1.0, %v5066_v6 }
 0x310   : > { %v2013_v28 = vmul.f32 %v6266_v61, %v6266_v61  ;;  %v6274_v36 = vadd.f32 %v4683_v35, %v6253_v4  ;;  %v1899_v2 = vpop.f32.mrb[39].mxu1  ;;  %v2200_v9 = vadd.f32 1.0, %v5068_v63  ;;  %v2231_v27 = vmul.f32 0.5, %v2199_v25 }
 0x311   : > { %v2011_v46 = vmul.f32 %v6269_v56, %v6269_v56  ;;  %v6279_v20 = vadd.f32 %v6253_v4, %v1899_v2  ;;  %v2234_v24 = vmul.f32 0.5, %v2202_v33  ;;  %v2265_v53 = vmul.f32 %v2233_v16, %v1889_v17 }
 0x312   : > { %v2045_v12 = vmul.f32 %v2013_v28, %v6266_v61  ;;  %v2014_v3 = vmul.f32 %v6274_v36, %v6274_v36  ;;  %v2232_v15 = vmul.f32 0.5, %v2200_v9  ;;  %v2263_v29 = vmul.f32 %v2231_v27, %v1881_v59 }
 0x313   : > { %v2043_v30 = vmul.f32 %v2011_v46, %v6269_v56  ;;  %v2012_v60 = vmul.f32 %v6279_v20, %v6279_v20  ;;  %v2266_v58 = vmul.f32 %v2234_v24, %v1892_v5 }
 0x314   : > { %v2077_v55 = vmul.f32 0.044715, %v2045_v12  ;;  %v2046_v57 = vmul.f32 %v2014_v3, %v6274_v36  ;;  %v2264_v44 = vmul.f32 %v2232_v15, %v1884_v42 }
 0x315   : > { %v2075_v22 = vmul.f32 0.044715, %v2043_v30  ;;  %v2044_v23 = vmul.f32 %v2012_v60, %v6279_v20  ;;  %v2296_v47 = vpack.c.bf16 %v2266_v58, %v2265_v53 }
 0x316   : > { %v4686_v43 = vpop.f32.mrb[40].mxu1  ;;  %v2109_v52 = vadd.f32 %v2077_v55, %v6266_v61  ;;  %v2078_v32 = vmul.f32 0.044715, %v2046_v57  ;;  %v2295_v8 = vpack.c.bf16 %v2264_v44, %v2263_v29 }
 0x317   : > { %v6291_v51 = vadd.f32 %v4686_v43, %v6253_v4  ;;  %v1912_v34 = vpop.f32.mrb[41].mxu1  ;;  %v2107_v17 = vadd.f32 %v2075_v22, %v6269_v56  ;;  %v2076_v5 = vmul.f32 0.044715, %v2044_v23 }
 0x318   : > { %v6295_v31 = vadd.f32 %v6253_v4, %v1912_v34  ;;  %v4687_v21 = vpop.f32.mrb[42].mxu1  ;;  %v2141_v19 = vmul.f32 0.7978846, %v2109_v52  ;;  %v2110_v59 = vadd.f32 %v2078_v32, %v6274_v36  ;;  %4724 = vmatprep.mubr.bf16.mxu0 %v2295_v8 }
 0x319   : > { %v2017_v42 = vmul.f32 %v6291_v51, %v6291_v51  ;;  %v6301_v10 = vadd.f32 %v4687_v21, %v6253_v4  ;;  %v1915_v13 = vpop.f32.mrb[43].mxu1  ;;  %v2139_v39 = vmul.f32 0.7978846, %v2107_v17  ;;  %v2108_v11 = vadd.f32 %v2076_v5, %v6279_v20  ;;  %4725 = vmatmul.mubr.bf16.vlgmr.msra.gmra.mrb[36].mxu0 %v2296_v47 }
 0x31a   : > { %v2015_v26 = vmul.f32 %v6295_v31, %v6295_v31  ;;  %v6307_v62 = vadd.f32 %v6253_v4, %v1915_v13  ;;  %5069 = vtanh.f32 %v2141_v19  ;;  %v2142_v1 = vmul.f32 0.7978846, %v2110_v59 }
 0x31b   : > { %v2049_v38 = vmul.f32 %v2017_v42, %v6291_v51  ;;  %v2018_v37 = vmul.f32 %v6301_v10, %v6301_v10  ;;  %5071 = vtanh.f32 %v2139_v39  ;;  %v2140_v50 = vmul.f32 0.7978846, %v2108_v11 }
 0x31c   : > { %v2047_v18 = vmul.f32 %v2015_v26, %v6295_v31  ;;  %v2016_v48 = vmul.f32 %v6307_v62, %v6307_v62  ;;  %5073 = vtanh.f32 %v2142_v1 }
 0x31d   : > { %v2081_v45 = vmul.f32 0.044715, %v2049_v38  ;;  %v2050_v0 = vmul.f32 %v2018_v37, %v6301_v10  ;;  %5075 = vtanh.f32 %v2140_v50 }
 0x31e   : > { %v2079_v7 = vmul.f32 0.044715, %v2047_v18  ;;  %v2048_v49 = vmul.f32 %v2016_v48, %v6307_v62 }
 0x31f   : > { %v2113_v40 = vadd.f32 %v2081_v45, %v6291_v51  ;;  %v2082_v6 = vmul.f32 0.044715, %v2050_v0 }
 0x320   : > { %v2111_v35 = vadd.f32 %v2079_v7, %v6295_v31  ;;  %v2080_v25 = vmul.f32 0.044715, %v2048_v49 }
 0x321   : > { %v2145_v63 = vmul.f32 0.7978846, %v2113_v40  ;;  %v2114_v16 = vadd.f32 %v2082_v6, %v6301_v10  ;;  %v4690_v33 = vpop.f32.mrb[44].mxu1 }
 0x322   : > { %v2143_v28 = vmul.f32 0.7978846, %v2111_v35  ;;  %v2112_v2 = vadd.f32 %v2080_v25, %v6307_v62  ;;  %v6322_v46 = vadd.f32 %v4690_v33, %v6253_v4  ;;  %v1928_v9 = vpop.f32.mrb[45].mxu1 }
 0x323   : > { %5077 = vtanh.f32 %v2145_v63  ;;  %v2146_v27 = vmul.f32 0.7978846, %v2114_v16  ;;  %v6325_v24 = vadd.f32 %v6253_v4, %v1928_v9  ;;  %v4691_v12 = vpop.f32.mrb[46].mxu1 }
 0x324   : > { %v2144_v3 = vmul.f32 0.7978846, %v2112_v2  ;;  %v2021_v30 = vmul.f32 %v6322_v46, %v6322_v46  ;;  %v6330_v60 = vadd.f32 %v4691_v12, %v6253_v4  ;;  %v1931_v15 = vpop.f32.mrb[47].mxu1  ;;  %v5070_v53 = vpop.eup %5069 }
 0x325   : > { %5079 = vtanh.f32 %v2146_v27  ;;  %v2019_v58 = vmul.f32 %v6325_v24, %v6325_v24  ;;  %v6335_v55 = vadd.f32 %v6253_v4, %v1931_v15  ;;  %v5072_v57 = vpop.eup %5071  ;;  %v2205_v43 = vadd.f32 1.0, %v5070_v53 }
 0x326   : > { %5081 = vtanh.f32 %v2143_v28  ;;  %v2053_v22 = vmul.f32 %v2021_v30, %v6322_v46  ;;  %v2022_v23 = vmul.f32 %v6330_v60, %v6330_v60  ;;  %v5074_v29 = vpop.eup %5073  ;;  %v2203_v52 = vadd.f32 1.0, %v5072_v57 }
 0x327   : > { %5083 = vtanh.f32 %v2144_v3  ;;  %v2051_v44 = vmul.f32 %v2019_v58, %v6325_v24  ;;  %v2020_v47 = vmul.f32 %v6335_v55, %v6335_v55  ;;  %v5076_v32 = vpop.eup %5075  ;;  %v2206_v5 = vadd.f32 1.0, %v5074_v29 }
 0x328   : > { %v2085_v34 = vmul.f32 0.044715, %v2053_v22  ;;  %v2054_v17 = vmul.f32 %v2022_v23, %v6330_v60  ;;  %v6344_v21 = vmul.f32 0.5, %v2205_v43  ;;  %v2204_v42 = vadd.f32 1.0, %v5076_v32 }
 0x329   : > { %v2083_v8 = vmul.f32 0.044715, %v2051_v44  ;;  %v2052_v19 = vmul.f32 %v2020_v47, %v6335_v55  ;;  %v4694_v59 = vpop.f32.mrb[48].mxu1  ;;  %v6347_v13 = vmul.f32 0.5, %v2203_v52  ;;  %v6353_v38 = vmul.f32 0.5, %v2206_v5 }
 0x32a   : > { %v2117_v39 = vadd.f32 %v2085_v34, %v6322_v46  ;;  %v2086_v11 = vmul.f32 0.044715, %v2054_v17  ;;  %v6351_v26 = vadd.f32 %v4694_v59, %v6253_v4  ;;  %v1944_v1 = vpop.f32.mrb[49].mxu1  ;;  %v6359_v45 = vmul.f32 0.5, %v2204_v42 }
 0x32b   : > { %v2115_v37 = vadd.f32 %v2083_v8, %v6325_v24  ;;  %v2084_v50 = vmul.f32 0.044715, %v2052_v19  ;;  %v6357_v18 = vadd.f32 %v6253_v4, %v1944_v1  ;;  %v4695_v48 = vpop.f32.mrb[50].mxu1 }
 0x32c   : > { %v2149_v0 = vmul.f32 0.7978846, %v2117_v39  ;;  %v2118_v7 = vadd.f32 %v2086_v11, %v6330_v60  ;;  %v2025_v49 = vmul.f32 %v6351_v26, %v6351_v26  ;;  %v6365_v40 = vadd.f32 %v4695_v48, %v6253_v4  ;;  %v1947_v6 = vpop.f32.mrb[51].mxu1 }
 0x32d   : > { %v5078_v35 = vpop.eup %5077  ;;  %v2147_v25 = vmul.f32 0.7978846, %v2115_v37  ;;  %v2116_v63 = vadd.f32 %v2084_v50, %v6335_v55  ;;  %v2023_v16 = vmul.f32 %v6357_v18, %v6357_v18  ;;  %v6371_v33 = vadd.f32 %v6253_v4, %v1947_v6 }
 0x32e   : > { %v2209_v28 = vadd.f32 1.0, %v5078_v35  ;;  %5085 = vtanh.f32 %v2149_v0  ;;  %v2150_v2 = vmul.f32 0.7978846, %v2118_v7  ;;  %v2057_v9 = vmul.f32 %v2025_v49, %v6351_v26 }
 0x32f   : > { %v5080_v27 = vpop.eup %5079  ;;  %5087 = vtanh.f32 %v2147_v25  ;;  %v2148_v12 = vmul.f32 0.7978846, %v2116_v63  ;;  %v2055_v3 = vmul.f32 %v2023_v16, %v6357_v18  ;;  %v2026_v30 = vmul.f32 %v6365_v40, %v6365_v40 }
 0x330   : > { %v6377_v15 = vpop.eup %5081  ;;  %v2241_v53 = vmul.f32 0.5, %v2209_v28  ;;  %v2210_v58 = vadd.f32 1.0, %v5080_v27  ;;  %5089 = vtanh.f32 %v2150_v2  ;;  %v2089_v57 = vmul.f32 0.044715, %v2057_v9 }
 0x331   : > { %v6379_v22 = vpop.eup %5083  ;;  %5091 = vtanh.f32 %v2148_v12  ;;  %v2087_v23 = vmul.f32 0.044715, %v2055_v3  ;;  %v2058_v43 = vmul.f32 %v2026_v30, %v6365_v40  ;;  %v2024_v29 = vmul.f32 %v6371_v33, %v6371_v33  ;;  %v4698_v44 = vpop.f32.mrb[52].mxu1 }
 0x332   : > { %v6385_v47 = vmul.f32 %v2241_v53, %v6291_v51  ;;  %v2242_v52 = vmul.f32 0.5, %v2210_v58  ;;  %v2121_v32 = vadd.f32 %v2089_v57, %v6351_v26  ;;  %v6389_v34 = vadd.f32 %v4698_v44, %v6253_v4  ;;  %v1960_v17 = vpop.f32.mrb[53].mxu1 }
 0x333   : > { %v2119_v5 = vadd.f32 %v2087_v23, %v6357_v18  ;;  %v2090_v8 = vmul.f32 0.044715, %v2058_v43  ;;  %v2056_v19 = vmul.f32 %v2024_v29, %v6371_v33  ;;  %v6394_v59 = vadd.f32 %v6253_v4, %v1960_v17  ;;  %v4699_v42 = vpop.f32.mrb[54].mxu1 }
 0x334   : > { %v6397_v39 = vmul.f32 %v2242_v52, %v6301_v10  ;;  %v2153_v51 = vmul.f32 0.7978846, %v2121_v32  ;;  %v2029_v11 = vmul.f32 %v6389_v34, %v6389_v34  ;;  %v6402_v1 = vadd.f32 %v4699_v42, %v6253_v4  ;;  %v1963_v37 = vpop.f32.mrb[55].mxu1 }
 0x335   : > { %v2151_v50 = vmul.f32 0.7978846, %v2119_v5  ;;  %v2122_v48 = vadd.f32 %v2090_v8, %v6365_v40  ;;  %v2088_v0 = vmul.f32 0.044715, %v2056_v19  ;;  %v2027_v7 = vmul.f32 %v6394_v59, %v6394_v59 }
 0x336   : > { %v2300_v49 = vpack.c.bf16 %v6397_v39, %v6385_v47  ;;  %5093 = vtanh.f32 %v2153_v51  ;;  %v2061_v10 = vmul.f32 %v2029_v11, %v6389_v34  ;;  %v2030_v6 = vmul.f32 %v6402_v1, %v6402_v1  ;;  %v4915_v47 = vld [vmem:[%s7465_s7 + $0x10] sm:$0xff]  }
 0x337   : > { %5095 = vtanh.f32 %v2151_v50  ;;  %v2154_v35 = vmul.f32 0.7978846, %v2122_v48  ;;  %v2120_v25 = vadd.f32 %v2088_v0, %v6371_v33  ;;  %v2059_v63 = vmul.f32 %v2027_v7, %v6394_v59 }
 0x338   : > { %v6414_v16 = vpop.eup %5085  ;;  %v2093_v28 = vmul.f32 0.044715, %v2061_v10  ;;  %v2062_v2 = vmul.f32 %v2030_v6, %v6402_v1  ;;  %v6418_v9 = vadd.f32 %v6253_v4, %v1963_v37  ;;  %v2267_v27 = vmul.f32 %v6347_v13, %v6269_v56 }
 0x339   : > { %v6422_v12 = vpop.eup %5087  ;;  %5097 = vtanh.f32 %v2154_v35  ;;  %v2152_v3 = vmul.f32 0.7978846, %v2120_v25  ;;  %v2091_v30 = vmul.f32 0.044715, %v2059_v63  ;;  %v2268_v53 = vmul.f32 %v6359_v45, %v6279_v20  ;;  %v4702_v58 = vpop.f32.mrb[56].mxu1 }
 0x33a   : > { %v6426_v57 = vpop.eup %5089  ;;  %v2125_v23 = vadd.f32 %v2093_v28, %v6389_v34  ;;  %v2094_v43 = vmul.f32 0.044715, %v2062_v2  ;;  %v2028_v29 = vmul.f32 %v6418_v9, %v6418_v9  ;;  %v2269_v56 = vmul.f32 %v6344_v21, %v6266_v61  ;;  %v1976_v13 = vpop.f32.mrb[57].mxu1 }
 0x33b   : > { %v6433_v44 = vpop.eup %5091  ;;  %5099 = vtanh.f32 %v2152_v3  ;;  %v2123_v52 = vadd.f32 %v2091_v30, %v6394_v59  ;;  %v2297_v32 = vpack.c.bf16 %v2268_v53, %v2267_v27  ;;  %v2270_v20 = vmul.f32 %v6353_v38, %v6274_v36  ;;  %v4703_v45 = vpop.f32.mrb[58].mxu1 }
 0x33c   : > { %v2157_v17 = vmul.f32 0.7978846, %v2125_v23  ;;  %v2126_v5 = vadd.f32 %v2094_v43, %v6402_v1  ;;  %v2060_v8 = vmul.f32 %v2028_v29, %v6418_v9  ;;  %v6441_v19 = vadd.f32 %v4702_v58, %v6253_v4  ;;  %v1979_v61 = vpop.f32.mrb[59].mxu1 }
 0x33d   : > { %v2155_v21 = vmul.f32 0.7978846, %v2123_v52  ;;  %4728 = vmatprep.mubr.bf16.mxu0 %v2297_v32  ;;  %v2298_v42 = vpack.c.bf16 %v2270_v20, %v2269_v56  ;;  %v6444_v51 = vadd.f32 %v6253_v4, %v1976_v13  ;;  %v6447_v11 = vadd.f32 %v4703_v45, %v6253_v4 }
 0x33e   : > { %5101 = vtanh.f32 %v2157_v17  ;;  %v2092_v36 = vmul.f32 0.044715, %v2060_v8  ;;  %v2033_v38 = vmul.f32 %v6441_v19, %v6441_v19  ;;  %v2158_v37 = vmul.f32 0.7978846, %v2126_v5 }
 0x33f   : > { %4729 = vmatmul.mubr.bf16.gmra.mrb[40].mxu0 %v2298_v42  ;;  %v2031_v50 = vmul.f32 %v6444_v51, %v6444_v51  ;;  %v2034_v48 = vmul.f32 %v6447_v11, %v6447_v11  ;;  %v6456_v0 = vadd.f32 %v6253_v4, %v1979_v61  ;;  %5103 = vtanh.f32 %v2155_v21 }
 0x340   : > { %v6458_v7 = vpop.eup %5093  ;;  %v2124_v10 = vadd.f32 %v2092_v36, %v6418_v9  ;;  %v2065_v6 = vmul.f32 %v2033_v38, %v6441_v19  ;;  %v2207_v35 = vadd.f32 1.0, %v6377_v15  ;;  %v2208_v27 = vadd.f32 1.0, %v6379_v22 }
 0x341   : > { %v6463_v25 = vpop.eup %5095  ;;  %v2063_v63 = vmul.f32 %v2031_v50, %v6444_v51  ;;  %v2066_v28 = vmul.f32 %v2034_v48, %v6447_v11  ;;  %v2032_v2 = vmul.f32 %v6456_v0, %v6456_v0  ;;  %v4706_v3 = vpop.f32.mrb[60].mxu1  ;;  %5105 = vtanh.f32 %v2158_v37 }
 0x342   : > { %v2156_v30 = vmul.f32 0.7978846, %v2124_v10  ;;  %v2097_v53 = vmul.f32 0.044715, %v2065_v6  ;;  %v2239_v58 = vmul.f32 0.5, %v2207_v35  ;;  %v6471_v23 = vadd.f32 %v4706_v3, %v6253_v4  ;;  %v1992_v43 = vpop.f32.mrb[61].mxu1 }
 0x343   : > { %v6473_v15 = vpop.eup %5097  ;;  %v2095_v29 = vmul.f32 0.044715, %v2063_v63  ;;  %v2098_v56 = vmul.f32 0.044715, %v2066_v28  ;;  %v2064_v13 = vmul.f32 %v2032_v2, %v6456_v0  ;;  %v2240_v52 = vmul.f32 0.5, %v2208_v27  ;;  %v4707_v32 = vpop.f32.mrb[62].mxu1 }
 0x344   : > { %v2129_v20 = vadd.f32 %v2097_v53, %v6441_v19  ;;  %v2271_v22 = vmul.f32 %v2239_v58, %v6295_v31  ;;  %v2037_v45 = vmul.f32 %v6471_v23, %v6471_v23  ;;  %v1995_v17 = vpop.f32.mrb[63].mxu1  ;;  %v6485_v37 = vadd.f32 %v6253_v4, %v1992_v43  ;;  %v4914_v2 = vld [vmem:[%s7465_s7 + $0x8] sm:$0xff]  }
 0x345   : > { %v5100_v5 = vpop.eup %5099  ;;  %v2127_v8 = vadd.f32 %v2095_v29, %v6444_v51  ;;  %v2130_v61 = vadd.f32 %v2098_v56, %v6447_v11  ;;  %v2096_v21 = vmul.f32 0.044715, %v2064_v13  ;;  %v2272_v42 = vmul.f32 %v2240_v52, %v6307_v62 }
 0x346   : > { %v2161_v36 = vmul.f32 0.7978846, %v2129_v20  ;;  %v2069_v38 = vmul.f32 %v2037_v45, %v6471_v23  ;;  %v6488_v31 = vadd.f32 %v4707_v32, %v6253_v4  ;;  %5107 = vtanh.f32 %v2156_v30 }
 0x347   : > { %v2159_v50 = vmul.f32 0.7978846, %v2127_v8  ;;  %v2128_v48 = vadd.f32 %v2096_v21, %v6456_v0  ;;  %v2299_v10 = vpack.c.bf16 %v2272_v42, %v2271_v22  ;;  %v2162_v35 = vmul.f32 0.7978846, %v2130_v61 }
 0x348   : > { %v6491_v6 = vpop.eup %5101  ;;  %v2101_v63 = vmul.f32 0.044715, %v2069_v38  ;;  %v2035_v62 = vmul.f32 %v6485_v37, %v6485_v37  ;;  %v2038_v28 = vmul.f32 %v6488_v31, %v6488_v31  ;;  %5109 = vtanh.f32 %v2161_v36 }
 0x349   : > { %v2160_v27 = vmul.f32 0.7978846, %v2128_v48  ;;  %4732 = vmatprep.mubr.bf16.mxu1 %v2299_v10  ;;  %v6501_v3 = vadd.f32 %v6253_v4, %v1995_v17  ;;  %v2211_v30 = vadd.f32 1.0, %v6422_v12  ;;  %v5104_v53 = vpop.eup %5103  ;;  %5111 = vtanh.f32 %v2159_v50 }
 0x34a   : > { %4733 = vmatmul.mubr.bf16.vlgmr.msra.gmra.mrb[64].mxu1 %v2300_v49  ;;  %v2133_v58 = vadd.f32 %v2101_v63, %v6471_v23  ;;  %v2067_v43 = vmul.f32 %v2035_v62, %v6485_v37  ;;  %v2070_v29 = vmul.f32 %v2038_v28, %v6488_v31  ;;  %v2212_v4 = vadd.f32 1.0, %v6433_v44 }
 0x34b   : > { %5113 = vtanh.f32 %v2160_v27  ;;  %v2036_v56 = vmul.f32 %v6501_v3, %v6501_v3  ;;  %v2243_v13 = vmul.f32 0.5, %v2211_v30  ;;  %4757 = vmatpush3.bf16.msra.mxu1 %v6258_v14  ;;  %v2213_v22 = vadd.f32 1.0, %v6414_v16  ;;  %v5106_v44 = vpop.eup %5105 }
 0x34c   : > { %5115 = vtanh.f32 %v2162_v35  ;;  %v2165_v39 = vmul.f32 0.7978846, %v2133_v58  ;;  %v2099_v49 = vmul.f32 0.044715, %v2067_v43  ;;  %v2102_v12 = vmul.f32 0.044715, %v2070_v29  ;;  %4758 = vmatprep.subr.bf16.mxu1 %v4914_v2 }
 0x34d   : > { %v2068_v52 = vmul.f32 %v2036_v56, %v6501_v3  ;;  %v2244_v32 = vmul.f32 0.5, %v2212_v4  ;;  %v2275_v20 = vmul.f32 %v2243_v13, %v6325_v24  ;;  %v2214_v17 = vadd.f32 1.0, %v6426_v57 }
 0x34e   : > { %5117 = vtanh.f32 %v2165_v39  ;;  %v2131_v14 = vadd.f32 %v2099_v49, %v6485_v37  ;;  %v2134_v45 = vadd.f32 %v2102_v12, %v6488_v31  ;;  %v2245_v21 = vmul.f32 0.5, %v2213_v22 }
 0x34f   : > { %v2100_v8 = vmul.f32 0.044715, %v2068_v52  ;;  %v2276_v61 = vmul.f32 %v2244_v32, %v6335_v55  ;;  %v2215_v42 = vadd.f32 1.0, %v6463_v25  ;;  %4759 = vmatpush3.bf16.msra.mxu1 %v4914_v2  ;;  %v2246_v24 = vmul.f32 0.5, %v2214_v17 }
 0x350   : > { %v2163_v36 = vmul.f32 0.7978846, %v2131_v14  ;;  %v2166_v38 = vmul.f32 0.7978846, %v2134_v45  ;;  %v2216_v50 = vadd.f32 1.0, %v5100_v5  ;;  %4760 = vmatprep.subr.bf16.mxu1 %v4915_v47  ;;  %v5108_v16 = vpop.eup %5107  ;;  %v2277_v35 = vmul.f32 %v2245_v21, %v6322_v46 }
 0x351   : > { %v2132_v48 = vadd.f32 %v2100_v8, %v6501_v3  ;;  %v2301_v10 = vpack.c.bf16 %v2276_v61, %v2275_v20  ;;  %v2247_v63 = vmul.f32 0.5, %v2215_v42  ;;  %v2278_v57 = vmul.f32 %v2246_v24, %v6330_v60 }
 0x352   : > { %5119 = vtanh.f32 %v2163_v36  ;;  %v2248_v55 = vmul.f32 0.5, %v2216_v50  ;;  %v2217_v62 = vadd.f32 1.0, %v6458_v7  ;;  %v5110_v25 = vpop.eup %5109  ;;  %v2218_v2 = vadd.f32 1.0, %v6473_v15 }
 0x353   : > { %5121 = vtanh.f32 %v2166_v38  ;;  %v2164_v28 = vmul.f32 0.7978846, %v2132_v48  ;;  %4736 = vmatprep.mubr.bf16.mxu1 %v2301_v10  ;;  %v2279_v5 = vmul.f32 %v2247_v63, %v6357_v18  ;;  %4761 = vmatpush3.bf16.msra.mxu1 %v4915_v47  ;;  %v5112_v27 = vpop.eup %5111  ;;  %v2302_v30 = vpack.c.bf16 %v2278_v57, %v2277_v35 }
 0x354   : > { %v2280_v46 = vmul.f32 %v2248_v55, %v6371_v33  ;;  %v2249_v58 = vmul.f32 0.5, %v2217_v62  ;;  %v2219_v43 = vadd.f32 1.0, %v5104_v53  ;;  %v2250_v60 = vmul.f32 0.5, %v2218_v2  ;;  %v4916_v2 = vld [vmem:[%s7465_s7 + $0x18] sm:$0xff]  }
 0x355   : > { %v5114_v29 = vpop.eup %5113  ;;  %5123 = vtanh.f32 %v2164_v28  ;;  %v2220_v56 = vadd.f32 1.0, %v5108_v16  ;;  %v2221_v7 = vadd.f32 1.0, %v6491_v6  ;;  %4737 = vmatmul.mubr.bf16.gmra.mrb[68].mxu1 %v2302_v30  ;;  %v2222_v15 = vadd.f32 1.0, %v5106_v44  ;;  %4762 = vmatprep.subr.bf16.mxu1 %v4916_v2 }
 0x356   : > { %v5116_v4 = vpop.eup %5115  ;;  %v2303_v13 = vpack.c.bf16 %v2280_v46, %v2279_v5  ;;  %v2281_v18 = vmul.f32 %v2249_v58, %v6351_v26  ;;  %v2251_v39 = vmul.f32 0.5, %v2219_v43  ;;  %v2282_v47 = vmul.f32 %v2250_v60, %v6365_v40 }
 0x357   : > { %v2252_v49 = vmul.f32 0.5, %v2220_v56  ;;  %v2253_v12 = vmul.f32 0.5, %v2221_v7  ;;  %v2223_v33 = vadd.f32 1.0, %v5112_v27  ;;  %v2254_v32 = vmul.f32 0.5, %v2222_v15  ;;  %4763 = vmatpush3.bf16.msra.mxu1 %v4916_v2  ;;  %v6565_v27 = vld [vmem:[%s7464_s6 + $0x2] ss:$0 sm:$0xff] }
 0x358   : > { %v5118_v52 = vpop.eup %5117  ;;  %4740 = vmatprep.mubr.bf16.mxu1 %v2303_v13  ;;  %v2283_v53 = vmul.f32 %v2251_v39, %v6394_v59  ;;  %v2224_v20 = vadd.f32 1.0, %v5114_v29  ;;  %v2225_v22 = vadd.f32 1.0, %v5110_v25  ;;  %v2304_v6 = vpack.c.bf16 %v2282_v47, %v2281_v18 }
 0x359   : > { %v2284_v14 = vmul.f32 %v2252_v49, %v6418_v9  ;;  %v2285_v45 = vmul.f32 %v2253_v12, %v6389_v34  ;;  %v2255_v26 = vmul.f32 0.5, %v2223_v33  ;;  %v2286_v44 = vmul.f32 %v2254_v32, %v6402_v1 }
 0x35a   : > { %v2256_v17 = vmul.f32 0.5, %v2224_v20  ;;  %v2226_v40 = vadd.f32 1.0, %v5116_v4  ;;  %v2257_v8 = vmul.f32 0.5, %v2225_v22  ;;  %v2229_v21 = vadd.f32 1.0, %v5118_v52 }
 0x35b   : > { %v2305_v61 = vpack.c.bf16 %v2284_v14, %v2283_v53  ;;  %v2306_v36 = vpack.c.bf16 %v2286_v44, %v2285_v45  ;;  %v2287_v59 = vmul.f32 %v2255_v26, %v6444_v51 }
 0x35c   : > { %v5120_v42 = vpop.eup %5119  ;;  %v2288_v38 = vmul.f32 %v2256_v17, %v6456_v0  ;;  %v2258_v24 = vmul.f32 0.5, %v2226_v40  ;;  %v2289_v9 = vmul.f32 %v2257_v8, %v6441_v19  ;;  %v2261_v10 = vmul.f32 0.5, %v2229_v21 }
 0x35d   : > { %v5122_v50 = vpop.eup %5121  ;;  %v2227_v16 = vadd.f32 1.0, %v5120_v42  ;;  %4741 = vmatmul.mubr.bf16.gmra.mrb[72].mxu1 %v2304_v6 }
 0x35e   : > { %v2307_v34 = vpack.c.bf16 %v2288_v38, %v2287_v59  ;;  %v2290_v1 = vmul.f32 %v2258_v24, %v6447_v11  ;;  %v2230_v48 = vadd.f32 1.0, %v5122_v50  ;;  %4744 = vmatprep.mubr.bf16.mxu1 %v2305_v61  ;;  %v2293_v0 = vmul.f32 %v2261_v10, %v6471_v23  ;;  %v4917_v23 = vld [vmem:[%s7465_s7 + $0x20] sm:$0xff]  }
 0x35f   : > { %v5124_v35 = vpop.eup %5123  ;;  %v2259_v55 = vmul.f32 0.5, %v2227_v16  ;;  %4764 = vmatprep.subr.bf16.mxu1 %v4917_v23 }
 0x360   : > { %v2308_v63 = vpack.c.bf16 %v2290_v1, %v2289_v9  ;;  %v2228_v57 = vadd.f32 1.0, %v5124_v35  ;;  %v2262_v62 = vmul.f32 0.5, %v2230_v48  ;;  %4765 = vmatpush3.bf16.msra.mxu1 %v4917_v23 }
 0x361   : > { %v2291_v19 = vmul.f32 %v2259_v55, %v6485_v37  ;;  %v4918_v37 = vld [vmem:[%s7465_s7 + $0x28] sm:$0xff]  }
 0x362   : > { %v2260_v51 = vmul.f32 0.5, %v2228_v57  ;;  %v2294_v25 = vmul.f32 %v2262_v62, %v6488_v31  ;;  %4766 = vmatprep.subr.bf16.mxu1 %v4918_v37  ;;  %v4919_v31 = vld [vmem:[%s7465_s7 + $0x30] sm:$0xff]  }
 0x364   : > { %v2292_v28 = vmul.f32 %v2260_v51, %v6501_v3  ;;  %v2310_v5 = vpack.c.bf16 %v2294_v25, %v2293_v0  ;;  %4767 = vmatpush3.bf16.msra.mxu1 %v4918_v37  ;;  %v4920_v3 = vld [vmem:[%s7465_s7 + $0x38] sm:$0xff]  }
 0x365   : > { %4745 = vmatmul.mubr.bf16.gmra.mrb[76].mxu1 %v2306_v36  ;;  %4768 = vmatprep.subr.bf16.mxu1 %v4919_v31 }
 0x366   : > { %v2309_v11 = vpack.c.bf16 %v2292_v28, %v2291_v19  ;;  %4748 = vmatprep.mubr.bf16.mxu1 %v2307_v34 }
 0x368   : > { %4769 = vmatpush3.bf16.msra.mxu1 %v4919_v31 }
 0x369   : > { %4770 = vmatprep.subr.bf16.mxu1 %v4920_v3 }
 0x36c   : > { %4771 = vmatpush3.bf16.msra.mxu1 %v4920_v3 }
 0x36d   : > { %4749 = vmatmul.mubr.bf16.gmra.mrb[80].mxu1 %v2308_v63 }
 0x36e   : > { %4752 = vmatprep.mubr.bf16.mxu1 %v2309_v11 }
 0x375   : > { %4753 = vmatmul.mubr.bf16.gmra.mrb[84].mxu1 %v2310_v5 }
 0x3ec   : > { %v4726_v30 = vpop.f32.mrb[36].mxu0 }
 0x3ed   : > { %v2427_v46 = vadd.f32 %v4726_v30, %v6565_v27  ;;  %v2418_v58 = vpop.f32.mrb[37].mxu0 }
 0x3ee   : > { %v2419_v43 = vadd.f32 %v6565_v27, %v2418_v58  ;;  %v4727_v29 = vpop.f32.mrb[38].mxu0 }
 0x3ef   : > { %v2547_v60 = vmul.f32 %v2427_v46, %v2427_v46  ;;  %v2430_v56 = vadd.f32 %v4727_v29, %v6565_v27  ;;  %v2421_v7 = vpop.f32.mrb[39].mxu0 }
 0x3f0   : > { %v2545_v4 = vmul.f32 %v2419_v43, %v2419_v43  ;;  %v2422_v13 = vadd.f32 %v6565_v27, %v2421_v7 }
 0x3f1   : > { %v2579_v18 = vmul.f32 %v2547_v60, %v2427_v46  ;;  %v2548_v39 = vmul.f32 %v2430_v56, %v2430_v56 }
 0x3f2   : > { %v2577_v15 = vmul.f32 %v2545_v4, %v2419_v43  ;;  %v2546_v47 = vmul.f32 %v2422_v13, %v2422_v13 }
 0x3f3   : > { %v2611_v49 = vmul.f32 0.044715, %v2579_v18  ;;  %v2580_v12 = vmul.f32 %v2548_v39, %v2430_v56 }
 0x3f4   : > { %v2609_v33 = vmul.f32 0.044715, %v2577_v15  ;;  %v2578_v52 = vmul.f32 %v2546_v47, %v2422_v13 }
 0x3f5   : > { %v2643_v53 = vadd.f32 %v2611_v49, %v2427_v46  ;;  %v2612_v32 = vmul.f32 0.044715, %v2580_v12 }
 0x3f6   : > { %v2641_v20 = vadd.f32 %v2609_v33, %v2419_v43  ;;  %v2610_v22 = vmul.f32 0.044715, %v2578_v52 }
 0x3f7   : > { %v2675_v6 = vmul.f32 0.7978846, %v2643_v53  ;;  %v2644_v14 = vadd.f32 %v2612_v32, %v2430_v56 }
 0x3f8   : > { %v2673_v45 = vmul.f32 0.7978846, %v2641_v20  ;;  %v2642_v26 = vadd.f32 %v2610_v22, %v2422_v13 }
 0x3f9   : > { %5125 = vtanh.f32 %v2675_v6  ;;  %v2676_v44 = vmul.f32 0.7978846, %v2644_v14 }
 0x3fa   : > { %5127 = vtanh.f32 %v2673_v45  ;;  %v2674_v17 = vmul.f32 0.7978846, %v2642_v26 }
 0x3fb   : > { %5129 = vtanh.f32 %v2676_v44 }
 0x3fc   : > { %5131 = vtanh.f32 %v2674_v17 }
 0x403   : > { %v5126_v40 = vpop.eup %5125 }
 0x404   : > { %v5128_v8 = vpop.eup %5127  ;;  %v2739_v61 = vadd.f32 1.0, %v5126_v40 }
 0x405   : > { %v5130_v21 = vpop.eup %5129  ;;  %v2737_v42 = vadd.f32 1.0, %v5128_v8 }
 0x406   : > { %v5132_v36 = vpop.eup %5131  ;;  %v2771_v59 = vmul.f32 0.5, %v2739_v61  ;;  %v2740_v38 = vadd.f32 1.0, %v5130_v21 }
 0x407   : > { %v2738_v24 = vadd.f32 1.0, %v5132_v36  ;;  %v2769_v50 = vmul.f32 0.5, %v2737_v42 }
 0x408   : > { %v2772_v9 = vmul.f32 0.5, %v2740_v38  ;;  %v2803_v34 = vmul.f32 %v2771_v59, %v2427_v46 }
 0x409   : > { %v2770_v16 = vmul.f32 0.5, %v2738_v24  ;;  %v2801_v48 = vmul.f32 %v2769_v50, %v2419_v43 }
 0x40a   : > { %v2804_v1 = vmul.f32 %v2772_v9, %v2430_v56 }
 0x40b   : > { %v2802_v10 = vmul.f32 %v2770_v16, %v2422_v13 }
 0x40c   : > { %v2834_v35 = vpack.c.bf16 %v2804_v1, %v2803_v34 }
 0x40d   : > { %v2833_v63 = vpack.c.bf16 %v2802_v10, %v2801_v48 }
 0x40f   : > { %4772 = vmatprep.mubr.bf16.mxu1 %v2833_v63 }
 0x410   : > { %4773 = vmatmul.mubr.bf16.vlgmr.msra.gmra.mrb[88].mxu1 %v2834_v35 }
 0x412   : > { %v4730_v57 = vpop.f32.mrb[40].mxu0 }
 0x413   : > { %v6572_v55 = vadd.f32 %v4730_v57, %v6565_v27  ;;  %v2434_v62 = vpop.f32.mrb[41].mxu0 }
 0x414   : > { %v6575_v51 = vadd.f32 %v6565_v27, %v2434_v62  ;;  %v4731_v0 = vpop.f32.mrb[42].mxu0 }
 0x415   : > { %v2551_v25 = vmul.f32 %v6572_v55, %v6572_v55  ;;  %v6580_v19 = vadd.f32 %v4731_v0, %v6565_v27  ;;  %v2437_v28 = vpop.f32.mrb[43].mxu0 }
 0x416   : > { %v2549_v5 = vmul.f32 %v6575_v51, %v6575_v51  ;;  %v6585_v11 = vadd.f32 %v6565_v27, %v2437_v28 }
 0x417   : > { %v2583_v2 = vmul.f32 %v2551_v25, %v6572_v55  ;;  %v2552_v23 = vmul.f32 %v6580_v19, %v6580_v19 }
 0x418   : > { %v2581_v37 = vmul.f32 %v2549_v5, %v6575_v51  ;;  %v2550_v31 = vmul.f32 %v6585_v11, %v6585_v11 }
 0x419   : > { %v2615_v3 = vmul.f32 0.044715, %v2583_v2  ;;  %v2584_v30 = vmul.f32 %v2552_v23, %v6580_v19 }
 0x41a   : > { %v2613_v46 = vmul.f32 0.044715, %v2581_v37  ;;  %v2582_v58 = vmul.f32 %v2550_v31, %v6585_v11 }
 0x41b   : > { %v2647_v43 = vadd.f32 %v2615_v3, %v6572_v55  ;;  %v2616_v29 = vmul.f32 0.044715, %v2584_v30 }
 0x41c   : > { %v2645_v60 = vadd.f32 %v2613_v46, %v6575_v51  ;;  %v2614_v56 = vmul.f32 0.044715, %v2582_v58 }
 0x41d   : > { %v2679_v7 = vmul.f32 0.7978846, %v2647_v43  ;;  %v2648_v4 = vadd.f32 %v2616_v29, %v6580_v19  ;;  %v4734_v13 = vpop.f32.mrb[64].mxu1 }
 0x41e   : > { %v2677_v18 = vmul.f32 0.7978846, %v2645_v60  ;;  %v2646_v39 = vadd.f32 %v2614_v56, %v6585_v11  ;;  %v6600_v15 = vadd.f32 %v4734_v13, %v6565_v27  ;;  %v2450_v47 = vpop.f32.mrb[65].mxu1 }
 0x41f   : > { %5133 = vtanh.f32 %v2679_v7  ;;  %v2680_v49 = vmul.f32 0.7978846, %v2648_v4  ;;  %v6603_v12 = vadd.f32 %v6565_v27, %v2450_v47  ;;  %v4735_v33 = vpop.f32.mrb[66].mxu1 }
 0x420   : > { %5135 = vtanh.f32 %v2677_v18  ;;  %v2678_v52 = vmul.f32 0.7978846, %v2646_v39  ;;  %v2555_v53 = vmul.f32 %v6600_v15, %v6600_v15  ;;  %v6608_v32 = vadd.f32 %v4735_v33, %v6565_v27  ;;  %v2453_v20 = vpop.f32.mrb[67].mxu1 }
 0x421   : > { %5137 = vtanh.f32 %v2680_v49  ;;  %v2553_v22 = vmul.f32 %v6603_v12, %v6603_v12  ;;  %v6613_v6 = vadd.f32 %v6565_v27, %v2453_v20 }
 0x422   : > { %5139 = vtanh.f32 %v2678_v52  ;;  %v2587_v14 = vmul.f32 %v2555_v53, %v6600_v15  ;;  %v2556_v45 = vmul.f32 %v6608_v32, %v6608_v32 }
 0x423   : > { %v2585_v26 = vmul.f32 %v2553_v22, %v6603_v12  ;;  %v2554_v44 = vmul.f32 %v6613_v6, %v6613_v6 }
 0x424   : > { %v2619_v17 = vmul.f32 0.044715, %v2587_v14  ;;  %v2588_v40 = vmul.f32 %v2556_v45, %v6608_v32 }
 0x425   : > { %v2617_v8 = vmul.f32 0.044715, %v2585_v26  ;;  %v2586_v61 = vmul.f32 %v2554_v44, %v6613_v6 }
 0x426   : > { %v2651_v21 = vadd.f32 %v2619_v17, %v6600_v15  ;;  %v2620_v42 = vmul.f32 0.044715, %v2588_v40 }
 0x427   : > { %v2649_v36 = vadd.f32 %v2617_v8, %v6603_v12  ;;  %v2618_v59 = vmul.f32 0.044715, %v2586_v61 }
 0x428   : > { %v2683_v38 = vmul.f32 0.7978846, %v2651_v21  ;;  %v2652_v24 = vadd.f32 %v2620_v42, %v6608_v32  ;;  %v4738_v34 = vpop.f32.mrb[68].mxu1 }
 0x429   : > { %v5134_v50 = vpop.eup %5133  ;;  %v2681_v9 = vmul.f32 0.7978846, %v2649_v36  ;;  %v2650_v16 = vadd.f32 %v2618_v59, %v6613_v6  ;;  %v6628_v48 = vadd.f32 %v4738_v34, %v6565_v27  ;;  %v2466_v10 = vpop.f32.mrb[69].mxu1 }
 0x42a   : > { %v5136_v1 = vpop.eup %5135  ;;  %5141 = vtanh.f32 %v2683_v38  ;;  %v2743_v35 = vadd.f32 1.0, %v5134_v50  ;;  %v2684_v57 = vmul.f32 0.7978846, %v2652_v24  ;;  %v6631_v0 = vadd.f32 %v6565_v27, %v2466_v10  ;;  %v4739_v25 = vpop.f32.mrb[70].mxu1 }
 0x42b   : > { %v5138_v63 = vpop.eup %5137  ;;  %v2682_v62 = vmul.f32 0.7978846, %v2650_v16  ;;  %v2741_v28 = vadd.f32 1.0, %v5136_v1  ;;  %5143 = vtanh.f32 %v2681_v9  ;;  %v2559_v2 = vmul.f32 %v6628_v48, %v6628_v48  ;;  %v2469_v37 = vpop.f32.mrb[71].mxu1 }
 0x42c   : > { %v5140_v5 = vpop.eup %5139  ;;  %v6636_v23 = vadd.f32 %v4739_v25, %v6565_v27  ;;  %v2744_v31 = vadd.f32 1.0, %v5138_v63  ;;  %v2557_v3 = vmul.f32 %v6631_v0, %v6631_v0  ;;  %v6641_v30 = vadd.f32 %v6565_v27, %v2469_v37 }
 0x42d   : > { %5145 = vtanh.f32 %v2682_v62  ;;  %v2742_v46 = vadd.f32 1.0, %v5140_v5  ;;  %v2591_v58 = vmul.f32 %v2559_v2, %v6628_v48  ;;  %v2773_v29 = vmul.f32 0.5, %v2741_v28 }
 0x42e   : > { %v2560_v43 = vmul.f32 %v6636_v23, %v6636_v23  ;;  %v2775_v60 = vmul.f32 0.5, %v2743_v35  ;;  %v2589_v56 = vmul.f32 %v2557_v3, %v6631_v0  ;;  %v2558_v7 = vmul.f32 %v6641_v30, %v6641_v30 }
 0x42f   : > { %v2774_v4 = vmul.f32 0.5, %v2742_v46  ;;  %v2776_v13 = vmul.f32 0.5, %v2744_v31  ;;  %5147 = vtanh.f32 %v2684_v57  ;;  %v2623_v18 = vmul.f32 0.044715, %v2591_v58 }
 0x430   : > { %v2592_v39 = vmul.f32 %v2560_v43, %v6636_v23  ;;  %v2805_v47 = vmul.f32 %v2773_v29, %v6575_v51  ;;  %v2621_v49 = vmul.f32 0.044715, %v2589_v56  ;;  %v2590_v33 = vmul.f32 %v2558_v7, %v6641_v30  ;;  %v4742_v52 = vpop.f32.mrb[72].mxu1 }
 0x431   : > { %v2806_v53 = vmul.f32 %v2774_v4, %v6585_v11  ;;  %v2807_v20 = vmul.f32 %v2775_v60, %v6572_v55  ;;  %v2655_v22 = vadd.f32 %v2623_v18, %v6628_v48  ;;  %v6656_v45 = vadd.f32 %v4742_v52, %v6565_v27  ;;  %v2482_v26 = vpop.f32.mrb[73].mxu1 }
 0x432   : > { %v2624_v14 = vmul.f32 0.044715, %v2592_v39  ;;  %v2808_v44 = vmul.f32 %v2776_v13, %v6580_v19  ;;  %v2653_v17 = vadd.f32 %v2621_v49, %v6631_v0  ;;  %v2622_v51 = vmul.f32 0.044715, %v2590_v33  ;;  %v4743_v8 = vpop.f32.mrb[74].mxu1 }
 0x433   : > { %v6661_v40 = vadd.f32 %v6565_v27, %v2482_v26  ;;  %v2835_v61 = vpack.c.bf16 %v2806_v53, %v2805_v47  ;;  %v2687_v55 = vmul.f32 0.7978846, %v2655_v22  ;;  %v2563_v42 = vmul.f32 %v6656_v45, %v6656_v45  ;;  %v2485_v19 = vpop.f32.mrb[75].mxu1 }
 0x434   : > { %v6663_v11 = vpop.eup %5141  ;;  %v2656_v21 = vadd.f32 %v2624_v14, %v6636_v23  ;;  %v6669_v36 = vadd.f32 %v4743_v8, %v6565_v27  ;;  %v2685_v59 = vmul.f32 0.7978846, %v2653_v17  ;;  %v2654_v38 = vadd.f32 %v2622_v51, %v6641_v30 }
 0x435   : > { %v2561_v24 = vmul.f32 %v6661_v40, %v6661_v40  ;;  %v6675_v50 = vadd.f32 %v6565_v27, %v2485_v19  ;;  %4776 = vmatprep.mubr.bf16.mxu1 %v2835_v61  ;;  %v5144_v9 = vpop.eup %5143  ;;  %5149 = vtanh.f32 %v2687_v55  ;;  %v2595_v34 = vmul.f32 %v2563_v42, %v6656_v45 }
 0x436   : > { %v2688_v16 = vmul.f32 0.7978846, %v2656_v21  ;;  %v2564_v1 = vmul.f32 %v6669_v36, %v6669_v36  ;;  %5151 = vtanh.f32 %v2685_v59  ;;  %v2686_v35 = vmul.f32 0.7978846, %v2654_v38 }
 0x437   : > { %v5146_v10 = vpop.eup %5145  ;;  %v2593_v63 = vmul.f32 %v2561_v24, %v6661_v40  ;;  %v2562_v57 = vmul.f32 %v6675_v50, %v6675_v50  ;;  %v2627_v62 = vmul.f32 0.044715, %v2595_v34  ;;  %v2836_v28 = vpack.c.bf16 %v2808_v44, %v2807_v20 }
 0x438   : > { %5153 = vtanh.f32 %v2688_v16  ;;  %v2596_v25 = vmul.f32 %v2564_v1, %v6669_v36  ;;  %v4746_v37 = vpop.f32.mrb[76].mxu1  ;;  %v2745_v31 = vadd.f32 1.0, %v5144_v9  ;;  %v2746_v60 = vadd.f32 1.0, %v5146_v10 }
 0x439   : > { %5155 = vtanh.f32 %v2686_v35  ;;  %v2625_v5 = vmul.f32 0.044715, %v2593_v63  ;;  %v2594_v2 = vmul.f32 %v2562_v57, %v6675_v50  ;;  %v6685_v3 = vpop.eup %5147  ;;  %v2659_v46 = vadd.f32 %v2627_v62, %v6656_v45  ;;  %v2498_v29 = vpop.f32.mrb[77].mxu1  ;;  %4777 = vmatmul.mubr.bf16.gmra.mrb[92].mxu1 %v2836_v28 }
 0x43a   : > { %v2628_v58 = vmul.f32 0.044715, %v2596_v25  ;;  %v6689_v43 = vadd.f32 %v4746_v37, %v6565_v27  ;;  %v6693_v4 = vadd.f32 %v6565_v27, %v2498_v29  ;;  %v4747_v13 = vpop.f32.mrb[78].mxu1  ;;  %v2777_v18 = vmul.f32 0.5, %v2745_v31 }
 0x43b   : > { %v2657_v56 = vadd.f32 %v2625_v5, %v6661_v40  ;;  %v2626_v7 = vmul.f32 0.044715, %v2594_v2  ;;  %v2691_v39 = vmul.f32 0.7978846, %v2659_v46  ;;  %v6699_v33 = vadd.f32 %v4747_v13, %v6565_v27  ;;  %v2501_v52 = vpop.f32.mrb[79].mxu1 }
 0x43c   : > { %v2660_v47 = vadd.f32 %v2628_v58, %v6669_v36  ;;  %v2567_v49 = vmul.f32 %v6689_v43, %v6689_v43  ;;  %v2565_v22 = vmul.f32 %v6693_v4, %v6693_v4  ;;  %v6705_v14 = vadd.f32 %v6565_v27, %v2501_v52 }
 0x43d   : > { %v2689_v53 = vmul.f32 0.7978846, %v2657_v56  ;;  %v2658_v20 = vadd.f32 %v2626_v7, %v6675_v50  ;;  %5157 = vtanh.f32 %v2691_v39  ;;  %v2568_v17 = vmul.f32 %v6699_v33, %v6699_v33 }
 0x43e   : > { %v2692_v26 = vmul.f32 0.7978846, %v2660_v47  ;;  %v2599_v44 = vmul.f32 %v2567_v49, %v6689_v43  ;;  %v2597_v8 = vmul.f32 %v2565_v22, %v6693_v4  ;;  %v2566_v61 = vmul.f32 %v6705_v14, %v6705_v14 }
 0x43f   : > { %5159 = vtanh.f32 %v2689_v53  ;;  %v2690_v51 = vmul.f32 0.7978846, %v2658_v20  ;;  %v6713_v55 = vpop.eup %5149  ;;  %v2600_v42 = vmul.f32 %v2568_v17, %v6699_v33  ;;  %v2778_v19 = vmul.f32 0.5, %v2746_v60 }
 0x440   : > { %5161 = vtanh.f32 %v2692_v26  ;;  %v2631_v21 = vmul.f32 0.044715, %v2599_v44  ;;  %v6716_v59 = vpop.eup %5151  ;;  %v2629_v38 = vmul.f32 0.044715, %v2597_v8  ;;  %v2598_v24 = vmul.f32 %v2566_v61, %v6705_v14  ;;  %v4750_v9 = vpop.f32.mrb[80].mxu1 }
 0x441   : > { %5163 = vtanh.f32 %v2690_v51  ;;  %v2809_v16 = vmul.f32 %v2777_v18, %v6603_v12  ;;  %v2632_v10 = vmul.f32 0.044715, %v2600_v42  ;;  %v6724_v35 = vadd.f32 %v4750_v9, %v6565_v27  ;;  %v2514_v63 = vpop.f32.mrb[81].mxu1 }
 0x442   : > { %v6720_v34 = vpop.eup %5153  ;;  %v2663_v1 = vadd.f32 %v2631_v21, %v6689_v43  ;;  %v2810_v57 = vmul.f32 %v2778_v19, %v6613_v6  ;;  %v2661_v25 = vadd.f32 %v2629_v38, %v6693_v4  ;;  %v2630_v28 = vmul.f32 0.044715, %v2598_v24  ;;  %v4751_v12 = vpop.f32.mrb[82].mxu1 }
 0x443   : > { %v6727_v62 = vpop.eup %5155  ;;  %v6731_v5 = vadd.f32 %v6565_v27, %v2514_v63  ;;  %v2747_v2 = vadd.f32 1.0, %v6663_v11  ;;  %v2664_v31 = vadd.f32 %v2632_v10, %v6699_v33  ;;  %v2571_v46 = vmul.f32 %v6724_v35, %v6724_v35  ;;  %v2517_v6 = vpop.f32.mrb[83].mxu1 }
 0x444   : > { %v2695_v37 = vmul.f32 0.7978846, %v2663_v1  ;;  %v6738_v58 = vadd.f32 %v4751_v12, %v6565_v27  ;;  %v2693_v29 = vmul.f32 0.7978846, %v2661_v25  ;;  %v2662_v60 = vadd.f32 %v2630_v28, %v6705_v14 }
 0x445   : > { %v2569_v56 = vmul.f32 %v6731_v5, %v6731_v5  ;;  %v6744_v7 = vadd.f32 %v6565_v27, %v2517_v6  ;;  %v2696_v11 = vmul.f32 0.7978846, %v2664_v31  ;;  %v2603_v13 = vmul.f32 %v2571_v46, %v6724_v35 }
 0x446   : > { %5165 = vtanh.f32 %v2695_v37  ;;  %v2572_v18 = vmul.f32 %v6738_v58, %v6738_v58  ;;  %v2694_v39 = vmul.f32 0.7978846, %v2662_v60  ;;  %v2837_v22 = vpack.c.bf16 %v2810_v57, %v2809_v16 }
 0x447   : > { %5167 = vtanh.f32 %v2693_v29  ;;  %v2601_v47 = vmul.f32 %v2569_v56, %v6731_v5  ;;  %v2570_v49 = vmul.f32 %v6744_v7, %v6744_v7  ;;  %v6752_v52 = vpop.eup %5157  ;;  %v2635_v53 = vmul.f32 0.044715, %v2603_v13 }
 0x448   : > { %5169 = vtanh.f32 %v2696_v11  ;;  %v2604_v20 = vmul.f32 %v2572_v18, %v6738_v58  ;;  %v2748_v51 = vadd.f32 1.0, %v6685_v3  ;;  %v4754_v8 = vpop.f32.mrb[84].mxu1  ;;  %4780 = vmatprep.mubr.bf16.mxu1 %v2837_v22  ;;  %v2779_v19 = vmul.f32 0.5, %v2747_v2 }
 0x449   : > { %v6755_v26 = vpop.eup %5159  ;;  %5171 = vtanh.f32 %v2694_v39  ;;  %v2633_v44 = vmul.f32 0.044715, %v2601_v47  ;;  %v2602_v17 = vmul.f32 %v2570_v49, %v6744_v7  ;;  %v2667_v21 = vadd.f32 %v2635_v53, %v6724_v35  ;;  %v2530_v24 = vpop.f32.mrb[85].mxu1 }
 0x44a   : > { %v6759_v61 = vpop.eup %5161  ;;  %v2636_v42 = vmul.f32 0.044715, %v2604_v20  ;;  %v6763_v38 = vadd.f32 %v4754_v8, %v6565_v27  ;;  %v2780_v10 = vmul.f32 0.5, %v2748_v51  ;;  %v6769_v3 = vadd.f32 %v6565_v27, %v2530_v24  ;;  %v4755_v63 = vpop.f32.mrb[86].mxu1 }
 0x44b   : > { %v6765_v9 = vpop.eup %5163  ;;  %v2665_v16 = vadd.f32 %v2633_v44, %v6731_v5  ;;  %v2634_v1 = vmul.f32 0.044715, %v2602_v17  ;;  %v2699_v57 = vmul.f32 0.7978846, %v2667_v21  ;;  %v2811_v28 = vmul.f32 %v2779_v19, %v6600_v15  ;;  %v2533_v2 = vpop.f32.mrb[87].mxu1 }
 0x44c   : > { %v2668_v25 = vadd.f32 %v2636_v42, %v6738_v58  ;;  %v2575_v12 = vmul.f32 %v6763_v38, %v6763_v38  ;;  %v2812_v46 = vmul.f32 %v2780_v10, %v6608_v32  ;;  %v2573_v6 = vmul.f32 %v6769_v3, %v6769_v3 }
 0x44d   : > { %v2697_v37 = vmul.f32 0.7978846, %v2665_v16  ;;  %v2666_v31 = vadd.f32 %v2634_v1, %v6744_v7  ;;  %5173 = vtanh.f32 %v2699_v57  ;;  %v6781_v56 = vadd.f32 %v4755_v63, %v6565_v27 }
 0x44e   : > { %v2700_v29 = vmul.f32 0.7978846, %v2668_v25  ;;  %v2607_v60 = vmul.f32 %v2575_v12, %v6763_v38  ;;  %v2838_v11 = vpack.c.bf16 %v2812_v46, %v2811_v28  ;;  %v2605_v13 = vmul.f32 %v2573_v6, %v6769_v3 }
 0x44f   : > { %5175 = vtanh.f32 %v2697_v37  ;;  %v2698_v15 = vmul.f32 0.7978846, %v2666_v31  ;;  %v2576_v32 = vmul.f32 %v6781_v56, %v6781_v56  ;;  %v6787_v47 = vadd.f32 %v6565_v27, %v2533_v2 }
 0x450   : > { %v5166_v18 = vpop.eup %5165  ;;  %5177 = vtanh.f32 %v2700_v29  ;;  %v2639_v39 = vmul.f32 0.044715, %v2607_v60  ;;  %4781 = vmatmul.mubr.bf16.gmra.mrb[96].mxu1 %v2838_v11  ;;  %v2637_v53 = vmul.f32 0.044715, %v2605_v13  ;;  %v2749_v20 = vadd.f32 1.0, %v6716_v59 }
 0x451   : > { %v5168_v49 = vpop.eup %5167  ;;  %5179 = vtanh.f32 %v2698_v15  ;;  %v2750_v22 = vadd.f32 1.0, %v6727_v62  ;;  %v2608_v51 = vmul.f32 %v2576_v32, %v6781_v56  ;;  %v2574_v8 = vmul.f32 %v6787_v47, %v6787_v47 }
 0x452   : > { %v5170_v44 = vpop.eup %5169  ;;  %v2671_v17 = vadd.f32 %v2639_v39, %v6763_v38  ;;  %v2751_v21 = vadd.f32 1.0, %v6713_v55  ;;  %v2669_v42 = vadd.f32 %v2637_v53, %v6769_v3  ;;  %v2781_v19 = vmul.f32 0.5, %v2749_v20 }
 0x453   : > { %v5172_v27 = vpop.eup %5171  ;;  %v2782_v24 = vmul.f32 0.5, %v2750_v22  ;;  %v2752_v16 = vadd.f32 1.0, %v6720_v34  ;;  %v2640_v1 = vmul.f32 0.044715, %v2608_v51  ;;  %v2606_v62 = vmul.f32 %v2574_v8, %v6787_v47 }
 0x454   : > { %v2703_v59 = vmul.f32 0.7978846, %v2671_v17  ;;  %v2783_v10 = vmul.f32 0.5, %v2751_v21  ;;  %v2701_v63 = vmul.f32 0.7978846, %v2669_v42  ;;  %v2813_v57 = vmul.f32 %v2781_v19, %v6631_v0 }
 0x455   : > { %v2814_v25 = vmul.f32 %v2782_v24, %v6641_v30  ;;  %v2784_v28 = vmul.f32 0.5, %v2752_v16  ;;  %v2672_v55 = vadd.f32 %v2640_v1, %v6781_v56  ;;  %v2638_v12 = vmul.f32 0.044715, %v2606_v62 }
 0x456   : > { %5181 = vtanh.f32 %v2703_v59  ;;  %v2815_v2 = vmul.f32 %v2783_v10, %v6628_v48  ;;  %v2753_v31 = vadd.f32 1.0, %v6755_v26  ;;  %v2754_v0 = vadd.f32 1.0, %v6765_v9 }
 0x457   : > { %5183 = vtanh.f32 %v2701_v63  ;;  %v2839_v37 = vpack.c.bf16 %v2814_v25, %v2813_v57  ;;  %v2816_v34 = vmul.f32 %v2784_v28, %v6636_v23  ;;  %v5174_v46 = vpop.eup %5173  ;;  %v2704_v6 = vmul.f32 0.7978846, %v2672_v55 }
 0x458   : > { %v2670_v29 = vadd.f32 %v2638_v12, %v6787_v47  ;;  %v2755_v30 = vadd.f32 1.0, %v6752_v52  ;;  %v2785_v11 = vmul.f32 0.5, %v2753_v31  ;;  %v2756_v48 = vadd.f32 1.0, %v6759_v61 }
 0x459   : > { %v5176_v60 = vpop.eup %5175  ;;  %4784 = vmatprep.mubr.bf16.mxu1 %v2839_v37  ;;  %v2840_v15 = vpack.c.bf16 %v2816_v34, %v2815_v2  ;;  %v2757_v13 = vadd.f32 1.0, %v5168_v49  ;;  %5185 = vtanh.f32 %v2704_v6  ;;  %v2786_v32 = vmul.f32 0.5, %v2754_v0 }
 0x45a   : > { %v5178_v39 = vpop.eup %5177  ;;  %v2702_v23 = vmul.f32 0.7978846, %v2670_v29  ;;  %v2787_v26 = vmul.f32 0.5, %v2755_v30  ;;  %v2817_v20 = vmul.f32 %v2785_v11, %v6661_v40  ;;  %v2788_v22 = vmul.f32 0.5, %v2756_v48 }
 0x45b   : > { %v5180_v53 = vpop.eup %5179  ;;  %4785 = vmatmul.mubr.bf16.gmra.mrb[100].mxu1 %v2840_v15  ;;  %v2758_v9 = vadd.f32 1.0, %v5172_v27  ;;  %v2789_v17 = vmul.f32 0.5, %v2757_v13  ;;  %v2818_v52 = vmul.f32 %v2786_v32, %v6675_v50  ;;  %v2759_v8 = vadd.f32 1.0, %v5166_v18  ;;  %v6828_v13 = vld [vmem:[%s7466_s8] ss:$0 sm:$0xff] }
 0x45c   : > { %5187 = vtanh.f32 %v2702_v23  ;;  %v2819_v51 = vmul.f32 %v2787_v26, %v6656_v45  ;;  %v2820_v61 = vmul.f32 %v2788_v22, %v6669_v36  ;;  %v2760_v42 = vadd.f32 1.0, %v5170_v44 }
 0x45d   : > { %v2790_v49 = vmul.f32 0.5, %v2758_v9  ;;  %v2821_v21 = vmul.f32 %v2789_v17, %v6693_v4  ;;  %v2841_v19 = vpack.c.bf16 %v2818_v52, %v2817_v20  ;;  %v2791_v24 = vmul.f32 0.5, %v2759_v8 }
 0x45e   : > { %v2761_v16 = vadd.f32 1.0, %v5176_v60  ;;  %v2762_v59 = vadd.f32 1.0, %v5180_v53  ;;  %v2842_v40 = vpack.c.bf16 %v2820_v61, %v2819_v51  ;;  %v2792_v1 = vmul.f32 0.5, %v2760_v42 }
 0x45f   : > { %v2822_v27 = vmul.f32 %v2790_v49, %v6705_v14  ;;  %v2763_v62 = vadd.f32 1.0, %v5174_v46  ;;  %4788 = vmatprep.mubr.bf16.mxu1 %v2841_v19  ;;  %v2823_v45 = vmul.f32 %v2791_v24, %v6689_v43  ;;  %v2764_v36 = vadd.f32 1.0, %v5178_v39 }
 0x460   : > { %v5182_v10 = vpop.eup %5181  ;;  %v2793_v50 = vmul.f32 0.5, %v2761_v16  ;;  %v2794_v18 = vmul.f32 0.5, %v2762_v59  ;;  %v2824_v4 = vmul.f32 %v2792_v1, %v6699_v33 }
 0x461   : > { %v5184_v63 = vpop.eup %5183  ;;  %v2843_v57 = vpack.c.bf16 %v2822_v27, %v2821_v21  ;;  %v2795_v44 = vmul.f32 0.5, %v2763_v62  ;;  %v2767_v25 = vadd.f32 1.0, %v5182_v10  ;;  %v2796_v14 = vmul.f32 0.5, %v2764_v36 }
 0x462   : > { %v2825_v28 = vmul.f32 %v2793_v50, %v6731_v5  ;;  %v2826_v55 = vmul.f32 %v2794_v18, %v6744_v7  ;;  %v2844_v12 = vpack.c.bf16 %v2824_v4, %v2823_v45  ;;  %v2765_v2 = vadd.f32 1.0, %v5184_v63  ;;  %v4921_v50 = vld [vmem:[%s7467_s9] ss:$8 sps:$4 sm:$0xff]   ;;  %v4923_v18 = vld [vmem:[%s7467_s9 + $0x4] ss:$8 sps:$4 sm:$0xff]  }
 0x463   : > { %4789 = vmatmul.mubr.bf16.gmra.mrb[104].mxu1 %v2842_v40  ;;  %v5186_v37 = vpop.eup %5185  ;;  %v2827_v34 = vmul.f32 %v2795_v44, %v6724_v35  ;;  %v2828_v31 = vmul.f32 %v2796_v14, %v6738_v58  ;;  %v2799_v6 = vmul.f32 0.5, %v2767_v25  ;;  %3717 = vmatprep.subr.bf16.mxu0 %v4923_v18 }
 0x464   : > { %4792 = vmatprep.mubr.bf16.mxu1 %v2843_v57  ;;  %v2845_v43 = vpack.c.bf16 %v2826_v55, %v2825_v28  ;;  %v2768_v46 = vadd.f32 1.0, %v5186_v37  ;;  %v2797_v30 = vmul.f32 0.5, %v2765_v2  ;;  %3718 = vmatpush1.bf16.msra.mxu0 %v4921_v50  ;;  %v4924_v2 = vld [vmem:[%s7467_s9 + $0x10] ss:$8 sps:$4 sm:$0xff]   ;;  %v4926_v37 = vld [vmem:[%s7467_s9 + $0x14] ss:$8 sps:$4 sm:$0xff]  }
 0x465   : > { %v2846_v29 = vpack.c.bf16 %v2828_v31, %v2827_v34  ;;  %v2831_v7 = vmul.f32 %v2799_v6, %v6763_v38  ;;  %3719 = vmatprep.subr.bf16.mxu0 %v4926_v37 }
 0x466   : > { %v5188_v33 = vpop.eup %5187  ;;  %v2800_v5 = vmul.f32 0.5, %v2768_v46  ;;  %v2829_v11 = vmul.f32 %v2797_v30, %v6769_v3 }
 0x467   : > { %v2766_v0 = vadd.f32 1.0, %v5188_v33 }
 0x468   : > { %v2832_v15 = vmul.f32 %v2800_v5, %v6781_v56  ;;  %3720 = vmatpush1.bf16.msra.mxu0 %v4924_v2 }
 0x469   : > { %v2798_v60 = vmul.f32 0.5, %v2766_v0 }
 0x46a   : > { %v2848_v35 = vpack.c.bf16 %v2832_v15, %v2831_v7  ;;  %v4927_v15 = vld [vmem:[%s7467_s9 + $0x20] ss:$8 sps:$4 sm:$0xff]  }
 0x46b   : > { %4793 = vmatmul.mubr.bf16.gmra.mrb[108].mxu1 %v2844_v12  ;;  %v2830_v48 = vmul.f32 %v2798_v60, %v6787_v47 }
 0x46c   : > { %4796 = vmatprep.mubr.bf16.mxu1 %v2845_v43 }
 0x46d   : > { %v2847_v58 = vpack.c.bf16 %v2830_v48, %v2829_v11  ;;  %v4929_v11 = vld [vmem:[%s7467_s9 + $0x24] ss:$8 sps:$4 sm:$0xff]  }
 0x46e   : > { %3721 = vmatprep.subr.bf16.mxu0 %v4929_v11 }
 0x46f   : > { %3722 = vmatpush1.bf16.msra.mxu0 %v4927_v15 }
 0x473   : > { %4797 = vmatmul.mubr.bf16.gmra.mrb[112].mxu1 %v2846_v29 }
 0x474   : > { %4800 = vmatprep.mubr.bf16.mxu1 %v2847_v58 }
 0x47b   : > { %4801 = vmatmul.mubr.bf16.gmra.mrb[116].mxu1 %v2848_v35 }
 0x4e3   : > { %v4774_v39 = vpop.f32.mrb[88].mxu1 }
 0x4e4   : > { %v2954_v38 = vpop.f32.mrb[89].mxu1  ;;  %v6844_v22 = vadd.f32 %v4774_v39, %v6828_v13  ;;  %v4932_v39 = vld [vmem:[%s7467_s9 + $0x34] ss:$8 sps:$4 sm:$0xff]  }
 0x4e5   : > { %v6831_v56 = vadd.f32 %v6828_v13, %v2954_v38  ;;  %v4775_v23 = vpop.f32.mrb[90].mxu1  ;;  %3723 = vmatprep.subr.bf16.mxu0 %v4932_v39 }
 0x4e6   : > { %v2957_v3 = vpop.f32.mrb[91].mxu1  ;;  %v6849_v17 = vadd.f32 %v4775_v23, %v6828_v13  ;;  %v3087_v51 = vsel %vm446_vm1, %v6844_v22, 0.0  ;;  %v3211_v8 = vmul.f32 %v6844_v22, %v6844_v22  ;;  %v4930_v23 = vld [vmem:[%s7467_s9 + $0x30] ss:$8 sps:$4 sm:$0xff]  }
 0x4e7   : > { %v6834_v47 = vadd.f32 %v6828_v13, %v2957_v3  ;;  %v3081_v32 = vsel %vm446_vm1, %v6831_v56, 0.0  ;;  %v3209_v26 = vmul.f32 %v6831_v56, %v6831_v56  ;;  %3724 = vmatpush1.bf16.msra.mxu0 %v4930_v23 }
 0x4e8   : > { %3082 = vadd.xlane.f32.xlu0 %v3081_v32  ;;  %v3090_v61 = vsel %vm446_vm1, %v6849_v17, 0.0  ;;  %v3212_v49 = vmul.f32 %v6849_v17, %v6849_v17  ;;  %v3247_v21 = vsel %vm446_vm1, %v3211_v8, 0.0  ;;  %v5320_v8 = vmov 0  }
 0x4e9   : > { %v3241_v53 = vsel %vm446_vm1, %v3209_v26, 0.0  ;;  %v3210_v20 = vmul.f32 %v6834_v47, %v6834_v47  ;;  %v3084_v9 = vsel %vm446_vm1, %v6834_v47, 0.0  ;;  %3749 = vmatprep.mubr.bf16.mxu0 %v5320_v8 }
 0x4ea   : > { %3242 = vadd.xlane.f32.xlu1 %v3241_v53  ;;  %v3250_v42 = vsel %vm446_vm1, %v3212_v49, 0.0 }
 0x4eb   : > { %v3244_v52 = vsel %vm446_vm1, %v3210_v20, 0.0 }
 0x4ec   : > { %3085 = vadd.xlane.f32.xlu0 %v3084_v9 }
 0x4ee   : > { %3245 = vadd.xlane.f32.xlu1 %v3244_v52 }
 0x4f0   : > { %3088 = vadd.xlane.f32.xlu0 %v3087_v51 }
 0x4f2   : > { %3091 = vadd.xlane.f32.xlu1 %v3090_v61 }
 0x4f4   : > { %3248 = vadd.xlane.f32.xlu0 %v3247_v21 }
 0x4f6   : > { %3251 = vadd.xlane.f32.xlu1 %v3250_v42 }
 0x50c   : > { %v4778_v19 = vpop.f32.mrb[92].mxu1 }
 0x50d   : > { %v2970_v24 = vpop.f32.mrb[93].mxu1  ;;  %v6883_v36 = vadd.f32 %v4778_v19, %v6828_v13 }
 0x50e   : > { %v6863_v16 = vadd.f32 %v6828_v13, %v2970_v24  ;;  %v4779_v59 = vpop.f32.mrb[94].mxu1 }
 0x50f   : > { %v2973_v40 = vpop.f32.mrb[95].mxu1  ;;  %v6887_v57 = vadd.f32 %v4779_v59, %v6828_v13  ;;  %v3099_v44 = vsel %vm446_vm1, %v6883_v36, 0.0  ;;  %v3215_v25 = vmul.f32 %v6883_v36, %v6883_v36 }
 0x510   : > { %v6866_v27 = vadd.f32 %v6828_v13, %v2973_v40  ;;  %v3093_v1 = vsel %vm446_vm1, %v6863_v16, 0.0  ;;  %v3213_v62 = vmul.f32 %v6863_v16, %v6863_v16 }
 0x511   : > { %3094 = vadd.xlane.f32.xlu0 %v3093_v1  ;;  %v3102_v28 = vsel %vm446_vm1, %v6887_v57, 0.0  ;;  %v3216_v55 = vmul.f32 %v6887_v57, %v6887_v57  ;;  %v3259_v14 = vsel %vm446_vm1, %v3215_v25, 0.0 }
 0x512   : > { %v3096_v10 = vsel %vm446_vm1, %v6866_v27, 0.0  ;;  %v3214_v45 = vmul.f32 %v6866_v27, %v6866_v27  ;;  %v3253_v63 = vsel %vm446_vm1, %v3213_v62, 0.0 }
 0x513   : > { %3097 = vadd.xlane.f32.xlu1 %v3096_v10  ;;  %v3262_v12 = vsel %vm446_vm1, %v3216_v55, 0.0 }
 0x514   : > { %v3256_v4 = vsel %vm446_vm1, %v3214_v45, 0.0 }
 0x515   : > { %3254 = vadd.xlane.f32.xlu0 %v3253_v63 }
 0x517   : > { %3257 = vadd.xlane.f32.xlu1 %v3256_v4 }
 0x519   : > { %3100 = vadd.xlane.f32.xlu0 %v3099_v44 }
 0x51b   : > { %3103 = vadd.xlane.f32.xlu1 %v3102_v28 }
 0x51d   : > { %3260 = vadd.xlane.f32.xlu0 %v3259_v14 }
 0x51f   : > { %3263 = vadd.xlane.f32.xlu1 %v3262_v12 }
 0x523   : > { %v4782_v43 = vpop.f32.mrb[96].mxu1 }
 0x524   : > { %v2986_v34 = vpop.f32.mrb[97].mxu1  ;;  %v6921_v60 = vadd.f32 %v4782_v43, %v6828_v13 }
 0x525   : > { %v6907_v31 = vadd.f32 %v6828_v13, %v2986_v34  ;;  %v4783_v46 = vpop.f32.mrb[98].mxu1 }
 0x526   : > { %v2989_v6 = vpop.f32.mrb[99].mxu1  ;;  %v6931_v48 = vadd.f32 %v4783_v46, %v6828_v13  ;;  %v3111_v32 = vsel %vm446_vm1, %v6921_v60, 0.0  ;;  %v3219_v26 = vmul.f32 %v6921_v60, %v6921_v60 }
 0x527   : > { %v6910_v33 = vadd.f32 %v6828_v13, %v2989_v6  ;;  %v3105_v29 = vsel %vm446_vm1, %v6907_v31, 0.0  ;;  %v3217_v0 = vmul.f32 %v6907_v31, %v6907_v31 }
 0x528   : > { %3106 = vadd.xlane.f32.xlu0 %v3105_v29  ;;  %v3114_v20 = vsel %vm446_vm1, %v6931_v48, 0.0  ;;  %v3220_v9 = vmul.f32 %v6931_v48, %v6931_v48  ;;  %v3271_v51 = vsel %vm446_vm1, %v3219_v26, 0.0 }
 0x529   : > { %v3108_v30 = vsel %vm446_vm1, %v6910_v33, 0.0  ;;  %v3218_v5 = vmul.f32 %v6910_v33, %v6910_v33  ;;  %v3265_v7 = vsel %vm446_vm1, %v3217_v0, 0.0 }
 0x52a   : > { %3109 = vadd.xlane.f32.xlu1 %v3108_v30  ;;  %v3274_v21 = vsel %vm446_vm1, %v3220_v9, 0.0 }
 0x52b   : > { %v3268_v58 = vsel %vm446_vm1, %v3218_v5, 0.0 }
 0x52c   : > { %3266 = vadd.xlane.f32.xlu0 %v3265_v7 }
 0x52e   : > { %v4786_v35 = vpop.f32.mrb[100].mxu1  ;;  %3269 = vadd.xlane.f32.xlu1 %v3268_v58 }
 0x52f   : > { %v3002_v38 = vpop.f32.mrb[101].mxu1  ;;  %v6966_v10 = vadd.f32 %v4786_v35, %v6828_v13 }
 0x530   : > { %v4787_v3 = vpop.f32.mrb[102].mxu1  ;;  %3112 = vadd.xlane.f32.xlu0 %v3111_v32  ;;  %v6949_v52 = vadd.f32 %v6828_v13, %v3002_v38 }
 0x531   : > { %v3005_v53 = vpop.f32.mrb[103].mxu1  ;;  %v6970_v50 = vadd.f32 %v4787_v3, %v6828_v13  ;;  %v3123_v25 = vsel %vm446_vm1, %v6966_v10, 0.0  ;;  %v3223_v28 = vmul.f32 %v6966_v10, %v6966_v10 }
 0x532   : > { %3115 = vadd.xlane.f32.xlu1 %v3114_v20  ;;  %v6954_v61 = vadd.f32 %v6828_v13, %v3005_v53  ;;  %v3117_v24 = vsel %vm446_vm1, %v6949_v52, 0.0  ;;  %v3221_v59 = vmul.f32 %v6949_v52, %v6949_v52 }
 0x533   : > { %v3126_v14 = vsel %vm446_vm1, %v6970_v50, 0.0  ;;  %v3224_v12 = vmul.f32 %v6970_v50, %v6970_v50  ;;  %v3283_v37 = vsel %vm446_vm1, %v3223_v28, 0.0 }
 0x534   : > { %3272 = vadd.xlane.f32.xlu0 %v3271_v51  ;;  %v3120_v1 = vsel %vm446_vm1, %v6954_v61, 0.0  ;;  %v3222_v62 = vmul.f32 %v6954_v61, %v6954_v61  ;;  %v3277_v45 = vsel %vm446_vm1, %v3221_v59, 0.0 }
 0x535   : > { %v3286_v46 = vsel %vm446_vm1, %v3224_v12, 0.0 }
 0x536   : > { %v4790_v49 = vpop.f32.mrb[104].mxu1  ;;  %3275 = vadd.xlane.f32.xlu1 %v3274_v21  ;;  %v3280_v63 = vsel %vm446_vm1, %v3222_v62, 0.0 }
 0x537   : > { %v3018_v42 = vpop.f32.mrb[105].mxu1  ;;  %v7002_v11 = vadd.f32 %v4790_v49, %v6828_v13 }
 0x538   : > { %v4791_v19 = vpop.f32.mrb[106].mxu1  ;;  %3118 = vadd.xlane.f32.xlu0 %v3117_v24  ;;  %v6982_v2 = vadd.f32 %v6828_v13, %v3018_v42 }
 0x539   : > { %v3021_v40 = vpop.f32.mrb[107].mxu1  ;;  %v7006_v58 = vadd.f32 %v4791_v19, %v6828_v13  ;;  %v3135_v32 = vsel %vm446_vm1, %v7002_v11, 0.0  ;;  %v3227_v26 = vmul.f32 %v7002_v11, %v7002_v11 }
 0x53a   : > { %3121 = vadd.xlane.f32.xlu1 %v3120_v1  ;;  %v6986_v43 = vadd.f32 %v6828_v13, %v3021_v40  ;;  %v3129_v0 = vsel %vm446_vm1, %v6982_v2, 0.0  ;;  %v3225_v30 = vmul.f32 %v6982_v2, %v6982_v2 }
 0x53b   : > { %v3138_v20 = vsel %vm446_vm1, %v7006_v58, 0.0  ;;  %v3228_v9 = vmul.f32 %v7006_v58, %v7006_v58  ;;  %v3295_v49 = vsel %vm446_vm1, %v3227_v26, 0.0 }
 0x53c   : > { %3278 = vadd.xlane.f32.xlu0 %v3277_v45  ;;  %v3132_v7 = vsel %vm446_vm1, %v6986_v43, 0.0  ;;  %v3226_v15 = vmul.f32 %v6986_v43, %v6986_v43  ;;  %v3289_v35 = vsel %vm446_vm1, %v3225_v30, 0.0 }
 0x53d   : > { %v3298_v42 = vsel %vm446_vm1, %v3228_v9, 0.0 }
 0x53e   : > { %v4794_v18 = vpop.f32.mrb[108].mxu1  ;;  %3281 = vadd.xlane.f32.xlu1 %v3280_v63  ;;  %v3292_v38 = vsel %vm446_vm1, %v3226_v15, 0.0 }
 0x53f   : > { %v3034_v4 = vpop.f32.mrb[109].mxu1  ;;  %v7038_v1 = vadd.f32 %v4794_v18, %v6828_v13 }
 0x540   : > { %v4795_v44 = vpop.f32.mrb[110].mxu1  ;;  %3124 = vadd.xlane.f32.xlu0 %v3123_v25  ;;  %v7022_v51 = vadd.f32 %v6828_v13, %v3034_v4 }
 0x541   : > { %v3037_v55 = vpop.f32.mrb[111].mxu1  ;;  %v7042_v45 = vadd.f32 %v4795_v44, %v6828_v13  ;;  %v3147_v4 = vsel %vm446_vm1, %v7038_v1, 0.0  ;;  %v3231_v25 = vmul.f32 %v7038_v1, %v7038_v1 }
 0x542   : > { %3127 = vadd.xlane.f32.xlu1 %v3126_v14  ;;  %v7026_v21 = vadd.f32 %v6828_v13, %v3037_v55  ;;  %v3141_v19 = vsel %vm446_vm1, %v7022_v51, 0.0  ;;  %v3229_v24 = vmul.f32 %v7022_v51, %v7022_v51 }
 0x543   : > { %v3150_v18 = vsel %vm446_vm1, %v7042_v45, 0.0  ;;  %v3232_v28 = vmul.f32 %v7042_v45, %v7042_v45  ;;  %v3307_v55 = vsel %vm446_vm1, %v3231_v25, 0.0 }
 0x544   : > { %3284 = vadd.xlane.f32.xlu0 %v3283_v37  ;;  %v3144_v59 = vsel %vm446_vm1, %v7026_v21, 0.0  ;;  %v3230_v40 = vmul.f32 %v7026_v21, %v7026_v21  ;;  %v3301_v62 = vsel %vm446_vm1, %v3229_v24, 0.0 }
 0x545   : > { %v3310_v12 = vsel %vm446_vm1, %v3232_v28, 0.0 }
 0x546   : > { %v6988_v34 = vpop.f32.mrb[112].mxu1  ;;  %3287 = vadd.xlane.f32.xlu1 %v3286_v46  ;;  %v3304_v63 = vsel %vm446_vm1, %v3230_v40, 0.0 }
 0x547   : > { %v3050_v6 = vpop.f32.mrb[113].mxu1  ;;  %v7071_v30 = vadd.f32 %v6988_v34, %v6828_v13 }
 0x548   : > { %v6991_v29 = vpop.f32.mrb[114].mxu1  ;;  %3130 = vadd.xlane.f32.xlu0 %v3129_v0  ;;  %v7054_v44 = vadd.f32 %v6828_v13, %v3050_v6 }
 0x549   : > { %v3053_v5 = vpop.f32.mrb[115].mxu1 }
 0x54a   : > { %3133 = vadd.xlane.f32.xlu1 %v3132_v7  ;;  %v7058_v14 = vadd.f32 %v6828_v13, %v3053_v5  ;;  %v3153_v37 = vsel %vm446_vm1, %v7054_v44, 0.0  ;;  %v3233_v46 = vmul.f32 %v7054_v44, %v7054_v44  ;;  %v7076_v7 = vadd.f32 %v6991_v29, %v6828_v13 }
 0x54c   : > { %3290 = vadd.xlane.f32.xlu0 %v3289_v35  ;;  %v3156_v6 = vsel %vm446_vm1, %v7058_v14, 0.0  ;;  %v3234_v0 = vmul.f32 %v7058_v14, %v7058_v14  ;;  %v3313_v5 = vsel %vm446_vm1, %v3233_v46, 0.0  ;;  %v3159_v35 = vsel %vm446_vm1, %v7071_v30, 0.0 }
 0x54d   : > { %v3162_v34 = vsel %vm446_vm1, %v7076_v7, 0.0 }
 0x54e   : > { %v7008_v39 = vpop.f32.mrb[116].mxu1  ;;  %3293 = vadd.xlane.f32.xlu1 %v3292_v38  ;;  %v3316_v15 = vsel %vm446_vm1, %v3234_v0, 0.0  ;;  %v3235_v38 = vmul.f32 %v7071_v30, %v7071_v30 }
 0x54f   : > { %v3066_v23 = vpop.f32.mrb[117].mxu1 }
 0x550   : > { %v7011_v3 = vpop.f32.mrb[118].mxu1  ;;  %3136 = vadd.xlane.f32.xlu0 %v3135_v32  ;;  %v3236_v32 = vmul.f32 %v7076_v7, %v7076_v7  ;;  %v7088_v29 = vadd.f32 %v6828_v13, %v3066_v23  ;;  %v3319_v26 = vsel %vm446_vm1, %v3235_v38, 0.0 }
 0x551   : > { %v3069_v53 = vpop.f32.mrb[119].mxu1 }
 0x552   : > { %3139 = vadd.xlane.f32.xlu1 %v3138_v20  ;;  %v7092_v20 = vadd.f32 %v6828_v13, %v3069_v53  ;;  %v3322_v9 = vsel %vm446_vm1, %v3236_v32, 0.0 }
 0x554   : > { %3296 = vadd.xlane.f32.xlu0 %v3295_v49  ;;  %v3238_v53 = vmul.f32 %v7092_v20, %v7092_v20 }
 0x556   : > { %3299 = vadd.xlane.f32.xlu1 %v3298_v42  ;;  %v3165_v42 = vsel %vm446_vm1, %v7088_v29, 0.0 }
 0x558   : > { %3142 = vadd.xlane.f32.xlu0 %v3141_v19  ;;  %v3237_v19 = vmul.f32 %v7088_v29, %v7088_v29 }
 0x55a   : > { %3145 = vadd.xlane.f32.xlu1 %v3144_v59  ;;  %v3168_v59 = vsel %vm446_vm1, %v7092_v20, 0.0  ;;  %v3325_v25 = vsel %vm446_vm1, %v3237_v19, 0.0 }
 0x55c   : > { %3302 = vadd.xlane.f32.xlu0 %v3301_v62 }
 0x55e   : > { %3305 = vadd.xlane.f32.xlu1 %v3304_v63  ;;  %v7105_v63 = vadd.f32 %v7008_v39, %v6828_v13 }
 0x560   : > { %3148 = vadd.xlane.f32.xlu0 %v3147_v4  ;;  %v3239_v39 = vmul.f32 %v7105_v63, %v7105_v63 }
 0x562   : > { %3151 = vadd.xlane.f32.xlu1 %v3150_v18 }
 0x564   : > { %3308 = vadd.xlane.f32.xlu0 %v3307_v55  ;;  %v7110_v55 = vadd.f32 %v7011_v3, %v6828_v13 }
 0x566   : > { %3311 = vadd.xlane.f32.xlu1 %v3310_v12  ;;  %v3240_v13 = vmul.f32 %v7110_v55, %v7110_v55  ;;  %v3174_v32 = vsel %vm446_vm1, %v7110_v55, 0.0 }
 0x568   : > { %3154 = vadd.xlane.f32.xlu0 %v3153_v37  ;;  %v3328_v37 = vsel %vm446_vm1, %v3238_v53, 0.0  ;;  %v3334_v53 = vsel %vm446_vm1, %v3240_v13, 0.0 }
 0x56a   : > { %3157 = vadd.xlane.f32.xlu1 %v3156_v6 }
 0x56c   : > { %3314 = vadd.xlane.f32.xlu0 %v3313_v5 }
 0x56e   : > { %3317 = vadd.xlane.f32.xlu1 %v3316_v15  ;;  %v3171_v15 = vsel %vm446_vm1, %v7105_v63, 0.0 }
 0x570   : > { %3160 = vadd.xlane.f32.xlu0 %v3159_v35 }
 0x572   : > { %3163 = vadd.xlane.f32.xlu1 %v3162_v34 }
 0x574   : > { %3320 = vadd.xlane.f32.xlu0 %v3319_v26 }
 0x575   : > { %v3083_v49 = vpop.xlane.xlu0 %3082 }
 0x576   : > { %3323 = vadd.xlane.f32.xlu1 %v3322_v9  ;;  %v3177_v24 = vmul.f32 0.015625, %v3083_v49  ;;  %v3331_v9 = vsel %vm446_vm1, %v3239_v39, 0.0 }
 0x577   : > { %v3243_v23 = vpop.xlane.xlu1 %3242 }
 0x578   : > { %3166 = vadd.xlane.f32.xlu0 %v3165_v42  ;;  %v3369_v40 = vmul.f32 %v3177_v24, %v3177_v24  ;;  %v3337_v62 = vmul.f32 0.015625, %v3243_v23  ;;  %v3465_v39 = vsub.f32 %v6831_v56, %v3177_v24 }
 0x579   : > { %v3086_v4 = vpop.xlane.xlu0 %3085 }
 0x57a   : > { %3169 = vadd.xlane.f32.xlu1 %v3168_v59  ;;  %v3401_v18 = vsub.f32 %v3337_v62, %v3369_v40  ;;  %v3178_v28 = vmul.f32 0.015625, %v3086_v4 }
 0x57b   : > { %v3246_v12 = vpop.xlane.xlu1 %3245 }
 0x57c   : > { %3326 = vadd.xlane.f32.xlu0 %v3325_v25  ;;  %v3433_v46 = vmax.f32 %v3401_v18, 0.0  ;;  %v3370_v6 = vmul.f32 %v3178_v28, %v3178_v28  ;;  %v3338_v0 = vmul.f32 0.015625, %v3246_v12 }
 0x57d   : > { %v3089_v5 = vpop.xlane.xlu0 %3088 }
 0x57e   : > { %3329 = vadd.xlane.f32.xlu1 %v3328_v37  ;;  %v3497_v35 = vadd.f32 1e-05, %v3433_v46  ;;  %v3402_v38 = vsub.f32 %v3338_v0, %v3370_v6  ;;  %v3179_v34 = vmul.f32 0.015625, %v3089_v5  ;;  %v3466_v5 = vsub.f32 %v6834_v47, %v3178_v28 }
 0x57f   : > { %v3092_v3 = vpop.xlane.xlu1 %3091 }
 0x580   : > { %3172 = vadd.xlane.f32.xlu0 %v3171_v15  ;;  %v3434_v26 = vmax.f32 %v3402_v38, 0.0  ;;  %v3180_v49 = vmul.f32 0.015625, %v3092_v3  ;;  %5189 = vrsqrt.f32 %v3497_v35  ;;  %v3371_v23 = vmul.f32 %v3179_v34, %v3179_v34 }
 0x581   : > { %v3249_v42 = vpop.xlane.xlu0 %3248 }
 0x582   : > { %3175 = vadd.xlane.f32.xlu1 %v3174_v32  ;;  %v3498_v19 = vadd.f32 1e-05, %v3434_v26  ;;  %v3339_v59 = vmul.f32 0.015625, %v3249_v42  ;;  %v3372_v62 = vmul.f32 %v3180_v49, %v3180_v49  ;;  %v3467_v32 = vsub.f32 %v6844_v22, %v3179_v34 }
 0x583   : > { %v3252_v40 = vpop.xlane.xlu1 %3251  ;;  %v3468_v26 = vsub.f32 %v6849_v17, %v3180_v49 }
 0x584   : > { %3332 = vadd.xlane.f32.xlu0 %v3331_v9  ;;  %5191 = vrsqrt.f32 %v3498_v19  ;;  %v3403_v4 = vsub.f32 %v3339_v59, %v3371_v23  ;;  %v3340_v25 = vmul.f32 0.015625, %v3252_v40 }
 0x586   : > { %3335 = vadd.xlane.f32.xlu1 %v3334_v53  ;;  %v3435_v18 = vmax.f32 %v3403_v4, 0.0  ;;  %v3404_v12 = vsub.f32 %v3340_v25, %v3372_v62 }
 0x588   : > { %v3499_v37 = vadd.f32 1e-05, %v3435_v18  ;;  %v3436_v46 = vmax.f32 %v3404_v12, 0.0 }
 0x58a   : > { %5193 = vrsqrt.f32 %v3499_v37  ;;  %v3500_v6 = vadd.f32 1e-05, %v3436_v46  ;;  %v5190_v0 = vpop.eup %5189 }
 0x58b   : > { %v3561_v35 = vmul.f32 %v5190_v0, %v3465_v39 }
 0x58c   : > { %5195 = vrsqrt.f32 %v3500_v6 }
 0x58e   : > { %v5192_v15 = vpop.eup %5191 }
 0x58f   : > { %v3562_v38 = vmul.f32 %v5192_v15, %v3466_v5 }
 0x591   : > { %v3593_v13 = vpack.c.bf16 %v3562_v38, %v3561_v35 }
 0x593   : > { %4351 = vmatmul.mubr.msk.bf16.vlgmr.msra.gmra.mrb[44].mxu0 %vm446_vm1, %v3593_v13 }
 0x594   : > { %v5194_v3 = vpop.eup %5193  ;;  %3759 = vmatprep.mubr.bf16.mxu0 %v5320_v8 }
 0x595   : > { %v3563_v42 = vmul.f32 %v5194_v3, %v3467_v32 }
 0x596   : > { %v5196_v9 = vpop.eup %5195 }
 0x597   : > { %v3564_v19 = vmul.f32 %v5196_v9, %v3468_v26 }
 0x599   : > { %v3594_v23 = vpack.c.bf16 %v3564_v19, %v3563_v42 }
 0x59b   : > { %4352 = vmatmul.mubr.msk.bf16.gmra.mrb[48].mxu0 %vm446_vm1, %v3594_v23 }
 0x59c   : > { %3769 = vmatprep.mubr.bf16.mxu0 %v5320_v8 }
 0x59e   : > { %v3095_v56 = vpop.xlane.xlu0 %3094 }
 0x59f   : > { %v3181_v47 = vmul.f32 0.015625, %v3095_v56 }
 0x5a0   : > { %v3098_v24 = vpop.xlane.xlu1 %3097 }
 0x5a1   : > { %v3182_v28 = vmul.f32 0.015625, %v3098_v24  ;;  %v3373_v53 = vmul.f32 %v3181_v47, %v3181_v47  ;;  %v3469_v24 = vsub.f32 %v6863_v16, %v3181_v47 }
 0x5a2   : > { %v3255_v59 = vpop.xlane.xlu0 %3254 }
 0x5a3   : > { %v3341_v40 = vmul.f32 0.015625, %v3255_v59  ;;  %v3374_v4 = vmul.f32 %v3182_v28, %v3182_v28  ;;  %v3470_v59 = vsub.f32 %v6866_v27, %v3182_v28 }
 0x5a4   : > { %v3258_v62 = vpop.xlane.xlu1 %3257 }
 0x5a5   : > { %v3405_v22 = vsub.f32 %v3341_v40, %v3373_v53  ;;  %v3342_v34 = vmul.f32 0.015625, %v3258_v62 }
 0x5a6   : > { %v3101_v17 = vpop.xlane.xlu0 %3100 }
 0x5a7   : > { %v3437_v49 = vmax.f32 %v3405_v22, 0.0  ;;  %v3406_v25 = vsub.f32 %v3342_v34, %v3374_v4  ;;  %v3183_v18 = vmul.f32 0.015625, %v3101_v17 }
 0x5a8   : > { %v3104_v12 = vpop.xlane.xlu1 %3103 }
 0x5a9   : > { %v3501_v37 = vadd.f32 1e-05, %v3437_v49  ;;  %v3438_v46 = vmax.f32 %v3406_v25, 0.0  ;;  %v3184_v6 = vmul.f32 0.015625, %v3104_v12  ;;  %v3375_v5 = vmul.f32 %v3183_v18, %v3183_v18 }
 0x5aa   : > { %v3261_v0 = vpop.xlane.xlu0 %3260 }
 0x5ab   : > { %5197 = vrsqrt.f32 %v3501_v37  ;;  %v3502_v39 = vadd.f32 1e-05, %v3438_v46  ;;  %v3343_v15 = vmul.f32 0.015625, %v3261_v0  ;;  %v3376_v38 = vmul.f32 %v3184_v6, %v3184_v6 }
 0x5ac   : > { %v3264_v35 = vpop.xlane.xlu1 %3263 }
 0x5ad   : > { %5199 = vrsqrt.f32 %v3502_v39  ;;  %v3407_v13 = vsub.f32 %v3343_v15, %v3375_v5  ;;  %v3344_v3 = vmul.f32 0.015625, %v3264_v35  ;;  %v3471_v35 = vsub.f32 %v6883_v36, %v3183_v18 }
 0x5af   : > { %v3439_v32 = vmax.f32 %v3407_v13, 0.0  ;;  %v3408_v26 = vsub.f32 %v3344_v3, %v3376_v38  ;;  %v3472_v38 = vsub.f32 %v6887_v57, %v3184_v6 }
 0x5b1   : > { %v3503_v9 = vadd.f32 1e-05, %v3439_v32  ;;  %v3440_v42 = vmax.f32 %v3408_v26, 0.0 }
 0x5b3   : > { %v3504_v19 = vadd.f32 1e-05, %v3440_v42  ;;  %5201 = vrsqrt.f32 %v3503_v9 }
 0x5b5   : > { %v5198_v23 = vpop.eup %5197  ;;  %5203 = vrsqrt.f32 %v3504_v19  ;;  %v3107_v56 = vpop.xlane.xlu0 %3106 }
 0x5b6   : > { %v7133_v53 = vmul.f32 0.015625, %v3107_v56  ;;  %v3565_v22 = vmul.f32 %v5198_v23, %v3469_v24 }
 0x5b7   : > { %v5200_v40 = vpop.eup %5199  ;;  %v3110_v62 = vpop.xlane.xlu1 %3109 }
 0x5b8   : > { %v7135_v4 = vmul.f32 0.015625, %v3110_v62  ;;  %v3566_v34 = vmul.f32 %v5200_v40, %v3470_v59  ;;  %v3377_v49 = vmul.f32 %v7133_v53, %v7133_v53 }
 0x5b9   : > { %v3267_v17 = vpop.xlane.xlu0 %3266 }
 0x5ba   : > { %v3345_v25 = vmul.f32 0.015625, %v3267_v17  ;;  %v3595_v12 = vpack.c.bf16 %v3566_v34, %v3565_v22  ;;  %v3378_v16 = vmul.f32 %v7135_v4, %v7135_v4 }
 0x5bb   : > { %v3270_v37 = vpop.xlane.xlu1 %3269 }
 0x5bc   : > { %v3409_v47 = vsub.f32 %v3345_v25, %v3377_v49  ;;  %v3346_v27 = vmul.f32 0.015625, %v3270_v37  ;;  %4353 = vmatmul.mubr.msk.bf16.gmra.mrb[52].mxu0 %vm446_vm1, %v3595_v12 }
 0x5bd   : > { %v3113_v28 = vpop.xlane.xlu0 %3112  ;;  %3779 = vmatprep.mubr.bf16.mxu0 %v5320_v8  ;;  %v5202_v46 = vpop.eup %5201 }
 0x5be   : > { %v3441_v0 = vmax.f32 %v3409_v47, 0.0  ;;  %v3410_v39 = vsub.f32 %v3346_v27, %v3378_v16  ;;  %v7143_v5 = vmul.f32 0.015625, %v3113_v28  ;;  %v3567_v42 = vmul.f32 %v5202_v46, %v3471_v35 }
 0x5bf   : > { %v5204_v15 = vpop.eup %5203  ;;  %v3116_v13 = vpop.xlane.xlu1 %3115  ;;  %v3473_v35 = vsub.f32 %v6907_v31, %v7133_v53 }
 0x5c0   : > { %v3505_v3 = vadd.f32 1e-05, %v3441_v0  ;;  %v3442_v32 = vmax.f32 %v3410_v39, 0.0  ;;  %v7147_v26 = vmul.f32 0.015625, %v3116_v13  ;;  %v3568_v19 = vmul.f32 %v5204_v15, %v3472_v38 }
 0x5c1   : > { %v3273_v9 = vpop.xlane.xlu0 %3272  ;;  %v3379_v56 = vmul.f32 %v7143_v5, %v7143_v5  ;;  %v3474_v38 = vsub.f32 %v6910_v33, %v7135_v4 }
 0x5c2   : > { %5205 = vrsqrt.f32 %v3505_v3  ;;  %v3506_v23 = vadd.f32 1e-05, %v3442_v32  ;;  %v3347_v24 = vmul.f32 0.015625, %v3273_v9  ;;  %v3596_v40 = vpack.c.bf16 %v3568_v19, %v3567_v42 }
 0x5c3   : > { %v3276_v59 = vpop.xlane.xlu1 %3275  ;;  %v3380_v36 = vmul.f32 %v7147_v26, %v7147_v26 }
 0x5c4   : > { %5207 = vrsqrt.f32 %v3506_v23  ;;  %v3411_v57 = vsub.f32 %v3347_v24, %v3379_v56  ;;  %v3348_v18 = vmul.f32 0.015625, %v3276_v59  ;;  %4354 = vmatmul.mubr.msk.bf16.gmra.mrb[56].mxu0 %vm446_vm1, %v3596_v40 }
 0x5c5   : > { %v3119_v6 = vpop.xlane.xlu0 %3118  ;;  %3789 = vmatprep.mubr.bf16.mxu0 %v5320_v8 }
 0x5c6   : > { %v3443_v62 = vmax.f32 %v3411_v57, 0.0  ;;  %v3412_v22 = vsub.f32 %v3348_v18, %v3380_v36  ;;  %v7154_v34 = vmul.f32 0.015625, %v3119_v6 }
 0x5c7   : > { %v3122_v17 = vpop.xlane.xlu1 %3121 }
 0x5c8   : > { %v3507_v49 = vadd.f32 1e-05, %v3443_v62  ;;  %v3444_v25 = vmax.f32 %v3412_v22, 0.0  ;;  %v7157_v12 = vmul.f32 0.015625, %v3122_v17  ;;  %v3381_v47 = vmul.f32 %v7154_v34, %v7154_v34 }
 0x5c9   : > { %v3279_v37 = vpop.xlane.xlu0 %3278  ;;  %v3475_v17 = vsub.f32 %v6921_v60, %v7143_v5 }
 0x5ca   : > { %5209 = vrsqrt.f32 %v3507_v49  ;;  %v3508_v16 = vadd.f32 1e-05, %v3444_v25  ;;  %v3349_v27 = vmul.f32 0.015625, %v3279_v37  ;;  %v3382_v0 = vmul.f32 %v7157_v12, %v7157_v12 }
 0x5cb   : > { %v3282_v28 = vpop.xlane.xlu1 %3281  ;;  %v3476_v49 = vsub.f32 %v6931_v48, %v7147_v26 }
 0x5cc   : > { %v5206_v46 = vpop.eup %5205  ;;  %5211 = vrsqrt.f32 %v3508_v16  ;;  %v3413_v39 = vsub.f32 %v3349_v27, %v3381_v47  ;;  %v3350_v15 = vmul.f32 0.015625, %v3282_v28 }
 0x5cd   : > { %v3125_v13 = vpop.xlane.xlu0 %3124  ;;  %v3569_v23 = vmul.f32 %v5206_v46, %v3473_v35 }
 0x5ce   : > { %v5208_v3 = vpop.eup %5207  ;;  %v3445_v32 = vmax.f32 %v3413_v39, 0.0  ;;  %v3414_v9 = vsub.f32 %v3350_v15, %v3382_v0  ;;  %v7167_v42 = vmul.f32 0.015625, %v3125_v13 }
 0x5cf   : > { %v3128_v19 = vpop.xlane.xlu1 %3127  ;;  %v3570_v56 = vmul.f32 %v5208_v3, %v3474_v38 }
 0x5d0   : > { %v3509_v24 = vadd.f32 1e-05, %v3445_v32  ;;  %v3446_v59 = vmax.f32 %v3414_v9, 0.0  ;;  %v7169_v40 = vmul.f32 0.015625, %v3128_v19  ;;  %v3383_v33 = vmul.f32 %v7167_v42, %v7167_v42 }
 0x5d1   : > { %v3285_v36 = vpop.xlane.xlu0 %3284  ;;  %v3597_v57 = vpack.c.bf16 %v3570_v56, %v3569_v23  ;;  %v3477_v23 = vsub.f32 %v6949_v52, %v7154_v34  ;;  %v3478_v56 = vsub.f32 %v6954_v61, %v7157_v12 }
 0x5d2   : > { %5213 = vrsqrt.f32 %v3509_v24  ;;  %v3510_v31 = vadd.f32 1e-05, %v3446_v59  ;;  %v3351_v53 = vmul.f32 0.015625, %v3285_v36  ;;  %v3384_v6 = vmul.f32 %v7169_v40, %v7169_v40 }
 0x5d3   : > { %v3288_v4 = vpop.xlane.xlu1 %3287  ;;  %4355 = vmatmul.mubr.msk.bf16.gmra.mrb[60].mxu0 %vm446_vm1, %v3597_v57 }
 0x5d4   : > { %v5210_v18 = vpop.eup %5209  ;;  %5215 = vrsqrt.f32 %v3510_v31  ;;  %v3415_v62 = vsub.f32 %v3351_v53, %v3383_v33  ;;  %v3352_v22 = vmul.f32 0.015625, %v3288_v4  ;;  %3799 = vmatprep.mubr.bf16.mxu0 %v5320_v8 }
 0x5d5   : > { %v3131_v25 = vpop.xlane.xlu0 %3130  ;;  %v3571_v46 = vmul.f32 %v5210_v18, %v3475_v17 }
 0x5d6   : > { %v5212_v37 = vpop.eup %5211  ;;  %v3447_v16 = vmax.f32 %v3415_v62, 0.0  ;;  %v3416_v47 = vsub.f32 %v3352_v22, %v3384_v6  ;;  %v7181_v27 = vmul.f32 0.015625, %v3131_v25 }
 0x5d7   : > { %v3134_v28 = vpop.xlane.xlu1 %3133  ;;  %v3572_v0 = vmul.f32 %v5212_v37, %v3476_v49 }
 0x5d8   : > { %v3511_v39 = vadd.f32 1e-05, %v3447_v16  ;;  %v3448_v15 = vmax.f32 %v3416_v47, 0.0  ;;  %v7183_v35 = vmul.f32 0.015625, %v3134_v28  ;;  %v3385_v48 = vmul.f32 %v7181_v27, %v7181_v27 }
 0x5d9   : > { %v3291_v38 = vpop.xlane.xlu0 %3290  ;;  %v3598_v13 = vpack.c.bf16 %v3572_v0, %v3571_v46  ;;  %v3479_v47 = vsub.f32 %v6966_v10, %v7167_v42  ;;  %v3480_v28 = vsub.f32 %v6970_v50, %v7169_v40 }
 0x5da   : > { %5217 = vrsqrt.f32 %v3511_v39  ;;  %v3512_v60 = vadd.f32 1e-05, %v3448_v15  ;;  %v3353_v5 = vmul.f32 0.015625, %v3291_v38  ;;  %v3386_v32 = vmul.f32 %v7183_v35, %v7183_v35 }
 0x5db   : > { %v3294_v26 = vpop.xlane.xlu1 %3293  ;;  %4356 = vmatmul.mubr.msk.bf16.gmra.mrb[64].mxu0 %vm446_vm1, %v3598_v13 }
 0x5dc   : > { %v5214_v3 = vpop.eup %5213  ;;  %5219 = vrsqrt.f32 %v3512_v60  ;;  %v3417_v9 = vsub.f32 %v3353_v5, %v3385_v48  ;;  %v3354_v19 = vmul.f32 0.015625, %v3294_v26  ;;  %3809 = vmatprep.mubr.bf16.mxu0 %v5320_v8 }
 0x5dd   : > { %v3137_v24 = vpop.xlane.xlu0 %3136  ;;  %v3573_v53 = vmul.f32 %v5214_v3, %v3477_v23 }
 0x5de   : > { %v5216_v59 = vpop.eup %5215  ;;  %v3449_v36 = vmax.f32 %v3417_v9, 0.0  ;;  %v3418_v57 = vsub.f32 %v3354_v19, %v3386_v32  ;;  %v7195_v31 = vmul.f32 0.015625, %v3137_v24 }
 0x5df   : > { %v3140_v33 = vpop.xlane.xlu1 %3139  ;;  %v3574_v4 = vmul.f32 %v5216_v59, %v3478_v56  ;;  %v3481_v59 = vsub.f32 %v6982_v2, %v7181_v27 }
 0x5e0   : > { %v3513_v18 = vadd.f32 1e-05, %v3449_v36  ;;  %v3450_v6 = vmax.f32 %v3418_v57, 0.0  ;;  %v7197_v62 = vmul.f32 0.015625, %v3140_v33  ;;  %v3387_v61 = vmul.f32 %v7195_v31, %v7195_v31 }
 0x5e1   : > { %v3297_v22 = vpop.xlane.xlu0 %3296  ;;  %v3599_v17 = vpack.c.bf16 %v3574_v4, %v3573_v53  ;;  %v3482_v36 = vsub.f32 %v6986_v43, %v7183_v35 }
 0x5e2   : > { %5221 = vrsqrt.f32 %v3513_v18  ;;  %v3514_v52 = vadd.f32 1e-05, %v3450_v6  ;;  %v3355_v34 = vmul.f32 0.015625, %v3297_v22  ;;  %v3388_v25 = vmul.f32 %v7197_v62, %v7197_v62 }
 0x5e3   : > { %v3300_v12 = vpop.xlane.xlu1 %3299  ;;  %4357 = vmatmul.mubr.msk.bf16.gmra.mrb[68].mxu0 %vm446_vm1, %v3599_v17 }
 0x5e4   : > { %v5218_v49 = vpop.eup %5217  ;;  %5223 = vrsqrt.f32 %v3514_v52  ;;  %v3419_v37 = vsub.f32 %v3355_v34, %v3387_v61  ;;  %v3356_v16 = vmul.f32 0.015625, %v3300_v12  ;;  %3819 = vmatprep.mubr.bf16.mxu0 %v5320_v8 }
 0x5e5   : > { %v3143_v46 = vpop.xlane.xlu0 %3142  ;;  %v3575_v60 = vmul.f32 %v5218_v49, %v3479_v47 }
 0x5e6   : > { %v5220_v0 = vpop.eup %5219  ;;  %v3451_v39 = vmax.f32 %v3419_v37, 0.0  ;;  %v3420_v15 = vsub.f32 %v3356_v16, %v3388_v25  ;;  %v7209_v38 = vmul.f32 0.015625, %v3143_v46  ;;  %v3484_v46 = vsub.f32 %v7006_v58, %v7197_v62 }
 0x5e7   : > { %v3146_v13 = vpop.xlane.xlu1 %3145  ;;  %v3576_v48 = vmul.f32 %v5220_v0, %v3480_v28  ;;  %v3483_v28 = vsub.f32 %v7002_v11, %v7195_v31 }
 0x5e8   : > { %v3515_v5 = vadd.f32 1e-05, %v3451_v39  ;;  %v3452_v26 = vmax.f32 %v3420_v15, 0.0  ;;  %v7211_v3 = vmul.f32 0.015625, %v3146_v13  ;;  %v3389_v50 = vmul.f32 %v7209_v38, %v7209_v38 }
 0x5e9   : > { %v3303_v32 = vpop.xlane.xlu0 %3302  ;;  %v3600_v9 = vpack.c.bf16 %v3576_v48, %v3575_v60 }
 0x5ea   : > { %5225 = vrsqrt.f32 %v3515_v5  ;;  %v3516_v10 = vadd.f32 1e-05, %v3452_v26  ;;  %v3357_v42 = vmul.f32 0.015625, %v3303_v32  ;;  %v3390_v23 = vmul.f32 %v7211_v3, %v7211_v3 }
 0x5eb   : > { %v3306_v40 = vpop.xlane.xlu1 %3305  ;;  %4358 = vmatmul.mubr.msk.bf16.gmra.mrb[72].mxu0 %vm446_vm1, %v3600_v9 }
 0x5ec   : > { %v5222_v19 = vpop.eup %5221  ;;  %5227 = vrsqrt.f32 %v3516_v10  ;;  %v3421_v56 = vsub.f32 %v3357_v42, %v3389_v50  ;;  %v3358_v24 = vmul.f32 0.015625, %v3306_v40  ;;  %3829 = vmatprep.mubr.bf16.mxu0 %v5320_v8 }
 0x5ed   : > { %v3149_v57 = vpop.xlane.xlu0 %3148  ;;  %v3577_v22 = vmul.f32 %v5222_v19, %v3481_v59  ;;  %v3486_v59 = vsub.f32 %v7026_v21, %v7211_v3 }
 0x5ee   : > { %v5224_v33 = vpop.eup %5223  ;;  %v3453_v53 = vmax.f32 %v3421_v56, 0.0  ;;  %v3422_v4 = vsub.f32 %v3358_v24, %v3390_v23  ;;  %v7223_v18 = vmul.f32 0.015625, %v3149_v57  ;;  %v3485_v24 = vsub.f32 %v7022_v51, %v7209_v38 }
 0x5ef   : > { %v3152_v6 = vpop.xlane.xlu1 %3151  ;;  %v3578_v17 = vmul.f32 %v5224_v33, %v3482_v36 }
 0x5f0   : > { %v3517_v52 = vadd.f32 1e-05, %v3453_v53  ;;  %v3454_v61 = vmax.f32 %v3422_v4, 0.0  ;;  %v7225_v34 = vmul.f32 0.015625, %v3152_v6  ;;  %v3391_v43 = vmul.f32 %v7223_v18, %v7223_v18 }
 0x5f1   : > { %v3309_v12 = vpop.xlane.xlu0 %3308  ;;  %v3601_v49 = vpack.c.bf16 %v3578_v17, %v3577_v22 }
 0x5f2   : > { %5229 = vrsqrt.f32 %v3517_v52  ;;  %v3518_v2 = vadd.f32 1e-05, %v3454_v61  ;;  %v3359_v27 = vmul.f32 0.015625, %v3309_v12  ;;  %v3392_v37 = vmul.f32 %v7225_v34, %v7225_v34 }
 0x5f3   : > { %v3312_v35 = vpop.xlane.xlu1 %3311  ;;  %4359 = vmatmul.mubr.msk.bf16.gmra.mrb[76].mxu0 %vm446_vm1, %v3601_v49 }
 0x5f4   : > { %v5226_v25 = vpop.eup %5225  ;;  %5231 = vrsqrt.f32 %v3518_v2  ;;  %v3423_v16 = vsub.f32 %v3359_v27, %v3391_v43  ;;  %v3360_v47 = vmul.f32 0.015625, %v3312_v35  ;;  %3839 = vmatprep.mubr.bf16.mxu0 %v5320_v8 }
 0x5f5   : > { %v3155_v0 = vpop.xlane.xlu0 %3154  ;;  %v3579_v5 = vmul.f32 %v5226_v25, %v3483_v28 }
 0x5f6   : > { %v5228_v39 = vpop.eup %5227  ;;  %v3455_v15 = vmax.f32 %v3423_v16, 0.0  ;;  %v3424_v13 = vsub.f32 %v3360_v47, %v3392_v37  ;;  %v7237_v60 = vmul.f32 0.015625, %v3155_v0  ;;  %v3487_v37 = vsub.f32 %v7038_v1, %v7223_v18 }
 0x5f7   : > { %v3158_v48 = vpop.xlane.xlu1 %3157  ;;  %v3580_v26 = vmul.f32 %v5228_v39, %v3484_v46  ;;  %v3488_v16 = vsub.f32 %v7042_v45, %v7225_v34 }
 0x5f8   : > { %v3519_v32 = vadd.f32 1e-05, %v3455_v15  ;;  %v3456_v9 = vmax.f32 %v3424_v13, 0.0  ;;  %v7239_v10 = vmul.f32 0.015625, %v3158_v48  ;;  %v3393_v58 = vmul.f32 %v7237_v60, %v7237_v60 }
 0x5f9   : > { %v3315_v50 = vpop.xlane.xlu0 %3314  ;;  %v3602_v42 = vpack.c.bf16 %v3580_v26, %v3579_v5 }
 0x5fa   : > { %5233 = vrsqrt.f32 %v3519_v32  ;;  %v3520_v11 = vadd.f32 1e-05, %v3456_v9  ;;  %v3361_v31 = vmul.f32 0.015625, %v3315_v50  ;;  %v3394_v19 = vmul.f32 %v7239_v10, %v7239_v10 }
 0x5fb   : > { %v3318_v62 = vpop.xlane.xlu1 %3317  ;;  %4360 = vmatmul.mubr.msk.bf16.gmra.mrb[80].mxu0 %vm446_vm1, %v3602_v42 }
 0x5fc   : > { %v5230_v40 = vpop.eup %5229  ;;  %5235 = vrsqrt.f32 %v3520_v11  ;;  %v3425_v23 = vsub.f32 %v3361_v31, %v3393_v58  ;;  %v3362_v56 = vmul.f32 0.015625, %v3318_v62  ;;  %3849 = vmatprep.mubr.bf16.mxu0 %v5320_v8  ;;  %v3489_v62 = vsub.f32 %v7054_v44, %v7237_v60 }
 0x5fd   : > { %v3161_v36 = vpop.xlane.xlu0 %3160  ;;  %v3581_v22 = vmul.f32 %v5230_v40, %v3485_v24  ;;  %v3490_v40 = vsub.f32 %v7058_v14, %v7239_v10 }
 0x5fe   : > { %v5232_v57 = vpop.eup %5231  ;;  %v3457_v33 = vmax.f32 %v3425_v23, 0.0  ;;  %v3426_v53 = vsub.f32 %v3362_v56, %v3394_v19  ;;  %v7251_v4 = vmul.f32 0.015625, %v3161_v36 }
 0x5ff   : > { %v3164_v6 = vpop.xlane.xlu1 %3163  ;;  %v3582_v17 = vmul.f32 %v5232_v57, %v3486_v59 }
 0x600   : > { %v3521_v52 = vadd.f32 1e-05, %v3457_v33  ;;  %v3458_v61 = vmax.f32 %v3426_v53, 0.0  ;;  %v7253_v12 = vmul.f32 0.015625, %v3164_v6  ;;  %v3395_v21 = vmul.f32 %v7251_v4, %v7251_v4 }
 0x601   : > { %v3321_v49 = vpop.xlane.xlu0 %3320  ;;  %v3603_v2 = vpack.c.bf16 %v3582_v17, %v3581_v22 }
 0x602   : > { %5237 = vrsqrt.f32 %v3521_v52  ;;  %v3522_v51 = vadd.f32 1e-05, %v3458_v61  ;;  %v3363_v38 = vmul.f32 0.015625, %v3321_v49  ;;  %v3396_v27 = vmul.f32 %v7253_v12, %v7253_v12 }
 0x603   : > { %v3324_v3 = vpop.xlane.xlu1 %3323  ;;  %4361 = vmatmul.mubr.msk.bf16.gmra.mrb[84].mxu0 %vm446_vm1, %v3603_v2 }
 0x604   : > { %v5234_v43 = vpop.eup %5233  ;;  %5239 = vrsqrt.f32 %v3522_v51  ;;  %v3427_v35 = vsub.f32 %v3363_v38, %v3395_v21  ;;  %v3364_v25 = vmul.f32 0.015625, %v3324_v3  ;;  %3859 = vmatprep.mubr.bf16.mxu0 %v5320_v8  ;;  %v3491_v21 = vsub.f32 %v7071_v30, %v7251_v4 }
 0x605   : > { %v3167_v47 = vpop.xlane.xlu0 %3166  ;;  %v3583_v13 = vmul.f32 %v5234_v43, %v3487_v37  ;;  %v3492_v38 = vsub.f32 %v7076_v7, %v7253_v12 }
 0x606   : > { %v5236_v28 = vpop.eup %5235  ;;  %v3459_v46 = vmax.f32 %v3427_v35, 0.0  ;;  %v3428_v0 = vsub.f32 %v3364_v25, %v3396_v27  ;;  %v7265_v39 = vmul.f32 0.015625, %v3167_v47 }
 0x607   : > { %v3170_v15 = vpop.xlane.xlu1 %3169  ;;  %v3584_v48 = vmul.f32 %v5236_v28, %v3488_v16 }
 0x608   : > { %v3523_v5 = vadd.f32 1e-05, %v3459_v46  ;;  %v3460_v26 = vmax.f32 %v3428_v0, 0.0  ;;  %v7267_v32 = vmul.f32 0.015625, %v3170_v15  ;;  %v3397_v45 = vmul.f32 %v7265_v39, %v7265_v39 }
 0x609   : > { %v3327_v9 = vpop.xlane.xlu0 %3326  ;;  %v3604_v50 = vpack.c.bf16 %v3584_v48, %v3583_v13  ;;  %v3493_v30 = vsub.f32 %v7088_v29, %v7265_v39 }
 0x60a   : > { %5241 = vrsqrt.f32 %v3523_v5  ;;  %v3524_v1 = vadd.f32 1e-05, %v3460_v26  ;;  %v3365_v18 = vmul.f32 0.015625, %v3327_v9  ;;  %v3398_v11 = vmul.f32 %v7267_v32, %v7267_v32 }
 0x60b   : > { %v3330_v34 = vpop.xlane.xlu1 %3329  ;;  %4362 = vmatmul.mubr.msk.bf16.gmra.mrb[88].mxu0 %vm446_vm1, %v3604_v50  ;;  %v3494_v7 = vsub.f32 %v7092_v20, %v7267_v32  ;;  %v3617_v20 = vld [vmem:[%s7468_s10] sm:$0x3]  ;;  %v3625_v32 = vsub.s32 1, %v5533_v41 }
 0x60c   : > { %v5238_v42 = vpop.eup %5237  ;;  %5243 = vrsqrt.f32 %v3524_v1  ;;  %v3429_v58 = vsub.f32 %v3365_v18, %v3397_v45  ;;  %v3366_v31 = vmul.f32 0.015625, %v3330_v34  ;;  %3869 = vmatprep.mubr.bf16.mxu0 %v5320_v8  ;;  %v7301_v50 = vrot.slane %v3617_v20, %v5543_v54 }
 0x60d   : > { %v3173_v19 = vpop.xlane.xlu0 %3172  ;;  %v3585_v57 = vmul.f32 %v5238_v42, %v3489_v62 }
 0x60e   : > { %v5240_v23 = vpop.eup %5239  ;;  %v3461_v56 = vmax.f32 %v3429_v58, 0.0  ;;  %v3430_v24 = vsub.f32 %v3366_v31, %v3398_v11  ;;  %v3207_v59 = vmul.f32 0.015625, %v3173_v19 }
 0x60f   : > { %v3176_v36 = vpop.xlane.xlu1 %3175  ;;  %v3586_v33 = vmul.f32 %v5240_v23, %v3490_v40 }
 0x610   : > { %v3525_v53 = vadd.f32 1e-05, %v3461_v56  ;;  %v3462_v6 = vmax.f32 %v3430_v24, 0.0  ;;  %v3208_v22 = vmul.f32 0.015625, %v3176_v36  ;;  %v3399_v49 = vmul.f32 %v3207_v59, %v3207_v59 }
 0x611   : > { %v3333_v17 = vpop.xlane.xlu0 %3332  ;;  %v3605_v52 = vpack.c.bf16 %v3586_v33, %v3585_v57  ;;  %v3495_v48 = vsub.f32 %v7105_v63, %v3207_v59 }
 0x612   : > { %5245 = vrsqrt.f32 %v3525_v53  ;;  %v3526_v61 = vadd.f32 1e-05, %v3462_v6  ;;  %v3367_v44 = vmul.f32 0.015625, %v3333_v17  ;;  %v3400_v10 = vmul.f32 %v3208_v22, %v3208_v22 }
 0x613   : > { %v3336_v60 = vpop.xlane.xlu1 %3335  ;;  %4363 = vmatmul.mubr.msk.bf16.gmra.mrb[92].mxu0 %vm446_vm1, %v3605_v52  ;;  %v3496_v5 = vsub.f32 %v7110_v55, %v3208_v22 }
 0x614   : > { %v5242_v14 = vpop.eup %5241  ;;  %5247 = vrsqrt.f32 %v3526_v61  ;;  %v3431_v2 = vsub.f32 %v3367_v44, %v3399_v49  ;;  %v3368_v51 = vmul.f32 0.015625, %v3336_v60  ;;  %3879 = vmatprep.mubr.bf16.mxu0 %v5320_v8 }
 0x615   : > { %v3587_v35 = vmul.f32 %v5242_v14, %v3491_v21 }
 0x616   : > { %v5244_v3 = vpop.eup %5243  ;;  %v3463_v43 = vmax.f32 %v3431_v2, 0.0  ;;  %v3432_v27 = vsub.f32 %v3368_v51, %v3400_v10 }
 0x617   : > { %v3588_v25 = vmul.f32 %v5244_v3, %v3492_v38 }
 0x618   : > { %v3527_v37 = vadd.f32 1e-05, %v3463_v43  ;;  %v3464_v16 = vmax.f32 %v3432_v27, 0.0 }
 0x619   : > { %v3606_v47 = vpack.c.bf16 %v3588_v25, %v3587_v35 }
 0x61a   : > { %5249 = vrsqrt.f32 %v3527_v37  ;;  %v3528_v28 = vadd.f32 1e-05, %v3464_v16 }
 0x61b   : > { %4364 = vmatmul.mubr.msk.bf16.gmra.mrb[96].mxu0 %vm446_vm1, %v3606_v47 }
 0x61c   : > { %v5246_v46 = vpop.eup %5245  ;;  %5251 = vrsqrt.f32 %v3528_v28  ;;  %3889 = vmatprep.mubr.bf16.mxu0 %v5320_v8 }
 0x61d   : > { %v3589_v12 = vmul.f32 %v5246_v46, %v3493_v30 }
 0x61e   : > { %v5248_v4 = vpop.eup %5247 }
 0x61f   : > { %v3590_v0 = vmul.f32 %v5248_v4, %v3494_v7 }
 0x621   : > { %v3607_v15 = vpack.c.bf16 %v3590_v0, %v3589_v12 }
 0x623   : > { %4365 = vmatmul.mubr.msk.bf16.gmra.mrb[100].mxu0 %vm446_vm1, %v3607_v15 }
 0x624   : > { %v5250_v13 = vpop.eup %5249  ;;  %3899 = vmatprep.mubr.bf16.mxu0 %v5320_v8  ;;  %v7304_v8 = vrot.slane %v3617_v20, %v3625_v32 }
 0x625   : > { %v3591_v29 = vmul.f32 %v5250_v13, %v3495_v48 }
 0x626   : > { %v5252_v26 = vpop.eup %5251 }
 0x627   : > { %v3592_v39 = vmul.f32 %v5252_v26, %v3496_v5 }
 0x629   : > { %v3608_v9 = vpack.c.bf16 %v3592_v39, %v3591_v29 }
 0x62b   : > { %4366 = vmatmul.mubr.msk.bf16.gmra.mrb[104].mxu0 %vm446_vm1, %v3608_v9 }
 0x666   : > { %v3751_v63 = vpop.f32.mrb[44].mxu0 }
 0x667   : > { %v3752_v55 = vadd.f32 %v3751_v63, %v7301_v50  ;;  %v3753_v1 = vpop.f32.mrb[45].mxu0 }
 0x668   : > { %v3754_v45 = vadd.f32 %v3753_v1, %v7304_v8  ;;  %v3755_v18 = vpop.f32.mrb[46].mxu0 }
 0x669   : > { %v3756_v34 = vadd.f32 %v3755_v18, %v7301_v50  ;;  %v3757_v42 = vpop.f32.mrb[47].mxu0 }
 0x66a   : > { %v4405_v11 = vpack.c.bf16 %v3754_v45, %v3752_v55  ;;  %v3758_v41 = vadd.f32 %v3757_v42, %v7304_v8 }
 0x66c   : > { %4102 = vst [vmem:[%s7312_s24] sm:$0xff] %v4405_v11  ;;  %v4406_v54 = vpack.c.bf16 %v3758_v41, %v3756_v34 }
 0x66e   : > { %4103 = vst [vmem:[%s7312_s24 + $0x8] sm:$0xff] %v4406_v54  ;;  %v3761_v58 = vpop.f32.mrb[48].mxu0 }
 0x66f   : > { %v3762_v31 = vadd.f32 %v3761_v58, %v7301_v50  ;;  %v3763_v62 = vpop.f32.mrb[49].mxu0 }
 0x670   : > { %v3764_v40 = vadd.f32 %v3763_v62, %v7304_v8  ;;  %v3765_v19 = vpop.f32.mrb[50].mxu0 }
 0x671   : > { %v3766_v23 = vadd.f32 %v3765_v19, %v7301_v50  ;;  %v3767_v56 = vpop.f32.mrb[51].mxu0 }
 0x672   : > { %v4407_v24 = vpack.c.bf16 %v3764_v40, %v3762_v31  ;;  %v3768_v59 = vadd.f32 %v3767_v56, %v7304_v8 }
 0x674   : > { %4104 = vst [vmem:[%s7312_s24 + $0x10] sm:$0xff] %v4407_v24  ;;  %v4408_v36 = vpack.c.bf16 %v3768_v59, %v3766_v23 }
 0x676   : > { %4105 = vst [vmem:[%s7312_s24 + $0x18] sm:$0xff] %v4408_v36 }
 0x68f   : > { %v3771_v57 = vpop.f32.mrb[52].mxu0 }
 0x690   : > { %v3772_v33 = vadd.f32 %v3771_v57, %v7301_v50  ;;  %v3773_v53 = vpop.f32.mrb[53].mxu0 }
 0x691   : > { %v3774_v6 = vadd.f32 %v3773_v53, %v7304_v8  ;;  %v3775_v22 = vpop.f32.mrb[54].mxu0 }
 0x692   : > { %v3776_v17 = vadd.f32 %v3775_v22, %v7301_v50  ;;  %v3777_v52 = vpop.f32.mrb[55].mxu0 }
 0x693   : > { %v4409_v61 = vpack.c.bf16 %v3774_v6, %v3772_v33  ;;  %v3778_v49 = vadd.f32 %v3777_v52, %v7304_v8 }
 0x695   : > { %4106 = vst [vmem:[%s7312_s24 + $0x20] sm:$0xff] %v4409_v61  ;;  %v4410_v44 = vpack.c.bf16 %v3778_v49, %v3776_v17 }
 0x697   : > { %4107 = vst [vmem:[%s7312_s24 + $0x28] sm:$0xff] %v4410_v44  ;;  %v3781_v60 = vpop.f32.mrb[56].mxu0 }
 0x698   : > { %v3782_v14 = vadd.f32 %v3781_v60, %v7301_v50  ;;  %v3783_v10 = vpop.f32.mrb[57].mxu0 }
 0x699   : > { %v3784_v2 = vadd.f32 %v3783_v10, %v7304_v8  ;;  %v3785_v51 = vpop.f32.mrb[58].mxu0 }
 0x69a   : > { %v3786_v21 = vadd.f32 %v3785_v51, %v7301_v50  ;;  %v3787_v38 = vpop.f32.mrb[59].mxu0 }
 0x69b   : > { %v4411_v3 = vpack.c.bf16 %v3784_v2, %v3782_v14  ;;  %v3788_v43 = vadd.f32 %v3787_v38, %v7304_v8 }
 0x69d   : > { %4108 = vst [vmem:[%s7312_s24 + $0x30] sm:$0xff] %v4411_v3  ;;  %v4412_v27 = vpack.c.bf16 %v3788_v43, %v3786_v21 }
 0x69f   : > { %4109 = vst [vmem:[%s7312_s24 + $0x38] sm:$0xff] %v4412_v27 }
 0x6a6   : > { %v3791_v35 = vpop.f32.mrb[60].mxu0 }
 0x6a7   : > { %v3792_v25 = vadd.f32 %v3791_v35, %v7301_v50  ;;  %v3793_v37 = vpop.f32.mrb[61].mxu0 }
 0x6a8   : > { %v3794_v16 = vadd.f32 %v3793_v37, %v7304_v8  ;;  %v3795_v47 = vpop.f32.mrb[62].mxu0 }
 0x6a9   : > { %v3796_v28 = vadd.f32 %v3795_v47, %v7301_v50  ;;  %v3797_v46 = vpop.f32.mrb[63].mxu0 }
 0x6aa   : > { %v4413_v30 = vpack.c.bf16 %v3794_v16, %v3792_v25  ;;  %v3798_v7 = vadd.f32 %v3797_v46, %v7304_v8 }
 0x6ac   : > { %4110 = vst [vmem:[%s7312_s24 + $0x40] sm:$0xff] %v4413_v30  ;;  %v4414_v4 = vpack.c.bf16 %v3798_v7, %v3796_v28 }
 0x6ae   : > { %4111 = vst [vmem:[%s7312_s24 + $0x48] sm:$0xff] %v4414_v4  ;;  %v3801_v12 = vpop.f32.mrb[64].mxu0 }
 0x6af   : > { %v3802_v0 = vadd.f32 %v3801_v12, %v7301_v50  ;;  %v3803_v15 = vpop.f32.mrb[65].mxu0 }
 0x6b0   : > { %v3804_v13 = vadd.f32 %v3803_v15, %v7304_v8  ;;  %v3805_v48 = vpop.f32.mrb[66].mxu0 }
 0x6b1   : > { %v3806_v5 = vadd.f32 %v3805_v48, %v7301_v50  ;;  %v3807_v26 = vpop.f32.mrb[67].mxu0 }
 0x6b2   : > { %v4415_v29 = vpack.c.bf16 %v3804_v13, %v3802_v0  ;;  %v3808_v39 = vadd.f32 %v3807_v26, %v7304_v8 }
 0x6b4   : > { %4112 = vst [vmem:[%s7312_s24 + $0x50] sm:$0xff] %v4415_v29  ;;  %v4416_v9 = vpack.c.bf16 %v3808_v39, %v3806_v5 }
 0x6b6   : > { %4113 = vst [vmem:[%s7312_s24 + $0x58] sm:$0xff] %v4416_v9  ;;  %v3811_v20 = vpop.f32.mrb[68].mxu0 }
 0x6b7   : > { %v3812_v32 = vadd.f32 %v3811_v20, %v7301_v50  ;;  %v3813_v63 = vpop.f32.mrb[69].mxu0 }
 0x6b8   : > { %v3814_v55 = vadd.f32 %v3813_v63, %v7304_v8  ;;  %v3815_v1 = vpop.f32.mrb[70].mxu0 }
 0x6b9   : > { %v3816_v45 = vadd.f32 %v3815_v1, %v7301_v50  ;;  %v3817_v18 = vpop.f32.mrb[71].mxu0 }
 0x6ba   : > { %v4417_v34 = vpack.c.bf16 %v3814_v55, %v3812_v32  ;;  %v3818_v42 = vadd.f32 %v3817_v18, %v7304_v8 }
 0x6bc   : > { %4114 = vst [vmem:[%s7312_s24 + $0x60] sm:$0xff] %v4417_v34  ;;  %v4418_v11 = vpack.c.bf16 %v3818_v42, %v3816_v45 }
 0x6be   : > { %4115 = vst [vmem:[%s7312_s24 + $0x68] sm:$0xff] %v4418_v11  ;;  %v3821_v41 = vpop.f32.mrb[72].mxu0 }
 0x6bf   : > { %v3822_v54 = vadd.f32 %v3821_v41, %v7301_v50  ;;  %v3823_v58 = vpop.f32.mrb[73].mxu0 }
 0x6c0   : > { %v3824_v31 = vadd.f32 %v3823_v58, %v7304_v8  ;;  %v3825_v62 = vpop.f32.mrb[74].mxu0 }
 0x6c1   : > { %v3826_v40 = vadd.f32 %v3825_v62, %v7301_v50  ;;  %v3827_v19 = vpop.f32.mrb[75].mxu0 }
 0x6c2   : > { %v4419_v23 = vpack.c.bf16 %v3824_v31, %v3822_v54  ;;  %v3828_v56 = vadd.f32 %v3827_v19, %v7304_v8 }
 0x6c4   : > { %4116 = vst [vmem:[%s7312_s24 + $0x70] sm:$0xff] %v4419_v23  ;;  %v4420_v24 = vpack.c.bf16 %v3828_v56, %v3826_v40 }
 0x6c6   : > { %4117 = vst [vmem:[%s7312_s24 + $0x78] sm:$0xff] %v4420_v24  ;;  %v3831_v59 = vpop.f32.mrb[76].mxu0 }
 0x6c7   : > { %v3832_v36 = vadd.f32 %v3831_v59, %v7301_v50  ;;  %v3833_v57 = vpop.f32.mrb[77].mxu0 }
 0x6c8   : > { %v3834_v33 = vadd.f32 %v3833_v57, %v7304_v8  ;;  %v3835_v53 = vpop.f32.mrb[78].mxu0 }
 0x6c9   : > { %v3836_v6 = vadd.f32 %v3835_v53, %v7301_v50  ;;  %v3837_v22 = vpop.f32.mrb[79].mxu0 }
 0x6ca   : > { %v4421_v17 = vpack.c.bf16 %v3834_v33, %v3832_v36  ;;  %v3838_v52 = vadd.f32 %v3837_v22, %v7304_v8 }
 0x6cc   : > { %4118 = vst [vmem:[%s7312_s24 + $0x80] sm:$0xff] %v4421_v17  ;;  %v4422_v61 = vpack.c.bf16 %v3838_v52, %v3836_v6 }
 0x6ce   : > { %4119 = vst [vmem:[%s7312_s24 + $0x88] sm:$0xff] %v4422_v61  ;;  %v3841_v49 = vpop.f32.mrb[80].mxu0 }
 0x6cf   : > { %v3842_v44 = vadd.f32 %v3841_v49, %v7301_v50  ;;  %v3843_v60 = vpop.f32.mrb[81].mxu0 }
 0x6d0   : > { %v3844_v14 = vadd.f32 %v3843_v60, %v7304_v8  ;;  %v3845_v10 = vpop.f32.mrb[82].mxu0 }
 0x6d1   : > { %v3846_v2 = vadd.f32 %v3845_v10, %v7301_v50  ;;  %v3847_v51 = vpop.f32.mrb[83].mxu0 }
 0x6d2   : > { %v4423_v21 = vpack.c.bf16 %v3844_v14, %v3842_v44  ;;  %v3848_v38 = vadd.f32 %v3847_v51, %v7304_v8 }
 0x6d4   : > { %4120 = vst [vmem:[%s7312_s24 + $0x90] sm:$0xff] %v4423_v21  ;;  %v4424_v3 = vpack.c.bf16 %v3848_v38, %v3846_v2 }
 0x6d6   : > { %4121 = vst [vmem:[%s7312_s24 + $0x98] sm:$0xff] %v4424_v3  ;;  %v3851_v43 = vpop.f32.mrb[84].mxu0 }
 0x6d7   : > { %v3852_v27 = vadd.f32 %v3851_v43, %v7301_v50  ;;  %v3853_v35 = vpop.f32.mrb[85].mxu0 }
 0x6d8   : > { %v3854_v25 = vadd.f32 %v3853_v35, %v7304_v8  ;;  %v3855_v37 = vpop.f32.mrb[86].mxu0 }
 0x6d9   : > { %v3856_v16 = vadd.f32 %v3855_v37, %v7301_v50  ;;  %v3857_v47 = vpop.f32.mrb[87].mxu0 }
 0x6da   : > { %v4425_v28 = vpack.c.bf16 %v3854_v25, %v3852_v27  ;;  %v3858_v46 = vadd.f32 %v3857_v47, %v7304_v8 }
 0x6dc   : > { %4122 = vst [vmem:[%s7312_s24 + $0xa0] sm:$0xff] %v4425_v28  ;;  %v4426_v30 = vpack.c.bf16 %v3858_v46, %v3856_v16 }
 0x6de   : > { %4123 = vst [vmem:[%s7312_s24 + $0xa8] sm:$0xff] %v4426_v30  ;;  %v3861_v7 = vpop.f32.mrb[88].mxu0 }
 0x6df   : > { %v3862_v4 = vadd.f32 %v3861_v7, %v7301_v50  ;;  %v3863_v12 = vpop.f32.mrb[89].mxu0 }
 0x6e0   : > { %v3864_v0 = vadd.f32 %v3863_v12, %v7304_v8  ;;  %v3865_v15 = vpop.f32.mrb[90].mxu0 }
 0x6e1   : > { %v3866_v13 = vadd.f32 %v3865_v15, %v7301_v50  ;;  %v3867_v48 = vpop.f32.mrb[91].mxu0 }
 0x6e2   : > { %v4427_v5 = vpack.c.bf16 %v3864_v0, %v3862_v4  ;;  %v3868_v26 = vadd.f32 %v3867_v48, %v7304_v8 }
 0x6e4   : > { %4124 = vst [vmem:[%s7312_s24 + $0xb0] sm:$0xff] %v4427_v5  ;;  %v4428_v29 = vpack.c.bf16 %v3868_v26, %v3866_v13 }
 0x6e6   : > { %4125 = vst [vmem:[%s7312_s24 + $0xb8] sm:$0xff] %v4428_v29  ;;  %v3871_v39 = vpop.f32.mrb[92].mxu0 }
 0x6e7   : > { %v3872_v9 = vadd.f32 %v3871_v39, %v7301_v50  ;;  %v3873_v20 = vpop.f32.mrb[93].mxu0 }
 0x6e8   : > { %v3874_v32 = vadd.f32 %v3873_v20, %v7304_v8  ;;  %v3875_v63 = vpop.f32.mrb[94].mxu0 }
 0x6e9   : > { %v3876_v55 = vadd.f32 %v3875_v63, %v7301_v50  ;;  %v3877_v1 = vpop.f32.mrb[95].mxu0 }
 0x6ea   : > { %v4429_v45 = vpack.c.bf16 %v3874_v32, %v3872_v9  ;;  %v3878_v18 = vadd.f32 %v3877_v1, %v7304_v8 }
 0x6ec   : > { %4126 = vst [vmem:[%s7312_s24 + $0xc0] sm:$0xff] %v4429_v45  ;;  %v4430_v34 = vpack.c.bf16 %v3878_v18, %v3876_v55 }
 0x6ee   : > { %4127 = vst [vmem:[%s7312_s24 + $0xc8] sm:$0xff] %v4430_v34  ;;  %v3881_v42 = vpop.f32.mrb[96].mxu0 }
 0x6ef   : > { %v3882_v11 = vadd.f32 %v3881_v42, %v7301_v50  ;;  %v3883_v41 = vpop.f32.mrb[97].mxu0 }
 0x6f0   : > { %v3884_v54 = vadd.f32 %v3883_v41, %v7304_v8  ;;  %v3885_v58 = vpop.f32.mrb[98].mxu0 }
 0x6f1   : > { %v3886_v31 = vadd.f32 %v3885_v58, %v7301_v50  ;;  %v3887_v62 = vpop.f32.mrb[99].mxu0 }
 0x6f2   : > { %v4431_v40 = vpack.c.bf16 %v3884_v54, %v3882_v11  ;;  %v3888_v19 = vadd.f32 %v3887_v62, %v7304_v8 }
 0x6f4   : > { %4128 = vst [vmem:[%s7312_s24 + $0xd0] sm:$0xff] %v4431_v40  ;;  %v4432_v23 = vpack.c.bf16 %v3888_v19, %v3886_v31 }
 0x6f6   : > { %4129 = vst [vmem:[%s7312_s24 + $0xd8] sm:$0xff] %v4432_v23  ;;  %v3891_v56 = vpop.f32.mrb[100].mxu0 }
 0x6f7   : > { %v3892_v24 = vadd.f32 %v3891_v56, %v7301_v50  ;;  %v3893_v59 = vpop.f32.mrb[101].mxu0 }
 0x6f8   : > { %v3894_v36 = vadd.f32 %v3893_v59, %v7304_v8  ;;  %v3895_v57 = vpop.f32.mrb[102].mxu0 }
 0x6f9   : > { %v3896_v33 = vadd.f32 %v3895_v57, %v7301_v50  ;;  %v3897_v53 = vpop.f32.mrb[103].mxu0 }
 0x6fa   : > { %v4433_v6 = vpack.c.bf16 %v3894_v36, %v3892_v24  ;;  %v3898_v22 = vadd.f32 %v3897_v53, %v7304_v8 }
 0x6fc   : > { %4130 = vst [vmem:[%s7312_s24 + $0xe0] sm:$0xff] %v4433_v6  ;;  %v4434_v17 = vpack.c.bf16 %v3898_v22, %v3896_v33 }
 0x6fe   : > { %4131 = vst [vmem:[%s7312_s24 + $0xe8] sm:$0xff] %v4434_v17  ;;  %v3901_v52 = vpop.f32.mrb[104].mxu0 }
 0x6ff   : > { %v3902_v61 = vadd.f32 %v3901_v52, %v7301_v50  ;;  %v3903_v49 = vpop.f32.mrb[105].mxu0 }
 0x700   : > { %v3904_v44 = vadd.f32 %v3903_v49, %v7304_v8  ;;  %v3905_v60 = vpop.f32.mrb[106].mxu0 }
 0x701   : > { %v3906_v14 = vadd.f32 %v3905_v60, %v7301_v50  ;;  %v3907_v10 = vpop.f32.mrb[107].mxu0 }
 0x702   : > { %v4435_v2 = vpack.c.bf16 %v3904_v44, %v3902_v61  ;;  %v3908_v51 = vadd.f32 %v3907_v10, %v7304_v8 }
 0x704   : > { %4132 = vst [vmem:[%s7312_s24 + $0xf0] sm:$0xff] %v4435_v2  ;;  %v4436_v21 = vpack.c.bf16 %v3908_v51, %v3906_v14 }
 0x706   : > { %4133 = vst [vmem:[%s7312_s24 + $0xf8] sm:$0xff] %v4436_v21 }
 0x707   : > { %5266 = shalt.err (!%p5263_p4)
}
 0x708   : > { %s5267_s19 = scalar_lea.hbm %s7409_s25, 4096  ;;  %s5271_s24 = scalar_lea.hbm %s7469_s11, 8192 }
 0x709   : > { %p5268_p7 = scmp.ne.s32.totalorder %s7409_s25, %s5267_s19  ;;  %p5272_p10 = scmp.lt.u32.totalorder %s7409_s25, %s7469_s11 }
 0x70a   : > { %p5273_p11 = scmp.lt.u32.totalorder %s5271_s24, %s5267_s19  ;;  %p5275_p13 = scmp.lt.u32.totalorder %s5267_s19, %s7409_s25 }
 0x70b   : > { %p5269_p8 = pnand %p5268_p7, %p5422_p5 }
 0x70c   : > { %p5274_p12 = por %p5273_p11, %p5272_p10 }
 0x70d   : > { %p5270_p9 = pneg %p5269_p8 }
 0x70e   : > { %p5276_p0 = por %p5275_p13, %p5274_p12 }
 0x710   : > { %p5277_p1 = pnand %p5276_p0, %p5270_p9 }
 0x712   : > { %5280 = shalt.err (!%p5277_p1)
}
 0x713   : > { %s5322_s22 = smov 128   ;;  %s5323_s29 = smov 8  }
 0x714   : > { %4820 = dma.vmem_to_hbm [thread:$0]  (%p5422_p5), %s7411_s15, 4096, %s7409_s25, %s7417_s21, %s5322_s22, %s5322_s22, %s5323_s29  }
 0x715 PF: > { %p4826_p2 = scmp.ge.s32.totalorder %s5315_s20, 2  ;;  %s4164_s12 = sand.u32 1, %s5303_s17  }
 0x716   : > { %s4165_s13 = scalar_lea.sflag [#allocation3], %s4164_s12 }
 0x717   : > { %p4823_p3 = pnand %p4826_p2, %p5426_p6 }
 0x719   : > { %5298 = dma.done.wait (!%p4823_p3), %s4165_s13, 4096  }
 0x71a   : > { %5300 = vsyncadd (!%p4823_p3), %s4165_s13, 4294963200  ;;  %s7478_s20 = sld [smem:[#allocation6_spill]]  ;;  %s7479_s14 = sld [smem:[#allocation5_spill]] }
 0x71b   : > { %s7480_s19 = sld [smem:[#allocation7_spill]]  ;;  %s7481_s17 = smov %s5307_s18 }
 0x720   : > { %p21_p4 = scmp.ge.s32.totalorder %s7478_s20, 4   ;;  %s7482_s18 = smov %s7479_s14 }
 0x722   :  { %23 = sbr.rel (!%p21_p4) target bundleno = 3 (0x3), region = 106 }
 0x729   :  { %4170 = vsyncpa [#allocation3], 1 }
 0x72a   :  { %4172 = vsyncpa [#allocation3 + $0x1], 1 }

</bundles_post_ra>
